<compile_context>
chip_gen: v7x
topology: tpu7x:2x2x1
jax: 0.10.0
libtpu: 0.0.40
codegen_flags: <defaults>
</compile_context>

<pallas_src>
from functools import partial

import numpy as np
import jax
import jax.numpy as jnp
from jax.experimental import pallas as pl
from jax.experimental.pallas import tpu as pltpu

CP = 128           # lane-padded channel width used through the whole stack
KSIZE = 3
NTAPS = KSIZE * KSIZE


# ------------------------------ Pallas kernel -------------------------------

def _patch_embed_kernel(x_ref,
                        s1_ref, s2_ref, s3_ref, s4_ref,
                        w1_ref, b1_ref, w2_ref, b2_ref,
                        w3_ref, b3_ref, w4_ref, b4_ref,
                        w5_ref, b5_ref, gg_ref, gb_ref,
                        o_ref, *, eps, inv_count):
    """Whole PatchEmbedding forward for one sample (one grid step = one image)."""

    def conv_bn_relu(act, s_ref, w_ref, b_ref):
        # act:   (M_in, CP) bf16 activation, spatial flattened row-major.
        # s_ref: (9, M_out, M_in) bf16 0/1 tap-selection matrices (im2col).
        # w_ref: (9, CP, CP) bf16 conv weight per tap, BN scale folded in.
        # b_ref: (1, CP) f32 folded bias.
        m_out = s_ref.shape[1]
        acc = jnp.zeros((m_out, w_ref.shape[-1]), jnp.float32)
        for t in range(NTAPS):
            g = jnp.dot(s_ref[t], act, preferred_element_type=jnp.float32)
            acc = acc + jnp.dot(g.astype(jnp.bfloat16), w_ref[t],
                                preferred_element_type=jnp.float32)
        return jnp.maximum(acc + b_ref[...], 0.0).astype(jnp.bfloat16)

    act = x_ref[0]                                        # (H*W, CP) bf16
    act = conv_bn_relu(act, s1_ref, w1_ref, b1_ref)       # (H/2*W/2, CP)
    act = conv_bn_relu(act, s2_ref, w2_ref, b2_ref)       # (H/4*W/4, CP)
    act = conv_bn_relu(act, s3_ref, w3_ref, b3_ref)
    act = conv_bn_relu(act, s4_ref, w4_ref, b4_ref)

    # conv5 (1x1 + bias) fused with GroupNorm(num_groups=1).
    y = jnp.dot(act, w5_ref[...], preferred_element_type=jnp.float32)
    y = y + b5_ref[...]                                   # padded channels == 0
    mean = jnp.sum(y) * inv_count
    mean_sq = jnp.sum(y * y) * inv_count
    var = mean_sq - mean * mean                           # single-pass variance
    inv = jax.lax.rsqrt(var + eps)
    # Padded gamma/beta are zero, so padded output channels stay exactly zero.
    o_ref[0] = ((y - mean) * inv) * gg_ref[...] + gb_ref[...]


# ------------------------------ param prep ----------------------------------

def _make_tap_selection(h_in, w_in, h_out, w_out, stride):
    """0/1 matrices S[t] with S[t] @ act gathering the (dh,dw) tap rows."""
    m_in, m_out = h_in * w_in, h_out * w_out
    s = np.zeros((NTAPS, m_out, m_in), np.float32)
    for dh in range(KSIZE):
        for dw in range(KSIZE):
            t = dh * KSIZE + dw
            for oh in range(h_out):
                ih = stride * oh + dh - 1               # padding = 1
                if not 0 <= ih < h_in:
                    continue
                for ow in range(w_out):
                    iw = stride * ow + dw - 1
                    if not 0 <= iw < w_in:
                        continue
                    s[t, oh * w_out + ow, ih * w_in + iw] = 1.0
    return jnp.asarray(s, jnp.bfloat16)


def _fold_conv_bn(p, eps=1e-5):
    """Conv2d(3x3, bias) + BatchNorm2d(eval) -> tap-major bf16 weight + f32 bias."""
    w, b = p["w"], p["b"]
    oc, ic = w.shape[0], w.shape[1]
    scale = p["bn_gamma"] / jnp.sqrt(p["bn_rv"] + eps)
    wf = w * scale[:, None, None, None]                   # fold scale into W
    bias = (b - p["bn_rm"]) * scale + p["bn_beta"]
    wt = jnp.transpose(wf, (2, 3, 1, 0))                  # (kh, kw, ic, oc)
    wt = jnp.pad(wt, ((0, 0), (0, 0), (0, CP - ic), (0, CP - oc)))
    wt = wt.reshape(NTAPS, CP, CP).astype(jnp.bfloat16)
    bias = jnp.pad(bias, (0, CP - oc)).reshape(1, CP).astype(jnp.float32)
    return wt, bias


def _full_spec(arr):
    zeros = (0,) * arr.ndim
    return pl.BlockSpec(arr.shape, lambda b: zeros)


# ------------------------------- forward pass -------------------------------

def patch_embedding(x_nchw, params, out_channels=96):
    B, cin, H, W = x_nchw.shape
    assert cin <= CP and out_channels <= CP
    h1, w1 = (H - 1) // 2 + 1, (W - 1) // 2 + 1          # conv1: k3 s2 p1
    h2, w2 = (h1 - 1) // 2 + 1, (w1 - 1) // 2 + 1        # conv2: k3 s2 p1
    hw_out = h2 * w2

    # NCHW -> (B, H*W, CP) bf16, channels zero-padded to the lane width.
    x = jnp.transpose(x_nchw, (0, 2, 3, 1)).reshape(B, H * W, cin)
    x = jnp.pad(x, ((0, 0), (0, 0), (0, CP - cin))).astype(jnp.bfloat16)

    s1 = _make_tap_selection(H, W, h1, w1, 2)
    s2 = _make_tap_selection(h1, w1, h2, w2, 2)
    s3 = _make_tap_selection(h2, w2, h2, w2, 1)
    s4 = s3

    w1m, b1 = _fold_conv_bn(params["conv1"])
    w2m, b2 = _fold_conv_bn(params["conv2"])
    w3m, b3 = _fold_conv_bn(params["conv3"])
    w4m, b4 = _fold_conv_bn(params["conv4"])

    w5 = params["conv5"]["w"].reshape(out_channels, out_channels)
    w5m = jnp.pad(jnp.transpose(w5, (1, 0)),
                  ((0, CP - out_channels), (0, CP - out_channels))
                  ).astype(jnp.bfloat16)
    b5 = jnp.pad(params["conv5"]["b"], (0, CP - out_channels)
                 ).reshape(1, CP).astype(jnp.float32)
    gg = jnp.pad(params["gn_gamma"], (0, CP - out_channels)
                 ).reshape(1, CP).astype(jnp.float32)
    gb = jnp.pad(params["gn_beta"], (0, CP - out_channels)
                 ).reshape(1, CP).astype(jnp.float32)

    operands = (x, s1, s2, s3, s4,
                w1m, b1, w2m, b2, w3m, b3, w4m, b4,
                w5m, b5, gg, gb)
    in_specs = [pl.BlockSpec((1, H * W, CP), lambda b: (b, 0, 0))]
    in_specs += [_full_spec(a) for a in operands[1:]]

    flops = 0
    for s in (s1, s2, s3, s4):
        m_out, m_in = s.shape[1], s.shape[2]
        flops += NTAPS * 2 * (m_out * m_in * CP + m_out * CP * CP)
    flops = B * (flops + 2 * hw_out * CP * CP)
    bytes_accessed = int(sum(a.size * a.dtype.itemsize for a in operands)
                         + B * hw_out * CP * 4)

    out = pl.pallas_call(
        partial(_patch_embed_kernel, eps=1e-5,
                inv_count=1.0 / (hw_out * out_channels)),
        out_shape=jax.ShapeDtypeStruct((B, hw_out, CP), jnp.float32),
        grid=(B,),
        in_specs=in_specs,
        out_specs=pl.BlockSpec((1, hw_out, CP), lambda b: (b, 0, 0)),
        compiler_params=pltpu.CompilerParams(
            dimension_semantics=("parallel",),
            vmem_limit_bytes=32 * 1024 * 1024),
        cost_estimate=pl.CostEstimate(flops=flops, transcendentals=B,
                                      bytes_accessed=bytes_accessed),
    )(*operands)

    # NHWC -> NCHW; channel crop AFTER the transpose (keeps lane dim dense).
    out = out.reshape(B, h2, w2, CP)
    return jnp.transpose(out, (0, 3, 1, 2))[:, :out_channels]


# ---------------------------- pure-JAX reference ----------------------------

def reference_patch_embedding(x, params, out_channels=96, eps=1e-5):
    def conv(h, w, b, stride, pad):
        y = jax.lax.conv_general_dilated(
            h, w, window_strides=(stride, stride),
            padding=((pad, pad), (pad, pad)),
            dimension_numbers=("NCHW", "OIHW", "NCHW"))
        return y + b[None, :, None, None]

    h = x
    for name, stride in (("conv1", 2), ("conv2", 2), ("conv3", 1), ("conv4", 1)):
        p = params[name]
        h = conv(h, p["w"], p["b"], stride, 1)
        scale = p["bn_gamma"] / jnp.sqrt(p["bn_rv"] + eps)
        h = (h - p["bn_rm"][None, :, None, None]) * scale[None, :, None, None] \
            + p["bn_beta"][None, :, None, None]
        h = jnp.maximum(h, 0.0)
    h = conv(h, params["conv5"]["w"], params["conv5"]["b"], 1, 0)
    mean = jnp.mean(h, axis=(1, 2, 3), keepdims=True)
    var = jnp.var(h, axis=(1, 2, 3), keepdims=True)
    h = (h - mean) * jax.lax.rsqrt(var + eps)
    return h * params["gn_gamma"][None, :, None, None] \
             + params["gn_beta"][None, :, None, None]


# --------------------------- deterministic init -----------------------------

def init_params(key, in_channels=3, out_channels=96):
    half = out_channels // 2
    specs = {
        "conv1": (half, in_channels),
        "conv2": (out_channels, half),
        "conv3": (out_channels, out_channels),
        "conv4": (out_channels, out_channels),
    }
    params = {}
    for name, (oc, ic) in specs.items():
        key, kw, kb, kg, kbt = jax.random.split(key, 5)
        params[name] = {
            "w": 0.1 * jax.random.normal(kw, (oc, ic, 3, 3), jnp.float32),
            "b": 0.05 * jax.random.normal(kb, (oc,), jnp.float32),
            "bn_gamma": 1.0 + 0.1 * jax.random.normal(kg, (oc,), jnp.float32),
            "bn_beta": 0.05 * jax.random.normal(kbt, (oc,), jnp.float32),
            "bn_rm": jnp.zeros((oc,), jnp.float32),
            "bn_rv": jnp.ones((oc,), jnp.float32),
        }
    key, kw5, kb5, kg5, kbt5 = jax.random.split(key, 5)
    params["conv5"] = {
        "w": 0.1 * jax.random.normal(kw5, (out_channels, out_channels, 1, 1),
                                     jnp.float32),
        "b": 0.05 * jax.random.normal(kb5, (out_channels,), jnp.float32),
    }
    params["gn_gamma"] = 1.0 + 0.1 * jax.random.normal(kg5, (out_channels,),
                                                       jnp.float32)
    params["gn_beta"] = 0.05 * jax.random.normal(kbt5, (out_channels,),
                                                 jnp.float32)
    return params


# ---------------------------------- main -------------------------------------

if __name__ == "__main__":
    key = jax.random.PRNGKey(0)
    key, kx = jax.random.split(key)

    B, Cin, H, W = 2, 3, 16, 16
    Cout = 96
    x = jax.random.normal(kx, (B, Cin, H, W), jnp.float32)   # NCHW like PyTorch
    params = init_params(key, in_channels=Cin, out_channels=Cout)

    fwd = jax.jit(partial(patch_embedding, out_channels=Cout))
    out = jax.block_until_ready(fwd(x, params))

    assert out.shape == (B, Cout, H // 4, W // 4), out.shape
    assert out.dtype == jnp.float32
    assert bool(jnp.all(jnp.isfinite(out)))

    ref = reference_patch_embedding(x, params, out_channels=Cout)
    max_err = float(jnp.max(jnp.abs(out - ref)))
    # bf16 weights/activations vs f32 reference on unit-scale (post-GN) outputs.
    assert max_err < 0.35, f"max abs error vs f32 reference: {max_err}"

    print("KERNEL_OK")
</pallas_src>

<mosaic_0001>
module attributes {stable_mosaic.version = 11 : i64} {
  func.func @_patch_embed_kernel(%arg0: i32, %arg1: memref<1x256x128xbf16, #tpu.memory_space<vmem>>, %arg2: memref<9x64x256xbf16, #tpu.memory_space<vmem>>, %arg3: memref<9x16x64xbf16, #tpu.memory_space<vmem>>, %arg4: memref<9x16x16xbf16, #tpu.memory_space<vmem>>, %arg5: memref<9x16x16xbf16, #tpu.memory_space<vmem>>, %arg6: memref<9x128x128xbf16, #tpu.memory_space<vmem>>, %arg7: memref<1x128xf32, #tpu.memory_space<vmem>>, %arg8: memref<9x128x128xbf16, #tpu.memory_space<vmem>>, %arg9: memref<1x128xf32, #tpu.memory_space<vmem>>, %arg10: memref<9x128x128xbf16, #tpu.memory_space<vmem>>, %arg11: memref<1x128xf32, #tpu.memory_space<vmem>>, %arg12: memref<9x128x128xbf16, #tpu.memory_space<vmem>>, %arg13: memref<1x128xf32, #tpu.memory_space<vmem>>, %arg14: memref<128x128xbf16, #tpu.memory_space<vmem>>, %arg15: memref<1x128xf32, #tpu.memory_space<vmem>>, %arg16: memref<1x128xf32, #tpu.memory_space<vmem>>, %arg17: memref<1x128xf32, #tpu.memory_space<vmem>>, %arg18: memref<1x16x128xf32, #tpu.memory_space<vmem>>) attributes {dimension_semantics = [#tpu.dimension_semantics<parallel>], iteration_bounds = array<i64: 2>, scalar_prefetch = 0 : i64, scratch_operands = 0 : i64, tpu.core_type = #tpu.core_type<tc>, window_params = [{transform_indices = @transform_0, window_bounds = array<i64: 1, 256, 128>}, {pipeline_mode = #tpu.pipeline_mode<synchronous>, transform_indices = @transform_1, window_bounds = array<i64: 9, 64, 256>}, {pipeline_mode = #tpu.pipeline_mode<synchronous>, transform_indices = @transform_2, window_bounds = array<i64: 9, 16, 64>}, {pipeline_mode = #tpu.pipeline_mode<synchronous>, transform_indices = @transform_3, window_bounds = array<i64: 9, 16, 16>}, {pipeline_mode = #tpu.pipeline_mode<synchronous>, transform_indices = @transform_4, window_bounds = array<i64: 9, 16, 16>}, {pipeline_mode = #tpu.pipeline_mode<synchronous>, transform_indices = @transform_5, window_bounds = array<i64: 9, 128, 128>}, {pipeline_mode = #tpu.pipeline_mode<synchronous>, transform_indices = @transform_6, window_bounds = array<i64: 1, 128>}, {pipeline_mode = #tpu.pipeline_mode<synchronous>, transform_indices = @transform_7, window_bounds = array<i64: 9, 128, 128>}, {pipeline_mode = #tpu.pipeline_mode<synchronous>, transform_indices = @transform_8, window_bounds = array<i64: 1, 128>}, {pipeline_mode = #tpu.pipeline_mode<synchronous>, transform_indices = @transform_9, window_bounds = array<i64: 9, 128, 128>}, {pipeline_mode = #tpu.pipeline_mode<synchronous>, transform_indices = @transform_10, window_bounds = array<i64: 1, 128>}, {pipeline_mode = #tpu.pipeline_mode<synchronous>, transform_indices = @transform_11, window_bounds = array<i64: 9, 128, 128>}, {pipeline_mode = #tpu.pipeline_mode<synchronous>, transform_indices = @transform_12, window_bounds = array<i64: 1, 128>}, {pipeline_mode = #tpu.pipeline_mode<synchronous>, transform_indices = @transform_13, window_bounds = array<i64: 128, 128>}, {pipeline_mode = #tpu.pipeline_mode<synchronous>, transform_indices = @transform_14, window_bounds = array<i64: 1, 128>}, {pipeline_mode = #tpu.pipeline_mode<synchronous>, transform_indices = @transform_15, window_bounds = array<i64: 1, 128>}, {pipeline_mode = #tpu.pipeline_mode<synchronous>, transform_indices = @transform_16, window_bounds = array<i64: 1, 128>}, {transform_indices = @transform_17, window_bounds = array<i64: 1, 16, 128>}]} {
    %c0 = arith.constant 0 : index
    %c0_0 = arith.constant 0 : index
    %c0_1 = arith.constant 0 : index
    %0 = vector.load %arg1[%c0, %c0_0, %c0_1] : memref<1x256x128xbf16, #tpu.memory_space<vmem>>, vector<1x256x128xbf16>
    %1 = vector.shape_cast %0 : vector<1x256x128xbf16> to vector<256x128xbf16>
    %cst = arith.constant 0.000000e+00 : f32
    %2 = vector.broadcast %cst : f32 to vector<64x128xf32>
    %c0_2 = arith.constant 0 : index
    %c0_3 = arith.constant 0 : index
    %c0_4 = arith.constant 0 : index
    %3 = vector.load %arg2[%c0_2, %c0_3, %c0_4] : memref<9x64x256xbf16, #tpu.memory_space<vmem>>, vector<1x64x256xbf16>
    %4 = vector.shape_cast %3 : vector<1x64x256xbf16> to vector<64x256xbf16>
    %cst_5 = arith.constant dense<0.000000e+00> : vector<64x128xf32>
    %5 = tpu.matmul %4, %1, %cst_5 {dimension_numbers = #tpu.dot_dimension_numbers<[1], [0], [0], [1], [0, 0, 1, 1], [], []>} : vector<64x256xbf16>, vector<256x128xbf16>, vector<64x128xf32> -> vector<64x128xf32>
    %6 = arith.truncf %5 : vector<64x128xf32> to vector<64x128xbf16>
    %c0_6 = arith.constant 0 : index
    %c0_7 = arith.constant 0 : index
    %c0_8 = arith.constant 0 : index
    %7 = vector.load %arg6[%c0_6, %c0_7, %c0_8] : memref<9x128x128xbf16, #tpu.memory_space<vmem>>, vector<1x128x128xbf16>
    %8 = vector.shape_cast %7 : vector<1x128x128xbf16> to vector<128x128xbf16>
    %cst_9 = arith.constant dense<0.000000e+00> : vector<64x128xf32>
    %9 = tpu.matmul %6, %8, %cst_9 {dimension_numbers = #tpu.dot_dimension_numbers<[1], [0], [0], [1], [0, 0, 1, 1], [], []>} : vector<64x128xbf16>, vector<128x128xbf16>, vector<64x128xf32> -> vector<64x128xf32>
    %10 = arith.addf %2, %9 : vector<64x128xf32>
    %c1 = arith.constant 1 : index
    %c0_10 = arith.constant 0 : index
    %c0_11 = arith.constant 0 : index
    %11 = vector.load %arg2[%c1, %c0_10, %c0_11] : memref<9x64x256xbf16, #tpu.memory_space<vmem>>, vector<1x64x256xbf16>
    %12 = vector.shape_cast %11 : vector<1x64x256xbf16> to vector<64x256xbf16>
    %cst_12 = arith.constant dense<0.000000e+00> : vector<64x128xf32>
    %13 = tpu.matmul %12, %1, %cst_12 {dimension_numbers = #tpu.dot_dimension_numbers<[1], [0], [0], [1], [0, 0, 1, 1], [], []>} : vector<64x256xbf16>, vector<256x128xbf16>, vector<64x128xf32> -> vector<64x128xf32>
    %14 = arith.truncf %13 : vector<64x128xf32> to vector<64x128xbf16>
    %c1_13 = arith.constant 1 : index
    %c0_14 = arith.constant 0 : index
    %c0_15 = arith.constant 0 : index
    %15 = vector.load %arg6[%c1_13, %c0_14, %c0_15] : memref<9x128x128xbf16, #tpu.memory_space<vmem>>, vector<1x128x128xbf16>
    %16 = vector.shape_cast %15 : vector<1x128x128xbf16> to vector<128x128xbf16>
    %cst_16 = arith.constant dense<0.000000e+00> : vector<64x128xf32>
    %17 = tpu.matmul %14, %16, %cst_16 {dimension_numbers = #tpu.dot_dimension_numbers<[1], [0], [0], [1], [0, 0, 1, 1], [], []>} : vector<64x128xbf16>, vector<128x128xbf16>, vector<64x128xf32> -> vector<64x128xf32>
    %18 = arith.addf %10, %17 : vector<64x128xf32>
    %c2 = arith.constant 2 : index
    %c0_17 = arith.constant 0 : index
    %c0_18 = arith.constant 0 : index
    %19 = vector.load %arg2[%c2, %c0_17, %c0_18] : memref<9x64x256xbf16, #tpu.memory_space<vmem>>, vector<1x64x256xbf16>
    %20 = vector.shape_cast %19 : vector<1x64x256xbf16> to vector<64x256xbf16>
    %cst_19 = arith.constant dense<0.000000e+00> : vector<64x128xf32>
    %21 = tpu.matmul %20, %1, %cst_19 {dimension_numbers = #tpu.dot_dimension_numbers<[1], [0], [0], [1], [0, 0, 1, 1], [], []>} : vector<64x256xbf16>, vector<256x128xbf16>, vector<64x128xf32> -> vector<64x128xf32>
    %22 = arith.truncf %21 : vector<64x128xf32> to vector<64x128xbf16>
    %c2_20 = arith.constant 2 : index
    %c0_21 = arith.constant 0 : index
    %c0_22 = arith.constant 0 : index
    %23 = vector.load %arg6[%c2_20, %c0_21, %c0_22] : memref<9x128x128xbf16, #tpu.memory_space<vmem>>, vector<1x128x128xbf16>
    %24 = vector.shape_cast %23 : vector<1x128x128xbf16> to vector<128x128xbf16>
    %cst_23 = arith.constant dense<0.000000e+00> : vector<64x128xf32>
    %25 = tpu.matmul %22, %24, %cst_23 {dimension_numbers = #tpu.dot_dimension_numbers<[1], [0], [0], [1], [0, 0, 1, 1], [], []>} : vector<64x128xbf16>, vector<128x128xbf16>, vector<64x128xf32> -> vector<64x128xf32>
    %26 = arith.addf %18, %25 : vector<64x128xf32>
    %c3 = arith.constant 3 : index
    %c0_24 = arith.constant 0 : index
    %c0_25 = arith.constant 0 : index
    %27 = vector.load %arg2[%c3, %c0_24, %c0_25] : memref<9x64x256xbf16, #tpu.memory_space<vmem>>, vector<1x64x256xbf16>
    %28 = vector.shape_cast %27 : vector<1x64x256xbf16> to vector<64x256xbf16>
    %cst_26 = arith.constant dense<0.000000e+00> : vector<64x128xf32>
    %29 = tpu.matmul %28, %1, %cst_26 {dimension_numbers = #tpu.dot_dimension_numbers<[1], [0], [0], [1], [0, 0, 1, 1], [], []>} : vector<64x256xbf16>, vector<256x128xbf16>, vector<64x128xf32> -> vector<64x128xf32>
    %30 = arith.truncf %29 : vector<64x128xf32> to vector<64x128xbf16>
    %c3_27 = arith.constant 3 : index
    %c0_28 = arith.constant 0 : index
    %c0_29 = arith.constant 0 : index
    %31 = vector.load %arg6[%c3_27, %c0_28, %c0_29] : memref<9x128x128xbf16, #tpu.memory_space<vmem>>, vector<1x128x128xbf16>
    %32 = vector.shape_cast %31 : vector<1x128x128xbf16> to vector<128x128xbf16>
    %cst_30 = arith.constant dense<0.000000e+00> : vector<64x128xf32>
    %33 = tpu.matmul %30, %32, %cst_30 {dimension_numbers = #tpu.dot_dimension_numbers<[1], [0], [0], [1], [0, 0, 1, 1], [], []>} : vector<64x128xbf16>, vector<128x128xbf16>, vector<64x128xf32> -> vector<64x128xf32>
    %34 = arith.addf %26, %33 : vector<64x128xf32>
    %c4 = arith.constant 4 : index
    %c0_31 = arith.constant 0 : index
    %c0_32 = arith.constant 0 : index
    %35 = vector.load %arg2[%c4, %c0_31, %c0_32] : memref<9x64x256xbf16, #tpu.memory_space<vmem>>, vector<1x64x256xbf16>
    %36 = vector.shape_cast %35 : vector<1x64x256xbf16> to vector<64x256xbf16>
    %cst_33 = arith.constant dense<0.000000e+00> : vector<64x128xf32>
    %37 = tpu.matmul %36, %1, %cst_33 {dimension_numbers = #tpu.dot_dimension_numbers<[1], [0], [0], [1], [0, 0, 1, 1], [], []>} : vector<64x256xbf16>, vector<256x128xbf16>, vector<64x128xf32> -> vector<64x128xf32>
    %38 = arith.truncf %37 : vector<64x128xf32> to vector<64x128xbf16>
    %c4_34 = arith.constant 4 : index
    %c0_35 = arith.constant 0 : index
    %c0_36 = arith.constant 0 : index
    %39 = vector.load %arg6[%c4_34, %c0_35, %c0_36] : memref<9x128x128xbf16, #tpu.memory_space<vmem>>, vector<1x128x128xbf16>
    %40 = vector.shape_cast %39 : vector<1x128x128xbf16> to vector<128x128xbf16>
    %cst_37 = arith.constant dense<0.000000e+00> : vector<64x128xf32>
    %41 = tpu.matmul %38, %40, %cst_37 {dimension_numbers = #tpu.dot_dimension_numbers<[1], [0], [0], [1], [0, 0, 1, 1], [], []>} : vector<64x128xbf16>, vector<128x128xbf16>, vector<64x128xf32> -> vector<64x128xf32>
    %42 = arith.addf %34, %41 : vector<64x128xf32>
    %c5 = arith.constant 5 : index
    %c0_38 = arith.constant 0 : index
    %c0_39 = arith.constant 0 : index
    %43 = vector.load %arg2[%c5, %c0_38, %c0_39] : memref<9x64x256xbf16, #tpu.memory_space<vmem>>, vector<1x64x256xbf16>
    %44 = vector.shape_cast %43 : vector<1x64x256xbf16> to vector<64x256xbf16>
    %cst_40 = arith.constant dense<0.000000e+00> : vector<64x128xf32>
    %45 = tpu.matmul %44, %1, %cst_40 {dimension_numbers = #tpu.dot_dimension_numbers<[1], [0], [0], [1], [0, 0, 1, 1], [], []>} : vector<64x256xbf16>, vector<256x128xbf16>, vector<64x128xf32> -> vector<64x128xf32>
    %46 = arith.truncf %45 : vector<64x128xf32> to vector<64x128xbf16>
    %c5_41 = arith.constant 5 : index
    %c0_42 = arith.constant 0 : index
    %c0_43 = arith.constant 0 : index
    %47 = vector.load %arg6[%c5_41, %c0_42, %c0_43] : memref<9x128x128xbf16, #tpu.memory_space<vmem>>, vector<1x128x128xbf16>
    %48 = vector.shape_cast %47 : vector<1x128x128xbf16> to vector<128x128xbf16>
    %cst_44 = arith.constant dense<0.000000e+00> : vector<64x128xf32>
    %49 = tpu.matmul %46, %48, %cst_44 {dimension_numbers = #tpu.dot_dimension_numbers<[1], [0], [0], [1], [0, 0, 1, 1], [], []>} : vector<64x128xbf16>, vector<128x128xbf16>, vector<64x128xf32> -> vector<64x128xf32>
    %50 = arith.addf %42, %49 : vector<64x128xf32>
    %c6 = arith.constant 6 : index
    %c0_45 = arith.constant 0 : index
    %c0_46 = arith.constant 0 : index
    %51 = vector.load %arg2[%c6, %c0_45, %c0_46] : memref<9x64x256xbf16, #tpu.memory_space<vmem>>, vector<1x64x256xbf16>
    %52 = vector.shape_cast %51 : vector<1x64x256xbf16> to vector<64x256xbf16>
    %cst_47 = arith.constant dense<0.000000e+00> : vector<64x128xf32>
    %53 = tpu.matmul %52, %1, %cst_47 {dimension_numbers = #tpu.dot_dimension_numbers<[1], [0], [0], [1], [0, 0, 1, 1], [], []>} : vector<64x256xbf16>, vector<256x128xbf16>, vector<64x128xf32> -> vector<64x128xf32>
    %54 = arith.truncf %53 : vector<64x128xf32> to vector<64x128xbf16>
    %c6_48 = arith.constant 6 : index
    %c0_49 = arith.constant 0 : index
    %c0_50 = arith.constant 0 : index
    %55 = vector.load %arg6[%c6_48, %c0_49, %c0_50] : memref<9x128x128xbf16, #tpu.memory_space<vmem>>, vector<1x128x128xbf16>
    %56 = vector.shape_cast %55 : vector<1x128x128xbf16> to vector<128x128xbf16>
    %cst_51 = arith.constant dense<0.000000e+00> : vector<64x128xf32>
    %57 = tpu.matmul %54, %56, %cst_51 {dimension_numbers = #tpu.dot_dimension_numbers<[1], [0], [0], [1], [0, 0, 1, 1], [], []>} : vector<64x128xbf16>, vector<128x128xbf16>, vector<64x128xf32> -> vector<64x128xf32>
    %58 = arith.addf %50, %57 : vector<64x128xf32>
    %c7 = arith.constant 7 : index
    %c0_52 = arith.constant 0 : index
    %c0_53 = arith.constant 0 : index
    %59 = vector.load %arg2[%c7, %c0_52, %c0_53] : memref<9x64x256xbf16, #tpu.memory_space<vmem>>, vector<1x64x256xbf16>
    %60 = vector.shape_cast %59 : vector<1x64x256xbf16> to vector<64x256xbf16>
    %cst_54 = arith.constant dense<0.000000e+00> : vector<64x128xf32>
    %61 = tpu.matmul %60, %1, %cst_54 {dimension_numbers = #tpu.dot_dimension_numbers<[1], [0], [0], [1], [0, 0, 1, 1], [], []>} : vector<64x256xbf16>, vector<256x128xbf16>, vector<64x128xf32> -> vector<64x128xf32>
    %62 = arith.truncf %61 : vector<64x128xf32> to vector<64x128xbf16>
    %c7_55 = arith.constant 7 : index
    %c0_56 = arith.constant 0 : index
    %c0_57 = arith.constant 0 : index
    %63 = vector.load %arg6[%c7_55, %c0_56, %c0_57] : memref<9x128x128xbf16, #tpu.memory_space<vmem>>, vector<1x128x128xbf16>
    %64 = vector.shape_cast %63 : vector<1x128x128xbf16> to vector<128x128xbf16>
    %cst_58 = arith.constant dense<0.000000e+00> : vector<64x128xf32>
    %65 = tpu.matmul %62, %64, %cst_58 {dimension_numbers = #tpu.dot_dimension_numbers<[1], [0], [0], [1], [0, 0, 1, 1], [], []>} : vector<64x128xbf16>, vector<128x128xbf16>, vector<64x128xf32> -> vector<64x128xf32>
    %66 = arith.addf %58, %65 : vector<64x128xf32>
    %c8 = arith.constant 8 : index
    %c0_59 = arith.constant 0 : index
    %c0_60 = arith.constant 0 : index
    %67 = vector.load %arg2[%c8, %c0_59, %c0_60] : memref<9x64x256xbf16, #tpu.memory_space<vmem>>, vector<1x64x256xbf16>
    %68 = vector.shape_cast %67 : vector<1x64x256xbf16> to vector<64x256xbf16>
    %cst_61 = arith.constant dense<0.000000e+00> : vector<64x128xf32>
    %69 = tpu.matmul %68, %1, %cst_61 {dimension_numbers = #tpu.dot_dimension_numbers<[1], [0], [0], [1], [0, 0, 1, 1], [], []>} : vector<64x256xbf16>, vector<256x128xbf16>, vector<64x128xf32> -> vector<64x128xf32>
    %70 = arith.truncf %69 : vector<64x128xf32> to vector<64x128xbf16>
    %c8_62 = arith.constant 8 : index
    %c0_63 = arith.constant 0 : index
    %c0_64 = arith.constant 0 : index
    %71 = vector.load %arg6[%c8_62, %c0_63, %c0_64] : memref<9x128x128xbf16, #tpu.memory_space<vmem>>, vector<1x128x128xbf16>
    %72 = vector.shape_cast %71 : vector<1x128x128xbf16> to vector<128x128xbf16>
    %cst_65 = arith.constant dense<0.000000e+00> : vector<64x128xf32>
    %73 = tpu.matmul %70, %72, %cst_65 {dimension_numbers = #tpu.dot_dimension_numbers<[1], [0], [0], [1], [0, 0, 1, 1], [], []>} : vector<64x128xbf16>, vector<128x128xbf16>, vector<64x128xf32> -> vector<64x128xf32>
    %74 = arith.addf %66, %73 : vector<64x128xf32>
    %c0_66 = arith.constant 0 : index
    %c0_67 = arith.constant 0 : index
    %75 = vector.load %arg7[%c0_66, %c0_67] : memref<1x128xf32, #tpu.memory_space<vmem>>, vector<1x128xf32>
    %76 = vector.broadcast %75 : vector<1x128xf32> to vector<64x128xf32>
    %77 = arith.addf %74, %76 : vector<64x128xf32>
    %cst_68 = arith.constant 0.000000e+00 : f32
    %78 = vector.broadcast %cst_68 : f32 to vector<64x128xf32>
    %79 = arith.maximumf %77, %78 : vector<64x128xf32>
    %80 = arith.truncf %79 : vector<64x128xf32> to vector<64x128xbf16>
    %cst_69 = arith.constant 0.000000e+00 : f32
    %81 = vector.broadcast %cst_69 : f32 to vector<16x128xf32>
    %c0_70 = arith.constant 0 : index
    %c0_71 = arith.constant 0 : index
    %c0_72 = arith.constant 0 : index
    %82 = vector.load %arg3[%c0_70, %c0_71, %c0_72] : memref<9x16x64xbf16, #tpu.memory_space<vmem>>, vector<1x16x64xbf16>
    %83 = vector.shape_cast %82 : vector<1x16x64xbf16> to vector<16x64xbf16>
    %cst_73 = arith.constant dense<0.000000e+00> : vector<16x128xf32>
    %84 = tpu.matmul %83, %80, %cst_73 {dimension_numbers = #tpu.dot_dimension_numbers<[1], [0], [0], [1], [0, 0, 1, 1], [], []>} : vector<16x64xbf16>, vector<64x128xbf16>, vector<16x128xf32> -> vector<16x128xf32>
    %85 = arith.truncf %84 : vector<16x128xf32> to vector<16x128xbf16>
    %c0_74 = arith.constant 0 : index
    %c0_75 = arith.constant 0 : index
    %c0_76 = arith.constant 0 : index
    %86 = vector.load %arg8[%c0_74, %c0_75, %c0_76] : memref<9x128x128xbf16, #tpu.memory_space<vmem>>, vector<1x128x128xbf16>
    %87 = vector.shape_cast %86 : vector<1x128x128xbf16> to vector<128x128xbf16>
    %cst_77 = arith.constant dense<0.000000e+00> : vector<16x128xf32>
    %88 = tpu.matmul %85, %87, %cst_77 {dimension_numbers = #tpu.dot_dimension_numbers<[1], [0], [0], [1], [0, 0, 1, 1], [], []>} : vector<16x128xbf16>, vector<128x128xbf16>, vector<16x128xf32> -> vector<16x128xf32>
    %89 = arith.addf %81, %88 : vector<16x128xf32>
    %c1_78 = arith.constant 1 : index
    %c0_79 = arith.constant 0 : index
    %c0_80 = arith.constant 0 : index
    %90 = vector.load %arg3[%c1_78, %c0_79, %c0_80] : memref<9x16x64xbf16, #tpu.memory_space<vmem>>, vector<1x16x64xbf16>
    %91 = vector.shape_cast %90 : vector<1x16x64xbf16> to vector<16x64xbf16>
    %cst_81 = arith.constant dense<0.000000e+00> : vector<16x128xf32>
    %92 = tpu.matmul %91, %80, %cst_81 {dimension_numbers = #tpu.dot_dimension_numbers<[1], [0], [0], [1], [0, 0, 1, 1], [], []>} : vector<16x64xbf16>, vector<64x128xbf16>, vector<16x128xf32> -> vector<16x128xf32>
    %93 = arith.truncf %92 : vector<16x128xf32> to vector<16x128xbf16>
    %c1_82 = arith.constant 1 : index
    %c0_83 = arith.constant 0 : index
    %c0_84 = arith.constant 0 : index
    %94 = vector.load %arg8[%c1_82, %c0_83, %c0_84] : memref<9x128x128xbf16, #tpu.memory_space<vmem>>, vector<1x128x128xbf16>
    %95 = vector.shape_cast %94 : vector<1x128x128xbf16> to vector<128x128xbf16>
    %cst_85 = arith.constant dense<0.000000e+00> : vector<16x128xf32>
    %96 = tpu.matmul %93, %95, %cst_85 {dimension_numbers = #tpu.dot_dimension_numbers<[1], [0], [0], [1], [0, 0, 1, 1], [], []>} : vector<16x128xbf16>, vector<128x128xbf16>, vector<16x128xf32> -> vector<16x128xf32>
    %97 = arith.addf %89, %96 : vector<16x128xf32>
    %c2_86 = arith.constant 2 : index
    %c0_87 = arith.constant 0 : index
    %c0_88 = arith.constant 0 : index
    %98 = vector.load %arg3[%c2_86, %c0_87, %c0_88] : memref<9x16x64xbf16, #tpu.memory_space<vmem>>, vector<1x16x64xbf16>
    %99 = vector.shape_cast %98 : vector<1x16x64xbf16> to vector<16x64xbf16>
    %cst_89 = arith.constant dense<0.000000e+00> : vector<16x128xf32>
    %100 = tpu.matmul %99, %80, %cst_89 {dimension_numbers = #tpu.dot_dimension_numbers<[1], [0], [0], [1], [0, 0, 1, 1], [], []>} : vector<16x64xbf16>, vector<64x128xbf16>, vector<16x128xf32> -> vector<16x128xf32>
    %101 = arith.truncf %100 : vector<16x128xf32> to vector<16x128xbf16>
    %c2_90 = arith.constant 2 : index
    %c0_91 = arith.constant 0 : index
    %c0_92 = arith.constant 0 : index
    %102 = vector.load %arg8[%c2_90, %c0_91, %c0_92] : memref<9x128x128xbf16, #tpu.memory_space<vmem>>, vector<1x128x128xbf16>
    %103 = vector.shape_cast %102 : vector<1x128x128xbf16> to vector<128x128xbf16>
    %cst_93 = arith.constant dense<0.000000e+00> : vector<16x128xf32>
    %104 = tpu.matmul %101, %103, %cst_93 {dimension_numbers = #tpu.dot_dimension_numbers<[1], [0], [0], [1], [0, 0, 1, 1], [], []>} : vector<16x128xbf16>, vector<128x128xbf16>, vector<16x128xf32> -> vector<16x128xf32>
    %105 = arith.addf %97, %104 : vector<16x128xf32>
    %c3_94 = arith.constant 3 : index
    %c0_95 = arith.constant 0 : index
    %c0_96 = arith.constant 0 : index
    %106 = vector.load %arg3[%c3_94, %c0_95, %c0_96] : memref<9x16x64xbf16, #tpu.memory_space<vmem>>, vector<1x16x64xbf16>
    %107 = vector.shape_cast %106 : vector<1x16x64xbf16> to vector<16x64xbf16>
    %cst_97 = arith.constant dense<0.000000e+00> : vector<16x128xf32>
    %108 = tpu.matmul %107, %80, %cst_97 {dimension_numbers = #tpu.dot_dimension_numbers<[1], [0], [0], [1], [0, 0, 1, 1], [], []>} : vector<16x64xbf16>, vector<64x128xbf16>, vector<16x128xf32> -> vector<16x128xf32>
    %109 = arith.truncf %108 : vector<16x128xf32> to vector<16x128xbf16>
    %c3_98 = arith.constant 3 : index
    %c0_99 = arith.constant 0 : index
    %c0_100 = arith.constant 0 : index
    %110 = vector.load %arg8[%c3_98, %c0_99, %c0_100] : memref<9x128x128xbf16, #tpu.memory_space<vmem>>, vector<1x128x128xbf16>
    %111 = vector.shape_cast %110 : vector<1x128x128xbf16> to vector<128x128xbf16>
    %cst_101 = arith.constant dense<0.000000e+00> : vector<16x128xf32>
    %112 = tpu.matmul %109, %111, %cst_101 {dimension_numbers = #tpu.dot_dimension_numbers<[1], [0], [0], [1], [0, 0, 1, 1], [], []>} : vector<16x128xbf16>, vector<128x128xbf16>, vector<16x128xf32> -> vector<16x128xf32>
    %113 = arith.addf %105, %112 : vector<16x128xf32>
    %c4_102 = arith.constant 4 : index
    %c0_103 = arith.constant 0 : index
    %c0_104 = arith.constant 0 : index
    %114 = vector.load %arg3[%c4_102, %c0_103, %c0_104] : memref<9x16x64xbf16, #tpu.memory_space<vmem>>, vector<1x16x64xbf16>
    %115 = vector.shape_cast %114 : vector<1x16x64xbf16> to vector<16x64xbf16>
    %cst_105 = arith.constant dense<0.000000e+00> : vector<16x128xf32>
    %116 = tpu.matmul %115, %80, %cst_105 {dimension_numbers = #tpu.dot_dimension_numbers<[1], [0], [0], [1], [0, 0, 1, 1], [], []>} : vector<16x64xbf16>, vector<64x128xbf16>, vector<16x128xf32> -> vector<16x128xf32>
    %117 = arith.truncf %116 : vector<16x128xf32> to vector<16x128xbf16>
    %c4_106 = arith.constant 4 : index
    %c0_107 = arith.constant 0 : index
    %c0_108 = arith.constant 0 : index
    %118 = vector.load %arg8[%c4_106, %c0_107, %c0_108] : memref<9x128x128xbf16, #tpu.memory_space<vmem>>, vector<1x128x128xbf16>
    %119 = vector.shape_cast %118 : vector<1x128x128xbf16> to vector<128x128xbf16>
    %cst_109 = arith.constant dense<0.000000e+00> : vector<16x128xf32>
    %120 = tpu.matmul %117, %119, %cst_109 {dimension_numbers = #tpu.dot_dimension_numbers<[1], [0], [0], [1], [0, 0, 1, 1], [], []>} : vector<16x128xbf16>, vector<128x128xbf16>, vector<16x128xf32> -> vector<16x128xf32>
    %121 = arith.addf %113, %120 : vector<16x128xf32>
    %c5_110 = arith.constant 5 : index
    %c0_111 = arith.constant 0 : index
    %c0_112 = arith.constant 0 : index
    %122 = vector.load %arg3[%c5_110, %c0_111, %c0_112] : memref<9x16x64xbf16, #tpu.memory_space<vmem>>, vector<1x16x64xbf16>
    %123 = vector.shape_cast %122 : vector<1x16x64xbf16> to vector<16x64xbf16>
    %cst_113 = arith.constant dense<0.000000e+00> : vector<16x128xf32>
    %124 = tpu.matmul %123, %80, %cst_113 {dimension_numbers = #tpu.dot_dimension_numbers<[1], [0], [0], [1], [0, 0, 1, 1], [], []>} : vector<16x64xbf16>, vector<64x128xbf16>, vector<16x128xf32> -> vector<16x128xf32>
    %125 = arith.truncf %124 : vector<16x128xf32> to vector<16x128xbf16>
    %c5_114 = arith.constant 5 : index
    %c0_115 = arith.constant 0 : index
    %c0_116 = arith.constant 0 : index
    %126 = vector.load %arg8[%c5_114, %c0_115, %c0_116] : memref<9x128x128xbf16, #tpu.memory_space<vmem>>, vector<1x128x128xbf16>
    %127 = vector.shape_cast %126 : vector<1x128x128xbf16> to vector<128x128xbf16>
    %cst_117 = arith.constant dense<0.000000e+00> : vector<16x128xf32>
    %128 = tpu.matmul %125, %127, %cst_117 {dimension_numbers = #tpu.dot_dimension_numbers<[1], [0], [0], [1], [0, 0, 1, 1], [], []>} : vector<16x128xbf16>, vector<128x128xbf16>, vector<16x128xf32> -> vector<16x128xf32>
    %129 = arith.addf %121, %128 : vector<16x128xf32>
    %c6_118 = arith.constant 6 : index
    %c0_119 = arith.constant 0 : index
    %c0_120 = arith.constant 0 : index
    %130 = vector.load %arg3[%c6_118, %c0_119, %c0_120] : memref<9x16x64xbf16, #tpu.memory_space<vmem>>, vector<1x16x64xbf16>
    %131 = vector.shape_cast %130 : vector<1x16x64xbf16> to vector<16x64xbf16>
    %cst_121 = arith.constant dense<0.000000e+00> : vector<16x128xf32>
    %132 = tpu.matmul %131, %80, %cst_121 {dimension_numbers = #tpu.dot_dimension_numbers<[1], [0], [0], [1], [0, 0, 1, 1], [], []>} : vector<16x64xbf16>, vector<64x128xbf16>, vector<16x128xf32> -> vector<16x128xf32>
    %133 = arith.truncf %132 : vector<16x128xf32> to vector<16x128xbf16>
    %c6_122 = arith.constant 6 : index
    %c0_123 = arith.constant 0 : index
    %c0_124 = arith.constant 0 : index
    %134 = vector.load %arg8[%c6_122, %c0_123, %c0_124] : memref<9x128x128xbf16, #tpu.memory_space<vmem>>, vector<1x128x128xbf16>
    %135 = vector.shape_cast %134 : vector<1x128x128xbf16> to vector<128x128xbf16>
    %cst_125 = arith.constant dense<0.000000e+00> : vector<16x128xf32>
    %136 = tpu.matmul %133, %135, %cst_125 {dimension_numbers = #tpu.dot_dimension_numbers<[1], [0], [0], [1], [0, 0, 1, 1], [], []>} : vector<16x128xbf16>, vector<128x128xbf16>, vector<16x128xf32> -> vector<16x128xf32>
    %137 = arith.addf %129, %136 : vector<16x128xf32>
    %c7_126 = arith.constant 7 : index
    %c0_127 = arith.constant 0 : index
    %c0_128 = arith.constant 0 : index
    %138 = vector.load %arg3[%c7_126, %c0_127, %c0_128] : memref<9x16x64xbf16, #tpu.memory_space<vmem>>, vector<1x16x64xbf16>
    %139 = vector.shape_cast %138 : vector<1x16x64xbf16> to vector<16x64xbf16>
    %cst_129 = arith.constant dense<0.000000e+00> : vector<16x128xf32>
    %140 = tpu.matmul %139, %80, %cst_129 {dimension_numbers = #tpu.dot_dimension_numbers<[1], [0], [0], [1], [0, 0, 1, 1], [], []>} : vector<16x64xbf16>, vector<64x128xbf16>, vector<16x128xf32> -> vector<16x128xf32>
    %141 = arith.truncf %140 : vector<16x128xf32> to vector<16x128xbf16>
    %c7_130 = arith.constant 7 : index
    %c0_131 = arith.constant 0 : index
    %c0_132 = arith.constant 0 : index
    %142 = vector.load %arg8[%c7_130, %c0_131, %c0_132] : memref<9x128x128xbf16, #tpu.memory_space<vmem>>, vector<1x128x128xbf16>
    %143 = vector.shape_cast %142 : vector<1x128x128xbf16> to vector<128x128xbf16>
    %cst_133 = arith.constant dense<0.000000e+00> : vector<16x128xf32>
    %144 = tpu.matmul %141, %143, %cst_133 {dimension_numbers = #tpu.dot_dimension_numbers<[1], [0], [0], [1], [0, 0, 1, 1], [], []>} : vector<16x128xbf16>, vector<128x128xbf16>, vector<16x128xf32> -> vector<16x128xf32>
    %145 = arith.addf %137, %144 : vector<16x128xf32>
    %c8_134 = arith.constant 8 : index
    %c0_135 = arith.constant 0 : index
    %c0_136 = arith.constant 0 : index
    %146 = vector.load %arg3[%c8_134, %c0_135, %c0_136] : memref<9x16x64xbf16, #tpu.memory_space<vmem>>, vector<1x16x64xbf16>
    %147 = vector.shape_cast %146 : vector<1x16x64xbf16> to vector<16x64xbf16>
    %cst_137 = arith.constant dense<0.000000e+00> : vector<16x128xf32>
    %148 = tpu.matmul %147, %80, %cst_137 {dimension_numbers = #tpu.dot_dimension_numbers<[1], [0], [0], [1], [0, 0, 1, 1], [], []>} : vector<16x64xbf16>, vector<64x128xbf16>, vector<16x128xf32> -> vector<16x128xf32>
    %149 = arith.truncf %148 : vector<16x128xf32> to vector<16x128xbf16>
    %c8_138 = arith.constant 8 : index
    %c0_139 = arith.constant 0 : index
    %c0_140 = arith.constant 0 : index
    %150 = vector.load %arg8[%c8_138, %c0_139, %c0_140] : memref<9x128x128xbf16, #tpu.memory_space<vmem>>, vector<1x128x128xbf16>
    %151 = vector.shape_cast %150 : vector<1x128x128xbf16> to vector<128x128xbf16>
    %cst_141 = arith.constant dense<0.000000e+00> : vector<16x128xf32>
    %152 = tpu.matmul %149, %151, %cst_141 {dimension_numbers = #tpu.dot_dimension_numbers<[1], [0], [0], [1], [0, 0, 1, 1], [], []>} : vector<16x128xbf16>, vector<128x128xbf16>, vector<16x128xf32> -> vector<16x128xf32>
    %153 = arith.addf %145, %152 : vector<16x128xf32>
    %c0_142 = arith.constant 0 : index
    %c0_143 = arith.constant 0 : index
    %154 = vector.load %arg9[%c0_142, %c0_143] : memref<1x128xf32, #tpu.memory_space<vmem>>, vector<1x128xf32>
    %155 = vector.broadcast %154 : vector<1x128xf32> to vector<16x128xf32>
    %156 = arith.addf %153, %155 : vector<16x128xf32>
    %cst_144 = arith.constant 0.000000e+00 : f32
    %157 = vector.broadcast %cst_144 : f32 to vector<16x128xf32>
    %158 = arith.maximumf %156, %157 : vector<16x128xf32>
    %159 = arith.truncf %158 : vector<16x128xf32> to vector<16x128xbf16>
    %cst_145 = arith.constant 0.000000e+00 : f32
    %160 = vector.broadcast %cst_145 : f32 to vector<16x128xf32>
    %c0_146 = arith.constant 0 : index
    %c0_147 = arith.constant 0 : index
    %c0_148 = arith.constant 0 : index
    %161 = vector.load %arg4[%c0_146, %c0_147, %c0_148] : memref<9x16x16xbf16, #tpu.memory_space<vmem>>, vector<1x16x16xbf16>
    %162 = vector.shape_cast %161 : vector<1x16x16xbf16> to vector<16x16xbf16>
    %cst_149 = arith.constant dense<0.000000e+00> : vector<16x128xf32>
    %163 = tpu.matmul %162, %159, %cst_149 {dimension_numbers = #tpu.dot_dimension_numbers<[1], [0], [0], [1], [0, 0, 1, 1], [], []>} : vector<16x16xbf16>, vector<16x128xbf16>, vector<16x128xf32> -> vector<16x128xf32>
    %164 = arith.truncf %163 : vector<16x128xf32> to vector<16x128xbf16>
    %c0_150 = arith.constant 0 : index
    %c0_151 = arith.constant 0 : index
    %c0_152 = arith.constant 0 : index
    %165 = vector.load %arg10[%c0_150, %c0_151, %c0_152] : memref<9x128x128xbf16, #tpu.memory_space<vmem>>, vector<1x128x128xbf16>
    %166 = vector.shape_cast %165 : vector<1x128x128xbf16> to vector<128x128xbf16>
    %cst_153 = arith.constant dense<0.000000e+00> : vector<16x128xf32>
    %167 = tpu.matmul %164, %166, %cst_153 {dimension_numbers = #tpu.dot_dimension_numbers<[1], [0], [0], [1], [0, 0, 1, 1], [], []>} : vector<16x128xbf16>, vector<128x128xbf16>, vector<16x128xf32> -> vector<16x128xf32>
    %168 = arith.addf %160, %167 : vector<16x128xf32>
    %c1_154 = arith.constant 1 : index
    %c0_155 = arith.constant 0 : index
    %c0_156 = arith.constant 0 : index
    %169 = vector.load %arg4[%c1_154, %c0_155, %c0_156] : memref<9x16x16xbf16, #tpu.memory_space<vmem>>, vector<1x16x16xbf16>
    %170 = vector.shape_cast %169 : vector<1x16x16xbf16> to vector<16x16xbf16>
    %cst_157 = arith.constant dense<0.000000e+00> : vector<16x128xf32>
    %171 = tpu.matmul %170, %159, %cst_157 {dimension_numbers = #tpu.dot_dimension_numbers<[1], [0], [0], [1], [0, 0, 1, 1], [], []>} : vector<16x16xbf16>, vector<16x128xbf16>, vector<16x128xf32> -> vector<16x128xf32>
    %172 = arith.truncf %171 : vector<16x128xf32> to vector<16x128xbf16>
    %c1_158 = arith.constant 1 : index
    %c0_159 = arith.constant 0 : index
    %c0_160 = arith.constant 0 : index
    %173 = vector.load %arg10[%c1_158, %c0_159, %c0_160] : memref<9x128x128xbf16, #tpu.memory_space<vmem>>, vector<1x128x128xbf16>
    %174 = vector.shape_cast %173 : vector<1x128x128xbf16> to vector<128x128xbf16>
    %cst_161 = arith.constant dense<0.000000e+00> : vector<16x128xf32>
    %175 = tpu.matmul %172, %174, %cst_161 {dimension_numbers = #tpu.dot_dimension_numbers<[1], [0], [0], [1], [0, 0, 1, 1], [], []>} : vector<16x128xbf16>, vector<128x128xbf16>, vector<16x128xf32> -> vector<16x128xf32>
    %176 = arith.addf %168, %175 : vector<16x128xf32>
    %c2_162 = arith.constant 2 : index
    %c0_163 = arith.constant 0 : index
    %c0_164 = arith.constant 0 : index
    %177 = vector.load %arg4[%c2_162, %c0_163, %c0_164] : memref<9x16x16xbf16, #tpu.memory_space<vmem>>, vector<1x16x16xbf16>
    %178 = vector.shape_cast %177 : vector<1x16x16xbf16> to vector<16x16xbf16>
    %cst_165 = arith.constant dense<0.000000e+00> : vector<16x128xf32>
    %179 = tpu.matmul %178, %159, %cst_165 {dimension_numbers = #tpu.dot_dimension_numbers<[1], [0], [0], [1], [0, 0, 1, 1], [], []>} : vector<16x16xbf16>, vector<16x128xbf16>, vector<16x128xf32> -> vector<16x128xf32>
    %180 = arith.truncf %179 : vector<16x128xf32> to vector<16x128xbf16>
    %c2_166 = arith.constant 2 : index
    %c0_167 = arith.constant 0 : index
    %c0_168 = arith.constant 0 : index
    %181 = vector.load %arg10[%c2_166, %c0_167, %c0_168] : memref<9x128x128xbf16, #tpu.memory_space<vmem>>, vector<1x128x128xbf16>
    %182 = vector.shape_cast %181 : vector<1x128x128xbf16> to vector<128x128xbf16>
    %cst_169 = arith.constant dense<0.000000e+00> : vector<16x128xf32>
    %183 = tpu.matmul %180, %182, %cst_169 {dimension_numbers = #tpu.dot_dimension_numbers<[1], [0], [0], [1], [0, 0, 1, 1], [], []>} : vector<16x128xbf16>, vector<128x128xbf16>, vector<16x128xf32> -> vector<16x128xf32>
    %184 = arith.addf %176, %183 : vector<16x128xf32>
    %c3_170 = arith.constant 3 : index
    %c0_171 = arith.constant 0 : index
    %c0_172 = arith.constant 0 : index
    %185 = vector.load %arg4[%c3_170, %c0_171, %c0_172] : memref<9x16x16xbf16, #tpu.memory_space<vmem>>, vector<1x16x16xbf16>
    %186 = vector.shape_cast %185 : vector<1x16x16xbf16> to vector<16x16xbf16>
    %cst_173 = arith.constant dense<0.000000e+00> : vector<16x128xf32>
    %187 = tpu.matmul %186, %159, %cst_173 {dimension_numbers = #tpu.dot_dimension_numbers<[1], [0], [0], [1], [0, 0, 1, 1], [], []>} : vector<16x16xbf16>, vector<16x128xbf16>, vector<16x128xf32> -> vector<16x128xf32>
    %188 = arith.truncf %187 : vector<16x128xf32> to vector<16x128xbf16>
    %c3_174 = arith.constant 3 : index
    %c0_175 = arith.constant 0 : index
    %c0_176 = arith.constant 0 : index
    %189 = vector.load %arg10[%c3_174, %c0_175, %c0_176] : memref<9x128x128xbf16, #tpu.memory_space<vmem>>, vector<1x128x128xbf16>
    %190 = vector.shape_cast %189 : vector<1x128x128xbf16> to vector<128x128xbf16>
    %cst_177 = arith.constant dense<0.000000e+00> : vector<16x128xf32>
    %191 = tpu.matmul %188, %190, %cst_177 {dimension_numbers = #tpu.dot_dimension_numbers<[1], [0], [0], [1], [0, 0, 1, 1], [], []>} : vector<16x128xbf16>, vector<128x128xbf16>, vector<16x128xf32> -> vector<16x128xf32>
    %192 = arith.addf %184, %191 : vector<16x128xf32>
    %c4_178 = arith.constant 4 : index
    %c0_179 = arith.constant 0 : index
    %c0_180 = arith.constant 0 : index
    %193 = vector.load %arg4[%c4_178, %c0_179, %c0_180] : memref<9x16x16xbf16, #tpu.memory_space<vmem>>, vector<1x16x16xbf16>
    %194 = vector.shape_cast %193 : vector<1x16x16xbf16> to vector<16x16xbf16>
    %cst_181 = arith.constant dense<0.000000e+00> : vector<16x128xf32>
    %195 = tpu.matmul %194, %159, %cst_181 {dimension_numbers = #tpu.dot_dimension_numbers<[1], [0], [0], [1], [0, 0, 1, 1], [], []>} : vector<16x16xbf16>, vector<16x128xbf16>, vector<16x128xf32> -> vector<16x128xf32>
    %196 = arith.truncf %195 : vector<16x128xf32> to vector<16x128xbf16>
    %c4_182 = arith.constant 4 : index
    %c0_183 = arith.constant 0 : index
    %c0_184 = arith.constant 0 : index
    %197 = vector.load %arg10[%c4_182, %c0_183, %c0_184] : memref<9x128x128xbf16, #tpu.memory_space<vmem>>, vector<1x128x128xbf16>
    %198 = vector.shape_cast %197 : vector<1x128x128xbf16> to vector<128x128xbf16>
    %cst_185 = arith.constant dense<0.000000e+00> : vector<16x128xf32>
    %199 = tpu.matmul %196, %198, %cst_185 {dimension_numbers = #tpu.dot_dimension_numbers<[1], [0], [0], [1], [0, 0, 1, 1], [], []>} : vector<16x128xbf16>, vector<128x128xbf16>, vector<16x128xf32> -> vector<16x128xf32>
    %200 = arith.addf %192, %199 : vector<16x128xf32>
    %c5_186 = arith.constant 5 : index
    %c0_187 = arith.constant 0 : index
    %c0_188 = arith.constant 0 : index
    %201 = vector.load %arg4[%c5_186, %c0_187, %c0_188] : memref<9x16x16xbf16, #tpu.memory_space<vmem>>, vector<1x16x16xbf16>
    %202 = vector.shape_cast %201 : vector<1x16x16xbf16> to vector<16x16xbf16>
    %cst_189 = arith.constant dense<0.000000e+00> : vector<16x128xf32>
    %203 = tpu.matmul %202, %159, %cst_189 {dimension_numbers = #tpu.dot_dimension_numbers<[1], [0], [0], [1], [0, 0, 1, 1], [], []>} : vector<16x16xbf16>, vector<16x128xbf16>, vector<16x128xf32> -> vector<16x128xf32>
    %204 = arith.truncf %203 : vector<16x128xf32> to vector<16x128xbf16>
    %c5_190 = arith.constant 5 : index
    %c0_191 = arith.constant 0 : index
    %c0_192 = arith.constant 0 : index
    %205 = vector.load %arg10[%c5_190, %c0_191, %c0_192] : memref<9x128x128xbf16, #tpu.memory_space<vmem>>, vector<1x128x128xbf16>
    %206 = vector.shape_cast %205 : vector<1x128x128xbf16> to vector<128x128xbf16>
    %cst_193 = arith.constant dense<0.000000e+00> : vector<16x128xf32>
    %207 = tpu.matmul %204, %206, %cst_193 {dimension_numbers = #tpu.dot_dimension_numbers<[1], [0], [0], [1], [0, 0, 1, 1], [], []>} : vector<16x128xbf16>, vector<128x128xbf16>, vector<16x128xf32> -> vector<16x128xf32>
    %208 = arith.addf %200, %207 : vector<16x128xf32>
    %c6_194 = arith.constant 6 : index
    %c0_195 = arith.constant 0 : index
    %c0_196 = arith.constant 0 : index
    %209 = vector.load %arg4[%c6_194, %c0_195, %c0_196] : memref<9x16x16xbf16, #tpu.memory_space<vmem>>, vector<1x16x16xbf16>
    %210 = vector.shape_cast %209 : vector<1x16x16xbf16> to vector<16x16xbf16>
    %cst_197 = arith.constant dense<0.000000e+00> : vector<16x128xf32>
    %211 = tpu.matmul %210, %159, %cst_197 {dimension_numbers = #tpu.dot_dimension_numbers<[1], [0], [0], [1], [0, 0, 1, 1], [], []>} : vector<16x16xbf16>, vector<16x128xbf16>, vector<16x128xf32> -> vector<16x128xf32>
    %212 = arith.truncf %211 : vector<16x128xf32> to vector<16x128xbf16>
    %c6_198 = arith.constant 6 : index
    %c0_199 = arith.constant 0 : index
    %c0_200 = arith.constant 0 : index
    %213 = vector.load %arg10[%c6_198, %c0_199, %c0_200] : memref<9x128x128xbf16, #tpu.memory_space<vmem>>, vector<1x128x128xbf16>
    %214 = vector.shape_cast %213 : vector<1x128x128xbf16> to vector<128x128xbf16>
    %cst_201 = arith.constant dense<0.000000e+00> : vector<16x128xf32>
    %215 = tpu.matmul %212, %214, %cst_201 {dimension_numbers = #tpu.dot_dimension_numbers<[1], [0], [0], [1], [0, 0, 1, 1], [], []>} : vector<16x128xbf16>, vector<128x128xbf16>, vector<16x128xf32> -> vector<16x128xf32>
    %216 = arith.addf %208, %215 : vector<16x128xf32>
    %c7_202 = arith.constant 7 : index
    %c0_203 = arith.constant 0 : index
    %c0_204 = arith.constant 0 : index
    %217 = vector.load %arg4[%c7_202, %c0_203, %c0_204] : memref<9x16x16xbf16, #tpu.memory_space<vmem>>, vector<1x16x16xbf16>
    %218 = vector.shape_cast %217 : vector<1x16x16xbf16> to vector<16x16xbf16>
    %cst_205 = arith.constant dense<0.000000e+00> : vector<16x128xf32>
    %219 = tpu.matmul %218, %159, %cst_205 {dimension_numbers = #tpu.dot_dimension_numbers<[1], [0], [0], [1], [0, 0, 1, 1], [], []>} : vector<16x16xbf16>, vector<16x128xbf16>, vector<16x128xf32> -> vector<16x128xf32>
    %220 = arith.truncf %219 : vector<16x128xf32> to vector<16x128xbf16>
    %c7_206 = arith.constant 7 : index
    %c0_207 = arith.constant 0 : index
    %c0_208 = arith.constant 0 : index
    %221 = vector.load %arg10[%c7_206, %c0_207, %c0_208] : memref<9x128x128xbf16, #tpu.memory_space<vmem>>, vector<1x128x128xbf16>
    %222 = vector.shape_cast %221 : vector<1x128x128xbf16> to vector<128x128xbf16>
    %cst_209 = arith.constant dense<0.000000e+00> : vector<16x128xf32>
    %223 = tpu.matmul %220, %222, %cst_209 {dimension_numbers = #tpu.dot_dimension_numbers<[1], [0], [0], [1], [0, 0, 1, 1], [], []>} : vector<16x128xbf16>, vector<128x128xbf16>, vector<16x128xf32> -> vector<16x128xf32>
    %224 = arith.addf %216, %223 : vector<16x128xf32>
    %c8_210 = arith.constant 8 : index
    %c0_211 = arith.constant 0 : index
    %c0_212 = arith.constant 0 : index
    %225 = vector.load %arg4[%c8_210, %c0_211, %c0_212] : memref<9x16x16xbf16, #tpu.memory_space<vmem>>, vector<1x16x16xbf16>
    %226 = vector.shape_cast %225 : vector<1x16x16xbf16> to vector<16x16xbf16>
    %cst_213 = arith.constant dense<0.000000e+00> : vector<16x128xf32>
    %227 = tpu.matmul %226, %159, %cst_213 {dimension_numbers = #tpu.dot_dimension_numbers<[1], [0], [0], [1], [0, 0, 1, 1], [], []>} : vector<16x16xbf16>, vector<16x128xbf16>, vector<16x128xf32> -> vector<16x128xf32>
    %228 = arith.truncf %227 : vector<16x128xf32> to vector<16x128xbf16>
    %c8_214 = arith.constant 8 : index
    %c0_215 = arith.constant 0 : index
    %c0_216 = arith.constant 0 : index
    %229 = vector.load %arg10[%c8_214, %c0_215, %c0_216] : memref<9x128x128xbf16, #tpu.memory_space<vmem>>, vector<1x128x128xbf16>
    %230 = vector.shape_cast %229 : vector<1x128x128xbf16> to vector<128x128xbf16>
    %cst_217 = arith.constant dense<0.000000e+00> : vector<16x128xf32>
    %231 = tpu.matmul %228, %230, %cst_217 {dimension_numbers = #tpu.dot_dimension_numbers<[1], [0], [0], [1], [0, 0, 1, 1], [], []>} : vector<16x128xbf16>, vector<128x128xbf16>, vector<16x128xf32> -> vector<16x128xf32>
    %232 = arith.addf %224, %231 : vector<16x128xf32>
    %c0_218 = arith.constant 0 : index
    %c0_219 = arith.constant 0 : index
    %233 = vector.load %arg11[%c0_218, %c0_219] : memref<1x128xf32, #tpu.memory_space<vmem>>, vector<1x128xf32>
    %234 = vector.broadcast %233 : vector<1x128xf32> to vector<16x128xf32>
    %235 = arith.addf %232, %234 : vector<16x128xf32>
    %cst_220 = arith.constant 0.000000e+00 : f32
    %236 = vector.broadcast %cst_220 : f32 to vector<16x128xf32>
    %237 = arith.maximumf %235, %236 : vector<16x128xf32>
    %238 = arith.truncf %237 : vector<16x128xf32> to vector<16x128xbf16>
    %cst_221 = arith.constant 0.000000e+00 : f32
    %239 = vector.broadcast %cst_221 : f32 to vector<16x128xf32>
    %c0_222 = arith.constant 0 : index
    %c0_223 = arith.constant 0 : index
    %c0_224 = arith.constant 0 : index
    %240 = vector.load %arg5[%c0_222, %c0_223, %c0_224] : memref<9x16x16xbf16, #tpu.memory_space<vmem>>, vector<1x16x16xbf16>
    %241 = vector.shape_cast %240 : vector<1x16x16xbf16> to vector<16x16xbf16>
    %cst_225 = arith.constant dense<0.000000e+00> : vector<16x128xf32>
    %242 = tpu.matmul %241, %238, %cst_225 {dimension_numbers = #tpu.dot_dimension_numbers<[1], [0], [0], [1], [0, 0, 1, 1], [], []>} : vector<16x16xbf16>, vector<16x128xbf16>, vector<16x128xf32> -> vector<16x128xf32>
    %243 = arith.truncf %242 : vector<16x128xf32> to vector<16x128xbf16>
    %c0_226 = arith.constant 0 : index
    %c0_227 = arith.constant 0 : index
    %c0_228 = arith.constant 0 : index
    %244 = vector.load %arg12[%c0_226, %c0_227, %c0_228] : memref<9x128x128xbf16, #tpu.memory_space<vmem>>, vector<1x128x128xbf16>
    %245 = vector.shape_cast %244 : vector<1x128x128xbf16> to vector<128x128xbf16>
    %cst_229 = arith.constant dense<0.000000e+00> : vector<16x128xf32>
    %246 = tpu.matmul %243, %245, %cst_229 {dimension_numbers = #tpu.dot_dimension_numbers<[1], [0], [0], [1], [0, 0, 1, 1], [], []>} : vector<16x128xbf16>, vector<128x128xbf16>, vector<16x128xf32> -> vector<16x128xf32>
    %247 = arith.addf %239, %246 : vector<16x128xf32>
    %c1_230 = arith.constant 1 : index
    %c0_231 = arith.constant 0 : index
    %c0_232 = arith.constant 0 : index
    %248 = vector.load %arg5[%c1_230, %c0_231, %c0_232] : memref<9x16x16xbf16, #tpu.memory_space<vmem>>, vector<1x16x16xbf16>
    %249 = vector.shape_cast %248 : vector<1x16x16xbf16> to vector<16x16xbf16>
    %cst_233 = arith.constant dense<0.000000e+00> : vector<16x128xf32>
    %250 = tpu.matmul %249, %238, %cst_233 {dimension_numbers = #tpu.dot_dimension_numbers<[1], [0], [0], [1], [0, 0, 1, 1], [], []>} : vector<16x16xbf16>, vector<16x128xbf16>, vector<16x128xf32> -> vector<16x128xf32>
    %251 = arith.truncf %250 : vector<16x128xf32> to vector<16x128xbf16>
    %c1_234 = arith.constant 1 : index
    %c0_235 = arith.constant 0 : index
    %c0_236 = arith.constant 0 : index
    %252 = vector.load %arg12[%c1_234, %c0_235, %c0_236] : memref<9x128x128xbf16, #tpu.memory_space<vmem>>, vector<1x128x128xbf16>
    %253 = vector.shape_cast %252 : vector<1x128x128xbf16> to vector<128x128xbf16>
    %cst_237 = arith.constant dense<0.000000e+00> : vector<16x128xf32>
    %254 = tpu.matmul %251, %253, %cst_237 {dimension_numbers = #tpu.dot_dimension_numbers<[1], [0], [0], [1], [0, 0, 1, 1], [], []>} : vector<16x128xbf16>, vector<128x128xbf16>, vector<16x128xf32> -> vector<16x128xf32>
    %255 = arith.addf %247, %254 : vector<16x128xf32>
    %c2_238 = arith.constant 2 : index
    %c0_239 = arith.constant 0 : index
    %c0_240 = arith.constant 0 : index
    %256 = vector.load %arg5[%c2_238, %c0_239, %c0_240] : memref<9x16x16xbf16, #tpu.memory_space<vmem>>, vector<1x16x16xbf16>
    %257 = vector.shape_cast %256 : vector<1x16x16xbf16> to vector<16x16xbf16>
    %cst_241 = arith.constant dense<0.000000e+00> : vector<16x128xf32>
    %258 = tpu.matmul %257, %238, %cst_241 {dimension_numbers = #tpu.dot_dimension_numbers<[1], [0], [0], [1], [0, 0, 1, 1], [], []>} : vector<16x16xbf16>, vector<16x128xbf16>, vector<16x128xf32> -> vector<16x128xf32>
    %259 = arith.truncf %258 : vector<16x128xf32> to vector<16x128xbf16>
    %c2_242 = arith.constant 2 : index
    %c0_243 = arith.constant 0 : index
    %c0_244 = arith.constant 0 : index
    %260 = vector.load %arg12[%c2_242, %c0_243, %c0_244] : memref<9x128x128xbf16, #tpu.memory_space<vmem>>, vector<1x128x128xbf16>
    %261 = vector.shape_cast %260 : vector<1x128x128xbf16> to vector<128x128xbf16>
    %cst_245 = arith.constant dense<0.000000e+00> : vector<16x128xf32>
    %262 = tpu.matmul %259, %261, %cst_245 {dimension_numbers = #tpu.dot_dimension_numbers<[1], [0], [0], [1], [0, 0, 1, 1], [], []>} : vector<16x128xbf16>, vector<128x128xbf16>, vector<16x128xf32> -> vector<16x128xf32>
    %263 = arith.addf %255, %262 : vector<16x128xf32>
    %c3_246 = arith.constant 3 : index
    %c0_247 = arith.constant 0 : index
    %c0_248 = arith.constant 0 : index
    %264 = vector.load %arg5[%c3_246, %c0_247, %c0_248] : memref<9x16x16xbf16, #tpu.memory_space<vmem>>, vector<1x16x16xbf16>
    %265 = vector.shape_cast %264 : vector<1x16x16xbf16> to vector<16x16xbf16>
    %cst_249 = arith.constant dense<0.000000e+00> : vector<16x128xf32>
    %266 = tpu.matmul %265, %238, %cst_249 {dimension_numbers = #tpu.dot_dimension_numbers<[1], [0], [0], [1], [0, 0, 1, 1], [], []>} : vector<16x16xbf16>, vector<16x128xbf16>, vector<16x128xf32> -> vector<16x128xf32>
    %267 = arith.truncf %266 : vector<16x128xf32> to vector<16x128xbf16>
    %c3_250 = arith.constant 3 : index
    %c0_251 = arith.constant 0 : index
    %c0_252 = arith.constant 0 : index
    %268 = vector.load %arg12[%c3_250, %c0_251, %c0_252] : memref<9x128x128xbf16, #tpu.memory_space<vmem>>, vector<1x128x128xbf16>
    %269 = vector.shape_cast %268 : vector<1x128x128xbf16> to vector<128x128xbf16>
    %cst_253 = arith.constant dense<0.000000e+00> : vector<16x128xf32>
    %270 = tpu.matmul %267, %269, %cst_253 {dimension_numbers = #tpu.dot_dimension_numbers<[1], [0], [0], [1], [0, 0, 1, 1], [], []>} : vector<16x128xbf16>, vector<128x128xbf16>, vector<16x128xf32> -> vector<16x128xf32>
    %271 = arith.addf %263, %270 : vector<16x128xf32>
    %c4_254 = arith.constant 4 : index
    %c0_255 = arith.constant 0 : index
    %c0_256 = arith.constant 0 : index
    %272 = vector.load %arg5[%c4_254, %c0_255, %c0_256] : memref<9x16x16xbf16, #tpu.memory_space<vmem>>, vector<1x16x16xbf16>
    %273 = vector.shape_cast %272 : vector<1x16x16xbf16> to vector<16x16xbf16>
    %cst_257 = arith.constant dense<0.000000e+00> : vector<16x128xf32>
    %274 = tpu.matmul %273, %238, %cst_257 {dimension_numbers = #tpu.dot_dimension_numbers<[1], [0], [0], [1], [0, 0, 1, 1], [], []>} : vector<16x16xbf16>, vector<16x128xbf16>, vector<16x128xf32> -> vector<16x128xf32>
    %275 = arith.truncf %274 : vector<16x128xf32> to vector<16x128xbf16>
    %c4_258 = arith.constant 4 : index
    %c0_259 = arith.constant 0 : index
    %c0_260 = arith.constant 0 : index
    %276 = vector.load %arg12[%c4_258, %c0_259, %c0_260] : memref<9x128x128xbf16, #tpu.memory_space<vmem>>, vector<1x128x128xbf16>
    %277 = vector.shape_cast %276 : vector<1x128x128xbf16> to vector<128x128xbf16>
    %cst_261 = arith.constant dense<0.000000e+00> : vector<16x128xf32>
    %278 = tpu.matmul %275, %277, %cst_261 {dimension_numbers = #tpu.dot_dimension_numbers<[1], [0], [0], [1], [0, 0, 1, 1], [], []>} : vector<16x128xbf16>, vector<128x128xbf16>, vector<16x128xf32> -> vector<16x128xf32>
    %279 = arith.addf %271, %278 : vector<16x128xf32>
    %c5_262 = arith.constant 5 : index
    %c0_263 = arith.constant 0 : index
    %c0_264 = arith.constant 0 : index
    %280 = vector.load %arg5[%c5_262, %c0_263, %c0_264] : memref<9x16x16xbf16, #tpu.memory_space<vmem>>, vector<1x16x16xbf16>
    %281 = vector.shape_cast %280 : vector<1x16x16xbf16> to vector<16x16xbf16>
    %cst_265 = arith.constant dense<0.000000e+00> : vector<16x128xf32>
    %282 = tpu.matmul %281, %238, %cst_265 {dimension_numbers = #tpu.dot_dimension_numbers<[1], [0], [0], [1], [0, 0, 1, 1], [], []>} : vector<16x16xbf16>, vector<16x128xbf16>, vector<16x128xf32> -> vector<16x128xf32>
    %283 = arith.truncf %282 : vector<16x128xf32> to vector<16x128xbf16>
    %c5_266 = arith.constant 5 : index
    %c0_267 = arith.constant 0 : index
    %c0_268 = arith.constant 0 : index
    %284 = vector.load %arg12[%c5_266, %c0_267, %c0_268] : memref<9x128x128xbf16, #tpu.memory_space<vmem>>, vector<1x128x128xbf16>
    %285 = vector.shape_cast %284 : vector<1x128x128xbf16> to vector<128x128xbf16>
    %cst_269 = arith.constant dense<0.000000e+00> : vector<16x128xf32>
    %286 = tpu.matmul %283, %285, %cst_269 {dimension_numbers = #tpu.dot_dimension_numbers<[1], [0], [0], [1], [0, 0, 1, 1], [], []>} : vector<16x128xbf16>, vector<128x128xbf16>, vector<16x128xf32> -> vector<16x128xf32>
    %287 = arith.addf %279, %286 : vector<16x128xf32>
    %c6_270 = arith.constant 6 : index
    %c0_271 = arith.constant 0 : index
    %c0_272 = arith.constant 0 : index
    %288 = vector.load %arg5[%c6_270, %c0_271, %c0_272] : memref<9x16x16xbf16, #tpu.memory_space<vmem>>, vector<1x16x16xbf16>
    %289 = vector.shape_cast %288 : vector<1x16x16xbf16> to vector<16x16xbf16>
    %cst_273 = arith.constant dense<0.000000e+00> : vector<16x128xf32>
    %290 = tpu.matmul %289, %238, %cst_273 {dimension_numbers = #tpu.dot_dimension_numbers<[1], [0], [0], [1], [0, 0, 1, 1], [], []>} : vector<16x16xbf16>, vector<16x128xbf16>, vector<16x128xf32> -> vector<16x128xf32>
    %291 = arith.truncf %290 : vector<16x128xf32> to vector<16x128xbf16>
    %c6_274 = arith.constant 6 : index
    %c0_275 = arith.constant 0 : index
    %c0_276 = arith.constant 0 : index
    %292 = vector.load %arg12[%c6_274, %c0_275, %c0_276] : memref<9x128x128xbf16, #tpu.memory_space<vmem>>, vector<1x128x128xbf16>
    %293 = vector.shape_cast %292 : vector<1x128x128xbf16> to vector<128x128xbf16>
    %cst_277 = arith.constant dense<0.000000e+00> : vector<16x128xf32>
    %294 = tpu.matmul %291, %293, %cst_277 {dimension_numbers = #tpu.dot_dimension_numbers<[1], [0], [0], [1], [0, 0, 1, 1], [], []>} : vector<16x128xbf16>, vector<128x128xbf16>, vector<16x128xf32> -> vector<16x128xf32>
    %295 = arith.addf %287, %294 : vector<16x128xf32>
    %c7_278 = arith.constant 7 : index
    %c0_279 = arith.constant 0 : index
    %c0_280 = arith.constant 0 : index
    %296 = vector.load %arg5[%c7_278, %c0_279, %c0_280] : memref<9x16x16xbf16, #tpu.memory_space<vmem>>, vector<1x16x16xbf16>
    %297 = vector.shape_cast %296 : vector<1x16x16xbf16> to vector<16x16xbf16>
    %cst_281 = arith.constant dense<0.000000e+00> : vector<16x128xf32>
    %298 = tpu.matmul %297, %238, %cst_281 {dimension_numbers = #tpu.dot_dimension_numbers<[1], [0], [0], [1], [0, 0, 1, 1], [], []>} : vector<16x16xbf16>, vector<16x128xbf16>, vector<16x128xf32> -> vector<16x128xf32>
    %299 = arith.truncf %298 : vector<16x128xf32> to vector<16x128xbf16>
    %c7_282 = arith.constant 7 : index
    %c0_283 = arith.constant 0 : index
    %c0_284 = arith.constant 0 : index
    %300 = vector.load %arg12[%c7_282, %c0_283, %c0_284] : memref<9x128x128xbf16, #tpu.memory_space<vmem>>, vector<1x128x128xbf16>
    %301 = vector.shape_cast %300 : vector<1x128x128xbf16> to vector<128x128xbf16>
    %cst_285 = arith.constant dense<0.000000e+00> : vector<16x128xf32>
    %302 = tpu.matmul %299, %301, %cst_285 {dimension_numbers = #tpu.dot_dimension_numbers<[1], [0], [0], [1], [0, 0, 1, 1], [], []>} : vector<16x128xbf16>, vector<128x128xbf16>, vector<16x128xf32> -> vector<16x128xf32>
    %303 = arith.addf %295, %302 : vector<16x128xf32>
    %c8_286 = arith.constant 8 : index
    %c0_287 = arith.constant 0 : index
    %c0_288 = arith.constant 0 : index
    %304 = vector.load %arg5[%c8_286, %c0_287, %c0_288] : memref<9x16x16xbf16, #tpu.memory_space<vmem>>, vector<1x16x16xbf16>
    %305 = vector.shape_cast %304 : vector<1x16x16xbf16> to vector<16x16xbf16>
    %cst_289 = arith.constant dense<0.000000e+00> : vector<16x128xf32>
    %306 = tpu.matmul %305, %238, %cst_289 {dimension_numbers = #tpu.dot_dimension_numbers<[1], [0], [0], [1], [0, 0, 1, 1], [], []>} : vector<16x16xbf16>, vector<16x128xbf16>, vector<16x128xf32> -> vector<16x128xf32>
    %307 = arith.truncf %306 : vector<16x128xf32> to vector<16x128xbf16>
    %c8_290 = arith.constant 8 : index
    %c0_291 = arith.constant 0 : index
    %c0_292 = arith.constant 0 : index
    %308 = vector.load %arg12[%c8_290, %c0_291, %c0_292] : memref<9x128x128xbf16, #tpu.memory_space<vmem>>, vector<1x128x128xbf16>
    %309 = vector.shape_cast %308 : vector<1x128x128xbf16> to vector<128x128xbf16>
    %cst_293 = arith.constant dense<0.000000e+00> : vector<16x128xf32>
    %310 = tpu.matmul %307, %309, %cst_293 {dimension_numbers = #tpu.dot_dimension_numbers<[1], [0], [0], [1], [0, 0, 1, 1], [], []>} : vector<16x128xbf16>, vector<128x128xbf16>, vector<16x128xf32> -> vector<16x128xf32>
    %311 = arith.addf %303, %310 : vector<16x128xf32>
    %c0_294 = arith.constant 0 : index
    %c0_295 = arith.constant 0 : index
    %312 = vector.load %arg13[%c0_294, %c0_295] : memref<1x128xf32, #tpu.memory_space<vmem>>, vector<1x128xf32>
    %313 = vector.broadcast %312 : vector<1x128xf32> to vector<16x128xf32>
    %314 = arith.addf %311, %313 : vector<16x128xf32>
    %cst_296 = arith.constant 0.000000e+00 : f32
    %315 = vector.broadcast %cst_296 : f32 to vector<16x128xf32>
    %316 = arith.maximumf %314, %315 : vector<16x128xf32>
    %317 = arith.truncf %316 : vector<16x128xf32> to vector<16x128xbf16>
    %c0_297 = arith.constant 0 : index
    %c0_298 = arith.constant 0 : index
    %318 = vector.load %arg14[%c0_297, %c0_298] : memref<128x128xbf16, #tpu.memory_space<vmem>>, vector<128x128xbf16>
    %cst_299 = arith.constant dense<0.000000e+00> : vector<16x128xf32>
    %319 = tpu.matmul %317, %318, %cst_299 {dimension_numbers = #tpu.dot_dimension_numbers<[1], [0], [0], [1], [0, 0, 1, 1], [], []>} : vector<16x128xbf16>, vector<128x128xbf16>, vector<16x128xf32> -> vector<16x128xf32>
    %c0_300 = arith.constant 0 : index
    %c0_301 = arith.constant 0 : index
    %320 = vector.load %arg15[%c0_300, %c0_301] : memref<1x128xf32, #tpu.memory_space<vmem>>, vector<1x128xf32>
    %321 = vector.broadcast %320 : vector<1x128xf32> to vector<16x128xf32>
    %322 = arith.addf %319, %321 : vector<16x128xf32>
    %323 = vector.shape_cast %322 : vector<16x128xf32> to vector<1x16x128xf32>
    %cst_302 = arith.constant dense<0.000000e+00> : vector<1xf32>
    %324 = vector.multi_reduction <add>, %323, %cst_302 [1, 2] : vector<1x16x128xf32> to vector<1xf32>
    %325 = vector.shape_cast %324 : vector<1xf32> to vector<1x1x1xf32>
    %326 = vector.extract %325[0, 0, 0] : f32 from vector<1x1x1xf32>
    %cst_303 = arith.constant 6.51041686E-4 : f32
    %327 = arith.mulf %326, %cst_303 : f32
    %328 = arith.mulf %322, %322 : vector<16x128xf32>
    %329 = vector.shape_cast %328 : vector<16x128xf32> to vector<1x16x128xf32>
    %cst_304 = arith.constant dense<0.000000e+00> : vector<1xf32>
    %330 = vector.multi_reduction <add>, %329, %cst_304 [1, 2] : vector<1x16x128xf32> to vector<1xf32>
    %331 = vector.shape_cast %330 : vector<1xf32> to vector<1x1x1xf32>
    %332 = vector.extract %331[0, 0, 0] : f32 from vector<1x1x1xf32>
    %cst_305 = arith.constant 6.51041686E-4 : f32
    %333 = arith.mulf %332, %cst_305 : f32
    %334 = arith.mulf %327, %327 : f32
    %335 = arith.subf %333, %334 : f32
    %cst_306 = arith.constant 9.99999974E-6 : f32
    %336 = arith.addf %335, %cst_306 : f32
    %337 = math.rsqrt %336 : f32
    %338 = vector.broadcast %327 : f32 to vector<16x128xf32>
    %339 = arith.subf %322, %338 : vector<16x128xf32>
    %340 = vector.broadcast %337 : f32 to vector<16x128xf32>
    %341 = arith.mulf %339, %340 : vector<16x128xf32>
    %c0_307 = arith.constant 0 : index
    %c0_308 = arith.constant 0 : index
    %342 = vector.load %arg16[%c0_307, %c0_308] : memref<1x128xf32, #tpu.memory_space<vmem>>, vector<1x128xf32>
    %343 = vector.broadcast %342 : vector<1x128xf32> to vector<16x128xf32>
    %344 = arith.mulf %341, %343 : vector<16x128xf32>
    %c0_309 = arith.constant 0 : index
    %c0_310 = arith.constant 0 : index
    %345 = vector.load %arg17[%c0_309, %c0_310] : memref<1x128xf32, #tpu.memory_space<vmem>>, vector<1x128xf32>
    %346 = vector.broadcast %345 : vector<1x128xf32> to vector<16x128xf32>
    %347 = arith.addf %344, %346 : vector<16x128xf32>
    %c0_311 = arith.constant 0 : index
    %c0_312 = arith.constant 0 : index
    %c0_313 = arith.constant 0 : index
    %348 = vector.load %arg18[%c0_311, %c0_312, %c0_313] : memref<1x16x128xf32, #tpu.memory_space<vmem>>, vector<1x16x128xf32>
    %349 = vector.shape_cast %348 : vector<1x16x128xf32> to vector<16x128xf32>
    %350 = vector.shape_cast %347 : vector<16x128xf32> to vector<1x16x128xf32>
    tpu.vector_store %arg18[%c0_311, %c0_312, %c0_313], %350 {strides = array<i32>} : memref<1x16x128xf32, #tpu.memory_space<vmem>>, vector<1x16x128xf32>,
    return
  }
  func.func @transform_0(%arg0: i32) -> (i32, i32, i32) {
    %c0_i32 = arith.constant 0 : i32
    %c0_i32_0 = arith.constant 0 : i32
    %c0_i32_1 = arith.constant 0 : i32
    return %arg0, %c0_i32, %c0_i32_0 : i32, i32, i32
  }
  func.func @transform_1(%arg0: i32) -> (i32, i32, i32) {
    %c0_i32 = arith.constant 0 : i32
    %c0_i32_0 = arith.constant 0 : i32
    %c0_i32_1 = arith.constant 0 : i32
    %c0_i32_2 = arith.constant 0 : i32
    return %c0_i32, %c0_i32_0, %c0_i32_1 : i32, i32, i32
  }
  func.func @transform_2(%arg0: i32) -> (i32, i32, i32) {
    %c0_i32 = arith.constant 0 : i32
    %c0_i32_0 = arith.constant 0 : i32
    %c0_i32_1 = arith.constant 0 : i32
    %c0_i32_2 = arith.constant 0 : i32
    return %c0_i32, %c0_i32_0, %c0_i32_1 : i32, i32, i32
  }
  func.func @transform_3(%arg0: i32) -> (i32, i32, i32) {
    %c0_i32 = arith.constant 0 : i32
    %c0_i32_0 = arith.constant 0 : i32
    %c0_i32_1 = arith.constant 0 : i32
    %c0_i32_2 = arith.constant 0 : i32
    return %c0_i32, %c0_i32_0, %c0_i32_1 : i32, i32, i32
  }
  func.func @transform_4(%arg0: i32) -> (i32, i32, i32) {
    %c0_i32 = arith.constant 0 : i32
    %c0_i32_0 = arith.constant 0 : i32
    %c0_i32_1 = arith.constant 0 : i32
    %c0_i32_2 = arith.constant 0 : i32
    return %c0_i32, %c0_i32_0, %c0_i32_1 : i32, i32, i32
  }
  func.func @transform_5(%arg0: i32) -> (i32, i32, i32) {
    %c0_i32 = arith.constant 0 : i32
    %c0_i32_0 = arith.constant 0 : i32
    %c0_i32_1 = arith.constant 0 : i32
    %c0_i32_2 = arith.constant 0 : i32
    return %c0_i32, %c0_i32_0, %c0_i32_1 : i32, i32, i32
  }
  func.func @transform_6(%arg0: i32) -> (i32, i32) {
    %c0_i32 = arith.constant 0 : i32
    %c0_i32_0 = arith.constant 0 : i32
    %c0_i32_1 = arith.constant 0 : i32
    return %c0_i32, %c0_i32_0 : i32, i32
  }
  func.func @transform_7(%arg0: i32) -> (i32, i32, i32) {
    %c0_i32 = arith.constant 0 : i32
    %c0_i32_0 = arith.constant 0 : i32
    %c0_i32_1 = arith.constant 0 : i32
    %c0_i32_2 = arith.constant 0 : i32
    return %c0_i32, %c0_i32_0, %c0_i32_1 : i32, i32, i32
  }
  func.func @transform_8(%arg0: i32) -> (i32, i32) {
    %c0_i32 = arith.constant 0 : i32
    %c0_i32_0 = arith.constant 0 : i32
    %c0_i32_1 = arith.constant 0 : i32
    return %c0_i32, %c0_i32_0 : i32, i32
  }
  func.func @transform_9(%arg0: i32) -> (i32, i32, i32) {
    %c0_i32 = arith.constant 0 : i32
    %c0_i32_0 = arith.constant 0 : i32
    %c0_i32_1 = arith.constant 0 : i32
    %c0_i32_2 = arith.constant 0 : i32
    return %c0_i32, %c0_i32_0, %c0_i32_1 : i32, i32, i32
  }
  func.func @transform_10(%arg0: i32) -> (i32, i32) {
    %c0_i32 = arith.constant 0 : i32
    %c0_i32_0 = arith.constant 0 : i32
    %c0_i32_1 = arith.constant 0 : i32
    return %c0_i32, %c0_i32_0 : i32, i32
  }
  func.func @transform_11(%arg0: i32) -> (i32, i32, i32) {
    %c0_i32 = arith.constant 0 : i32
    %c0_i32_0 = arith.constant 0 : i32
    %c0_i32_1 = arith.constant 0 : i32
    %c0_i32_2 = arith.constant 0 : i32
    return %c0_i32, %c0_i32_0, %c0_i32_1 : i32, i32, i32
  }
  func.func @transform_12(%arg0: i32) -> (i32, i32) {
    %c0_i32 = arith.constant 0 : i32
    %c0_i32_0 = arith.constant 0 : i32
    %c0_i32_1 = arith.constant 0 : i32
    return %c0_i32, %c0_i32_0 : i32, i32
  }
  func.func @transform_13(%arg0: i32) -> (i32, i32) {
    %c0_i32 = arith.constant 0 : i32
    %c0_i32_0 = arith.constant 0 : i32
    %c0_i32_1 = arith.constant 0 : i32
    return %c0_i32, %c0_i32_0 : i32, i32
  }
  func.func @transform_14(%arg0: i32) -> (i32, i32) {
    %c0_i32 = arith.constant 0 : i32
    %c0_i32_0 = arith.constant 0 : i32
    %c0_i32_1 = arith.constant 0 : i32
    return %c0_i32, %c0_i32_0 : i32, i32
  }
  func.func @transform_15(%arg0: i32) -> (i32, i32) {
    %c0_i32 = arith.constant 0 : i32
    %c0_i32_0 = arith.constant 0 : i32
    %c0_i32_1 = arith.constant 0 : i32
    return %c0_i32, %c0_i32_0 : i32, i32
  }
  func.func @transform_16(%arg0: i32) -> (i32, i32) {
    %c0_i32 = arith.constant 0 : i32
    %c0_i32_0 = arith.constant 0 : i32
    %c0_i32_1 = arith.constant 0 : i32
    return %c0_i32, %c0_i32_0 : i32, i32
  }
  func.func @transform_17(%arg0: i32) -> (i32, i32, i32) {
    %c0_i32 = arith.constant 0 : i32
    %c0_i32_0 = arith.constant 0 : i32
    %c0_i32_1 = arith.constant 0 : i32
    return %arg0, %c0_i32, %c0_i32_0 : i32, i32, i32
  }
}

</mosaic_0001>

<bundles_post_ra>
// kernel: patch_embedding.1
= control target key start
LH: loop header
LB: loop body
LE: loop exit
PB: predicated region body
PF: predicated region fallthrough
CT: control target
= control target key end

     0   :  { %s13327_s0 = inlined_call_operand.vmem [shape: bf16[2,256,128], index: 0, kind: input, shape index: {}]   ;;  %s13328_s1 = inlined_call_operand.vmem [shape: bf16[9,64,256], index: 1, kind: input, shape index: {}]   ;;  %s13329_s2 = inlined_call_operand.vmem [shape: bf16[9,16,64], index: 2, kind: input, shape index: {}]   ;;  %s13330_s3 = inlined_call_operand.vmem [shape: bf16[9,16,16], index: 3, kind: input, shape index: {}, may-alias: {3,4}]   ;;  %s13331_s4 = inlined_call_operand.vmem [shape: bf16[9,16,16], index: 4, kind: input, shape index: {}, may-alias: {3,4}]   ;;  %s13332_s5 = inlined_call_operand.vmem [shape: bf16[9,128,128], index: 5, kind: input, shape index: {}]   ;;  %s13333_s6 = inlined_call_operand.vmem [shape: f32[1,128], index: 6, kind: input, shape index: {}]   ;;  %s13334_s7 = inlined_call_operand.vmem [shape: bf16[9,128,128], index: 7, kind: input, shape index: {}]   ;;  %s13335_s8 = inlined_call_operand.vmem [shape: f32[1,128], index: 8, kind: input, shape index: {}]   ;;  %s13336_s9 = inlined_call_operand.vmem [shape: bf16[9,128,128], index: 9, kind: input, shape index: {}]   ;;  %s13337_s10 = inlined_call_operand.vmem [shape: f32[1,128], index: 10, kind: input, shape index: {}]   ;;  %s13338_s11 = inlined_call_operand.vmem [shape: bf16[9,128,128], index: 11, kind: input, shape index: {}]   ;;  %s13339_s12 = inlined_call_operand.vmem [shape: f32[1,128], index: 12, kind: input, shape index: {}]   ;;  %s13340_s13 = inlined_call_operand.vmem [shape: bf16[128,128], index: 13, kind: input, shape index: {}]   ;;  %s13341_s14 = inlined_call_operand.vmem [shape: f32[1,128], index: 14, kind: input, shape index: {}]   ;;  %s13342_s15 = inlined_call_operand.vmem [shape: f32[1,128], index: 15, kind: input, shape index: {}]   ;;  %s13343_s16 = inlined_call_operand.vmem [shape: f32[1,128], index: 16, kind: input, shape index: {}]   ;;  %s13344_s17 = inlined_call_operand.hbm [shape: f32[2,16,128], index: 17, kind: output, shape index: {}]  }
   0x1   :  { %13350 = sst [smem:[#allocation9_spill]] %s13327_s0 }
   0x2   :  { %13351 = sst [smem:[#allocation10_spill]] %s13328_s1 }
   0x3   :  { %13352 = sst [smem:[#allocation11_spill]] %s13329_s2 }
   0x4   :  { %13353 = sst [smem:[#allocation12_spill]] %s13330_s3 }
   0x5   :  { %13354 = sst [smem:[#allocation13_spill]] %s13331_s4 }
   0x6   :  { %22 = vsyncpa [#allocation3], 0 }
   0x7   :  { %24 = vsyncpa [#allocation3 + $0x1], 0  ;;  %s11213_s24 = smov 0   ;;  %s11215_s25 = smov 0  }
   0x8   :  { %s11217_s26 = smov 0   ;;  %s11219_s27 = smov 0  }
   0x9 LB: > { %13355 = sst [smem:[#allocation5_spill]] %s11112_s26  ;;  %s11234_s28 = sadd.s32 4294967295, %s11116_s27   ;;  %s11116_s27 = sphi %s11219_s27, %s13367_s27   ;;  %s11112_s26 = sphi %s11217_s26, %s13369_s26   ;;  %s11108_s25 = sphi %s11215_s25, %s13371_s25   ;;  %s11104_s24 = sphi %s11213_s24, %s13370_s24  }
   0xa   : > { %s7600_s29 = sadd.s32 4294967294, %s11116_s27   ;;  %s11238_s0 = sadd.s32 1, %s11116_s27  }
   0xb   : > { %13356 = sst [smem:[#allocation6_spill]] %s11238_s0  ;;  %s399_s30 = sadd.s32 1, %s11112_s26 }
   0xc   : > { %s396_s18 = ssub.s32 %s11116_s27, %s11238_s0  ;;  %p409_p0 = scmp.ne.s32.totalorder %s11112_s26, %s11108_s25 }
   0xd   : > { %p397_p1 = scmp.eq.s32.totalorder %s396_s18, 0  ;;  %p410_p2 = scmp.eq.s32.totalorder %s11234_s28, 1 }
   0xe   : > { %p415_p3 = scmp.ne.s32.totalorder %s11108_s25, %s11104_s24  ;;  %p416_p4 = scmp.eq.s32.totalorder %s7600_s29, 1 }
   0xf   : > { %s11249_s19 = scalar_select %p397_p1, %s11112_s26, %s399_s30  }
  0x10   : > { %p11251_p5 = por %p410_p2, %p409_p0  ;;  %p11255_p6 = por %p416_p4, %p415_p3 }
  0x11   : > { %13357 = sst [smem:[#allocation7_spill]] %s11249_s19  ;;  %p7603_p7 = scmp.ge.s32.totalorder %s11116_s27, 1 }
  0x12   : > { %s13359_s20 = scalar_select %p11255_p6, 1, 0 }
  0x13   : > { %p490_p8 = scmp.lt.s32.totalorder %s11116_s27, 3 }
  0x14   : > { %13360 = sst [smem:[#allocation8_spill]] %s13359_s20 }
  0x15   : > { %p491_p9 = pnand %p7603_p7, %p490_p8 }
  0x16   : > { %p542_p10 = scmp.lt.s32.totalorder (!%p491_p9), %s11234_s28, 1  ;;  %s13361_s23 = sld [smem:[#allocation10_spill]] (!%p491_p9)  ;;  %v10683_v37 = vld [vmem:[%s13332_s5 + $0x40] sm:$0xff] (!%p491_p9)   ;;  %v10684_v40 = vld [vmem:[%s13332_s5 + $0x48] sm:$0xff] (!%p491_p9)   ;;  %v10688_v41 = vld [vmem:[%s13332_s5 + $0x50] sm:$0xff] (!%p491_p9)   ;;  %vm11119_vm0 = vmmov (!%p491_p9), 0  }
  0x17   : > { %494 = sbr.rel (%p491_p9) target bundleno = 5374 (0x14fe), region = 88  ;;  %s13362_s26 = sld [smem:[#allocation9_spill]] (!%p491_p9)  ;;  %v10689_v44 = vld [vmem:[%s13332_s5 + $0x58] sm:$0xff] (!%p491_p9)   ;;  %v10693_v45 = vld [vmem:[%s13332_s5 + $0x60] sm:$0xff] (!%p491_p9)   ;;  %v10694_v54 = vld [vmem:[%s13332_s5 + $0x68] sm:$0xff] (!%p491_p9)   ;;  %vm2996_vm1 = vcmask (!%p491_p9), 523264  }
  0x18   : > { %v10698_v55 = vld [vmem:[%s13332_s5 + $0x70] sm:$0xff] (!%p491_p9)   ;;  %v10699_v58 = vld [vmem:[%s13332_s5 + $0x78] sm:$0xff] (!%p491_p9)   ;;  %v11529_v59 = vld [vmem:[%s13332_s5] sm:$0xff] (!%p491_p9)   ;;  %s13363_s2 = sld [smem:[#allocation11_spill]] (!%p491_p9)  ;;  %s13364_s3 = sld [smem:[#allocation12_spill]] (!%p491_p9)  ;;  %vm4452_vm2 = vcmask (!%p491_p9), 130048  }
  0x19   : > { %s13365_s4 = sld [smem:[#allocation13_spill]] (!%p491_p9)  ;;  %s539_s20 = sand.u32 (!%p491_p9), 1, %s11108_s25  }
  0x1a   : > { %s7604_s19 = sshll.u32 (!%p491_p9), %s539_s20, 4 }
  0x1c   : > { %v10607_v0 = vld [vmem:[%s13361_s23 + $0x44] ss:$8 sps:$4 sm:$0xff] (!%p491_p9)   ;;  %v10605_v18 = vld [vmem:[%s13361_s23 + $0x40] ss:$8 sps:$4 sm:$0xff] (!%p491_p9)   ;;  %v10608_v20 = vld [vmem:[%s13361_s23 + $0x54] ss:$8 sps:$4 sm:$0xff] (!%p491_p9)  }
  0x1d   : > { %890 = vmatprep.mubr.bf16.mxu1 (!%p491_p9), %v10607_v0  ;;  %v10618_v12 = vld [vmem:[%s13361_s23 + $0x4] ss:$8 sps:$4 sm:$0xff] (!%p491_p9)   ;;  %v10616_v19 = vld [vmem:[%s13361_s23] ss:$8 sps:$4 sm:$0xff] (!%p491_p9)   ;;  %v10620_v21 = vld [vmem:[%s13361_s23 + $0x14] ss:$8 sps:$4 sm:$0xff] (!%p491_p9)  }
  0x1e   : > { %s543_s29 = scalar_select %p542_p10, %s11234_s28, 1  ;;  %756 = vmatprep.mubr.bf16.mxu0 %v10618_v12  ;;  %v10610_v22 = vld [vmem:[%s13361_s23 + $0x50] ss:$8 sps:$4 sm:$0xff]   ;;  %v10611_v24 = vld [vmem:[%s13361_s23 + $0x64] ss:$8 sps:$4 sm:$0xff]  }
  0x1f   : > { %v10622_v23 = vld [vmem:[%s13361_s23 + $0x10] ss:$8 sps:$4 sm:$0xff]   ;;  %v10623_v25 = vld [vmem:[%s13361_s23 + $0x24] ss:$8 sps:$4 sm:$0xff]   ;;  %v10613_v26 = vld [vmem:[%s13361_s23 + $0x60] ss:$8 sps:$4 sm:$0xff]  }
  0x20   : > { %s8681_s30 = sshll.u32 %s543_s29, 7  ;;  %v10625_v27 = vld [vmem:[%s13361_s23 + $0x20] ss:$8 sps:$4 sm:$0xff]   ;;  %v10614_v28 = vld [vmem:[%s13361_s23 + $0x74] ss:$8 sps:$4 sm:$0xff]  }
  0x21   : > { %s11269_s0 = scalar_lea.vmem %s13362_s26, %s8681_s30  ;;  %v10629_v29 = vld [vmem:[%s13361_s23 + $0x34] ss:$8 sps:$4 sm:$0xff]   ;;  %v10619_v30 = vld [vmem:[%s13361_s23 + $0x70] ss:$8 sps:$4 sm:$0xff]   ;;  %v10628_v32 = vld [vmem:[%s13361_s23 + $0x84] ss:$8 sps:$4 sm:$0xff]  }
  0x22   : > { %v11272_v1 = vld [vmem:[%s11269_s0 + $0x40] sm:$0xff]   ;;  %v11279_v3 = vld [vmem:[%s11269_s0 + $0x48] sm:$0xff]   ;;  %v11289_v5 = vld [vmem:[%s11269_s0 + $0x50] sm:$0xff]  }
  0x23   : > { %v11275_v2 = vld [vmem:[%s11269_s0] sm:$0xff]   ;;  %8723 = vmatprep.subr.bf16.mxu1 %v11272_v1  ;;  %8683 = vmatprep.subr.bf16.mxu0 %v11272_v1  ;;  %v11284_v4 = vld [vmem:[%s11269_s0 + $0x8] sm:$0xff]   ;;  %v11294_v6 = vld [vmem:[%s11269_s0 + $0x10] sm:$0xff]  }
  0x24   : > { %8724 = vmatpush3.bf16.msra.mxu1 %v11275_v2  ;;  %8684 = vmatpush3.bf16.msra.mxu0 %v11275_v2  ;;  %v11299_v7 = vld [vmem:[%s11269_s0 + $0x58] sm:$0xff]   ;;  %v11309_v9 = vld [vmem:[%s11269_s0 + $0x60] sm:$0xff]   ;;  %v11319_v11 = vld [vmem:[%s11269_s0 + $0x68] sm:$0xff]  }
  0x25   : > { %8725 = vmatprep.subr.bf16.mxu1 %v11279_v3  ;;  %8685 = vmatprep.subr.bf16.mxu0 %v11279_v3  ;;  %v11304_v8 = vld [vmem:[%s11269_s0 + $0x18] sm:$0xff]   ;;  %v11314_v10 = vld [vmem:[%s11269_s0 + $0x20] sm:$0xff]   ;;  %v11327_v13 = vld [vmem:[%s11269_s0 + $0x28] sm:$0xff]  }
  0x26   : > { %v11332_v14 = vld [vmem:[%s11269_s0 + $0x70] sm:$0xff]   ;;  %v11342_v16 = vld [vmem:[%s11269_s0 + $0x78] sm:$0xff]   ;;  %v10626_v33 = vld [vmem:[%s13361_s23 + $0x80] ss:$8 sps:$4 sm:$0xff]  }
  0x27   : > { %v11337_v15 = vld [vmem:[%s11269_s0 + $0x30] sm:$0xff]   ;;  %v11347_v17 = vld [vmem:[%s11269_s0 + $0x38] sm:$0xff]   ;;  %v10635_v36 = vld [vmem:[%s13361_s23 + $0xa4] ss:$8 sps:$4 sm:$0xff]  }
  0x28   : > { %8726 = vmatpush3.bf16.msra.mxu1 %v11284_v4  ;;  %8686 = vmatpush3.bf16.msra.mxu0 %v11284_v4  ;;  %v10631_v31 = vld [vmem:[%s13361_s23 + $0x30] ss:$8 sps:$4 sm:$0xff]   ;;  %v10632_v34 = vld [vmem:[%s13361_s23 + $0x94] ss:$8 sps:$4 sm:$0xff]   ;;  %v10637_v38 = vld [vmem:[%s13361_s23 + $0xa0] ss:$8 sps:$4 sm:$0xff]  }
  0x29   : > { %8727 = vmatprep.subr.bf16.mxu1 %v11289_v5  ;;  %8687 = vmatprep.subr.bf16.mxu0 %v11289_v5  ;;  %v10634_v35 = vld [vmem:[%s13361_s23 + $0x90] ss:$8 sps:$4 sm:$0xff]   ;;  %v10638_v39 = vld [vmem:[%s13361_s23 + $0xb4] ss:$8 sps:$4 sm:$0xff]   ;;  %v10643_v43 = vld [vmem:[%s13361_s23 + $0xc4] ss:$8 sps:$4 sm:$0xff]  }
  0x2a   : > { %v10640_v42 = vld [vmem:[%s13361_s23 + $0xb0] ss:$8 sps:$4 sm:$0xff]   ;;  %v10641_v46 = vld [vmem:[%s13361_s23 + $0xc0] ss:$8 sps:$4 sm:$0xff]   ;;  %v10644_v47 = vld [vmem:[%s13361_s23 + $0xd4] ss:$8 sps:$4 sm:$0xff]  }
  0x2b   : > { %v10646_v48 = vld [vmem:[%s13361_s23 + $0xd0] ss:$8 sps:$4 sm:$0xff]   ;;  %v10647_v49 = vld [vmem:[%s13361_s23 + $0xe4] ss:$8 sps:$4 sm:$0xff]   ;;  %v10649_v50 = vld [vmem:[%s13361_s23 + $0xe0] ss:$8 sps:$4 sm:$0xff]  }
  0x2c   : > { %8728 = vmatpush3.bf16.msra.mxu1 %v11294_v6  ;;  %8688 = vmatpush3.bf16.msra.mxu0 %v11294_v6  ;;  %v10650_v51 = vld [vmem:[%s13361_s23 + $0xf4] ss:$8 sps:$4 sm:$0xff]   ;;  %v10652_v52 = vld [vmem:[%s13361_s23 + $0xf0] ss:$8 sps:$4 sm:$0xff]   ;;  %v10655_v53 = vld [vmem:[%s13361_s23 + $0x104] ss:$8 sps:$4 sm:$0xff]  }
  0x2d   : > { %8729 = vmatprep.subr.bf16.mxu1 %v11299_v7  ;;  %8689 = vmatprep.subr.bf16.mxu0 %v11299_v7  ;;  %v10653_v56 = vld [vmem:[%s13361_s23 + $0x100] ss:$8 sps:$4 sm:$0xff]   ;;  %v10656_v57 = vld [vmem:[%s13361_s23 + $0x114] ss:$8 sps:$4 sm:$0xff]   ;;  %v10658_v60 = vld [vmem:[%s13361_s23 + $0x110] ss:$8 sps:$4 sm:$0xff]  }
  0x2e   : > { %v10659_v61 = vld [vmem:[%s13361_s23 + $0x124] ss:$8 sps:$4 sm:$0xff]   ;;  %v10661_v62 = vld [vmem:[%s13361_s23 + $0x120] ss:$8 sps:$4 sm:$0xff]   ;;  %v10662_v63 = vld [vmem:[%s13361_s23 + $0x134] ss:$8 sps:$4 sm:$0xff]  }
  0x2f   : > { %v10664_v0 = vld [vmem:[%s13361_s23 + $0x130] ss:$8 sps:$4 sm:$0xff]  }
  0x30   : > { %8730 = vmatpush3.bf16.msra.mxu1 %v11304_v8  ;;  %8690 = vmatpush3.bf16.msra.mxu0 %v11304_v8  ;;  %v11601_v12 = vld [vmem:[%s11269_s0 + $0x10] sm:$0xff]  }
  0x31   : > { %8731 = vmatprep.subr.bf16.mxu1 %v11309_v9  ;;  %8691 = vmatprep.subr.bf16.mxu0 %v11309_v9 }
  0x34   : > { %8732 = vmatpush3.bf16.msra.mxu1 %v11314_v10  ;;  %8692 = vmatpush3.bf16.msra.mxu0 %v11314_v10 }
  0x35   : > { %8733 = vmatprep.subr.bf16.mxu1 %v11319_v11  ;;  %8693 = vmatprep.subr.bf16.mxu0 %v11319_v11 }
  0x38   : > { %8734 = vmatpush3.bf16.msra.mxu1 %v11327_v13  ;;  %8694 = vmatpush3.bf16.msra.mxu0 %v11327_v13 }
  0x39   : > { %8735 = vmatprep.subr.bf16.mxu1 %v11332_v14  ;;  %8695 = vmatprep.subr.bf16.mxu0 %v11332_v14 }
  0x3c   : > { %8736 = vmatpush3.bf16.msra.mxu1 %v11337_v15  ;;  %8696 = vmatpush3.bf16.msra.mxu0 %v11337_v15 }
  0x3d   : > { %8737 = vmatprep.subr.bf16.mxu1 %v11342_v16  ;;  %8697 = vmatprep.subr.bf16.mxu0 %v11342_v16 }
  0x40   : > { %8738 = vmatpush3.bf16.msra.mxu1 %v11347_v17  ;;  %8698 = vmatpush3.bf16.msra.mxu0 %v11347_v17 }
  0x41   : > { %8787 = vmatprep.subr.bf16.mxu1 %v11272_v1  ;;  %9484 = vmatprep.subr.bf16.mxu0 %v10683_v37 }
  0x43   : > { %891 = vmatmul.mubr.bf16.vlgmr.msra.gmra.mrb[0].mxu1 %v10605_v18  ;;  %757 = vmatmul.mubr.bf16.vlgmr.msra.gmra.mrb[0].mxu0 %v10616_v19  ;;  %v11623_v18 = vld [vmem:[%s11269_s0 + $0x20] sm:$0xff]   ;;  %v11627_v19 = vld [vmem:[%s11269_s0 + $0x68] sm:$0xff]  }
  0x44   : > { %898 = vmatprep.mubr.bf16.mxu1 %v10608_v20  ;;  %8788 = vmatpush3.bf16.msra.mxu1 %v11275_v2  ;;  %v10676_v20 = vld [vmem:[%s13361_s23 + $0x170] ss:$8 sps:$4 sm:$0xff]  }
  0x45   : > { %8789 = vmatprep.subr.bf16.mxu1 %v11279_v3  ;;  %764 = vmatprep.mubr.bf16.mxu0 %v10620_v21  ;;  %v10679_v21 = vld [vmem:[%s13361_s23 + $0x184] ss:$8 sps:$4 sm:$0xff]  }
  0x46   : > { %9485 = vmatpush3.bf16.msra.mxu0 %v10683_v37  ;;  %v10705_v37 = vld [vmem:[%s13361_s23 + $0x1e4] ss:$8 sps:$4 sm:$0xff]  }
  0x47   : > { %9486 = vmatprep.subr.bf16.mxu0 %v10684_v40 }
  0x48   : > { %8790 = vmatpush3.bf16.msra.mxu1 %v11284_v4 }
  0x49   : > { %8791 = vmatprep.subr.bf16.mxu1 %v11289_v5 }
  0x4a   : > { %9487 = vmatpush3.bf16.msra.mxu0 %v10684_v40  ;;  %v10712_v40 = vld [vmem:[%s13361_s23 + $0x1f0] ss:$8 sps:$4 sm:$0xff]  }
  0x4b   : > { %899 = vmatmul.mubr.bf16.gmra.mrb[4].mxu1 %v10610_v22  ;;  %765 = vmatmul.mubr.bf16.gmra.mrb[4].mxu0 %v10622_v23  ;;  %v11637_v22 = vld [vmem:[%s11269_s0 + $0x28] sm:$0xff]   ;;  %v11641_v23 = vld [vmem:[%s11269_s0 + $0x70] sm:$0xff]  }
  0x4c   : > { %906 = vmatprep.mubr.bf16.mxu1 %v10611_v24  ;;  %8792 = vmatpush3.bf16.msra.mxu1 %v11294_v6  ;;  %v11645_v24 = vld [vmem:[%s11269_s0 + $0x30] sm:$0xff]  }
  0x4d   : > { %8793 = vmatprep.subr.bf16.mxu1 %v11299_v7  ;;  %772 = vmatprep.mubr.bf16.mxu0 %v10623_v25  ;;  %v11649_v25 = vld [vmem:[%s11269_s0 + $0x78] sm:$0xff]  }
  0x4e   : > { %9488 = vmatprep.subr.bf16.mxu0 %v10688_v41 }
  0x4f   : > { %9489 = vmatpush3.bf16.msra.mxu0 %v10688_v41 }
  0x50   : > { %8794 = vmatpush3.bf16.msra.mxu1 %v11304_v8  ;;  %9490 = vmatprep.subr.bf16.mxu0 %v10689_v44 }
  0x51   : > { %8795 = vmatprep.subr.bf16.mxu1 %v11309_v9 }
  0x53   : > { %907 = vmatmul.mubr.bf16.gmra.mrb[8].mxu1 %v10613_v26  ;;  %773 = vmatmul.mubr.bf16.gmra.mrb[8].mxu0 %v10625_v27  ;;  %v10677_v26 = vld [vmem:[%s13361_s23 + $0x180] ss:$8 sps:$4 sm:$0xff]   ;;  %v10680_v27 = vld [vmem:[%s13361_s23 + $0x194] ss:$8 sps:$4 sm:$0xff]  }
  0x54   : > { %914 = vmatprep.mubr.bf16.mxu1 %v10614_v28  ;;  %8796 = vmatpush3.bf16.msra.mxu1 %v11314_v10  ;;  %v10682_v28 = vld [vmem:[%s13361_s23 + $0x190] ss:$8 sps:$4 sm:$0xff]  }
  0x55   : > { %8797 = vmatprep.subr.bf16.mxu1 %v11319_v11  ;;  %780 = vmatprep.mubr.bf16.mxu0 %v10629_v29  ;;  %v10685_v29 = vld [vmem:[%s13361_s23 + $0x1a4] ss:$8 sps:$4 sm:$0xff]  }
  0x56   : > { %9491 = vmatpush3.bf16.msra.mxu0 %v10689_v44 }
  0x57   : > { %9492 = vmatprep.subr.bf16.mxu0 %v10693_v45 }
  0x58   : > { %8798 = vmatpush3.bf16.msra.mxu1 %v11327_v13 }
  0x59   : > { %8799 = vmatprep.subr.bf16.mxu1 %v11332_v14 }
  0x5a   : > { %9493 = vmatpush3.bf16.msra.mxu0 %v10693_v45  ;;  %v10717_v45 = vld [vmem:[%s13361_s23 + $0x204] ss:$8 sps:$4 sm:$0xff]  }
  0x5b   : > { %915 = vmatmul.mubr.bf16.gmra.mrb[12].mxu1 %v10619_v30  ;;  %781 = vmatmul.mubr.bf16.gmra.mrb[12].mxu0 %v10631_v31  ;;  %v10687_v30 = vld [vmem:[%s13361_s23 + $0x1a0] ss:$8 sps:$4 sm:$0xff]   ;;  %v10690_v31 = vld [vmem:[%s13361_s23 + $0x1b4] ss:$8 sps:$4 sm:$0xff]  }
  0x5c   : > { %8800 = vmatpush3.bf16.msra.mxu1 %v11337_v15  ;;  %1251 = vmatprep.mubr.bf16.mxu1 %v10628_v32  ;;  %v10692_v32 = vld [vmem:[%s13361_s23 + $0x1b0] ss:$8 sps:$4 sm:$0xff]  }
  0x5d   : > { %8801 = vmatprep.subr.bf16.mxu1 %v11342_v16  ;;  %9494 = vmatprep.subr.bf16.mxu0 %v10694_v54 }
  0x5e   : > { %9495 = vmatpush3.bf16.msra.mxu0 %v10694_v54 }
  0x5f   : > { %9496 = vmatprep.subr.bf16.mxu0 %v10698_v55 }
  0x60   : > { %8802 = vmatpush3.bf16.msra.mxu1 %v11347_v17 }
  0x61   : > { %8839 = vmatprep.subr.bf16.mxu1 %v11272_v1 }
  0x62   : > { %9497 = vmatpush3.bf16.msra.mxu0 %v10698_v55 }
  0x63   : > { %1252 = vmatmul.mubr.bf16.vlgmr.msra.gmra.mrb[16].mxu1 %v10626_v33  ;;  %9498 = vmatprep.subr.bf16.mxu0 %v10699_v58  ;;  %v10697_v33 = vld [vmem:[%s13361_s23 + $0x1c4] ss:$8 sps:$4 sm:$0xff]  }
  0x64   : > { %8840 = vmatpush3.bf16.msra.mxu1 %v11275_v2  ;;  %1259 = vmatprep.mubr.bf16.mxu1 %v10632_v34  ;;  %v10695_v34 = vld [vmem:[%s13361_s23 + $0x1c0] ss:$8 sps:$4 sm:$0xff]  }
  0x65   : > { %8841 = vmatprep.subr.bf16.mxu1 %v11279_v3 }
  0x66   : > { %9499 = vmatpush3.bf16.msra.mxu0 %v10699_v58 }
  0x67   : > { %9508 = vmatprep.subr.bf16.mxu0 %v11529_v59 }
  0x68   : > { %8842 = vmatpush3.bf16.msra.mxu1 %v11284_v4 }
  0x69   : > { %8843 = vmatprep.subr.bf16.mxu1 %v11289_v5 }
  0x6b   : > { %1260 = vmatmul.mubr.bf16.gmra.mrb[20].mxu1 %v10634_v35  ;;  %v10700_v35 = vld [vmem:[%s13361_s23 + $0x1d4] ss:$8 sps:$4 sm:$0xff]  }
  0x6c   : > { %8844 = vmatpush3.bf16.msra.mxu1 %v11294_v6  ;;  %1267 = vmatprep.mubr.bf16.mxu1 %v10635_v36  ;;  %v10702_v36 = vld [vmem:[%s13361_s23 + $0x1d0] ss:$8 sps:$4 sm:$0xff]  }
  0x6d   : > { %8845 = vmatprep.subr.bf16.mxu1 %v11299_v7 }
  0x70   : > { %8846 = vmatpush3.bf16.msra.mxu1 %v11304_v8 }
  0x71   : > { %8847 = vmatprep.subr.bf16.mxu1 %v11309_v9 }
  0x73   : > { %1268 = vmatmul.mubr.bf16.gmra.mrb[24].mxu1 %v10637_v38  ;;  %v10707_v38 = vld [vmem:[%s13361_s23 + $0x1e0] ss:$8 sps:$4 sm:$0xff]  }
  0x74   : > { %8848 = vmatpush3.bf16.msra.mxu1 %v11314_v10  ;;  %1275 = vmatprep.mubr.bf16.mxu1 %v10638_v39  ;;  %v10710_v39 = vld [vmem:[%s13361_s23 + $0x1f4] ss:$8 sps:$4 sm:$0xff]  }
  0x75   : > { %8849 = vmatprep.subr.bf16.mxu1 %v11319_v11 }
  0x78   : > { %8850 = vmatpush3.bf16.msra.mxu1 %v11327_v13 }
  0x79   : > { %8851 = vmatprep.subr.bf16.mxu1 %v11332_v14 }
  0x7b   : > { %1276 = vmatmul.mubr.bf16.gmra.mrb[28].mxu1 %v10640_v42 }
  0x7c   : > { %8852 = vmatpush3.bf16.msra.mxu1 %v11337_v15  ;;  %1507 = vmatprep.mubr.bf16.mxu1 %v10643_v43 }
  0x7d   : > { %8853 = vmatprep.subr.bf16.mxu1 %v11342_v16 }
  0x80   : > { %8854 = vmatpush3.bf16.msra.mxu1 %v11347_v17 }
  0x81   : > { %8891 = vmatprep.subr.bf16.mxu1 %v11272_v1 }
  0x83   : > { %1508 = vmatmul.mubr.bf16.vlgmr.msra.gmra.mrb[32].mxu1 %v10641_v46 }
  0x84   : > { %8892 = vmatpush3.bf16.msra.mxu1 %v11275_v2  ;;  %1515 = vmatprep.mubr.bf16.mxu1 %v10644_v47 }
  0x85   : > { %8893 = vmatprep.subr.bf16.mxu1 %v11279_v3 }
  0x88   : > { %8894 = vmatpush3.bf16.msra.mxu1 %v11284_v4 }
  0x89   : > { %8895 = vmatprep.subr.bf16.mxu1 %v11289_v5 }
  0x8b   : > { %1516 = vmatmul.mubr.bf16.gmra.mrb[36].mxu1 %v10646_v48 }
  0x8c   : > { %8896 = vmatpush3.bf16.msra.mxu1 %v11294_v6  ;;  %1523 = vmatprep.mubr.bf16.mxu1 %v10647_v49 }
  0x8d   : > { %8897 = vmatprep.subr.bf16.mxu1 %v11299_v7 }
  0x90   : > { %8898 = vmatpush3.bf16.msra.mxu1 %v11304_v8 }
  0x91   : > { %8899 = vmatprep.subr.bf16.mxu1 %v11309_v9 }
  0x93   : > { %1524 = vmatmul.mubr.bf16.gmra.mrb[40].mxu1 %v10649_v50 }
  0x94   : > { %8900 = vmatpush3.bf16.msra.mxu1 %v11314_v10  ;;  %1531 = vmatprep.mubr.bf16.mxu1 %v10650_v51 }
  0x95   : > { %8901 = vmatprep.subr.bf16.mxu1 %v11319_v11 }
  0x98   : > { %8902 = vmatpush3.bf16.msra.mxu1 %v11327_v13 }
  0x99   : > { %8903 = vmatprep.subr.bf16.mxu1 %v11332_v14 }
  0x9b   : > { %1532 = vmatmul.mubr.bf16.gmra.mrb[44].mxu1 %v10652_v52 }
  0x9c   : > { %8904 = vmatpush3.bf16.msra.mxu1 %v11337_v15  ;;  %1763 = vmatprep.mubr.bf16.mxu1 %v10655_v53 }
  0x9d   : > { %8905 = vmatprep.subr.bf16.mxu1 %v11342_v16 }
  0xa0   : > { %8906 = vmatpush3.bf16.msra.mxu1 %v11347_v17  ;;  %v11619_v17 = vld [vmem:[%s11269_s0 + $0x60] sm:$0xff]  }
  0xa1   : > { %8943 = vmatprep.subr.bf16.mxu1 %v11272_v1  ;;  %v10667_v1 = vld [vmem:[%s13361_s23 + $0x144] ss:$8 sps:$4 sm:$0xff]  }
  0xa3   : > { %1764 = vmatmul.mubr.bf16.vlgmr.msra.gmra.mrb[48].mxu1 %v10653_v56  ;;  %v10715_v56 = vld [vmem:[%s13361_s23 + $0x200] ss:$8 sps:$4 sm:$0xff]  }
  0xa4   : > { %8944 = vmatpush3.bf16.msra.mxu1 %v11275_v2  ;;  %1771 = vmatprep.mubr.bf16.mxu1 %v10656_v57  ;;  %v10665_v2 = vld [vmem:[%s13361_s23 + $0x140] ss:$8 sps:$4 sm:$0xff]  }
  0xa5   : > { %8945 = vmatprep.subr.bf16.mxu1 %v11279_v3  ;;  %v10668_v3 = vld [vmem:[%s13361_s23 + $0x154] ss:$8 sps:$4 sm:$0xff]  }
  0xa8   : > { %8946 = vmatpush3.bf16.msra.mxu1 %v11284_v4  ;;  %v11571_v4 = vld [vmem:[%s11269_s0 + $0x38] sm:$0xff]  }
  0xa9   : > { %8947 = vmatprep.subr.bf16.mxu1 %v11289_v5  ;;  %v11575_v5 = vld [vmem:[%s11269_s0 + $0x40] sm:$0xff]  }
  0xab   : > { %1772 = vmatmul.mubr.bf16.gmra.mrb[52].mxu1 %v10658_v60 }
  0xac   : > { %8948 = vmatpush3.bf16.msra.mxu1 %v11294_v6  ;;  %1779 = vmatprep.mubr.bf16.mxu1 %v10659_v61  ;;  %v11579_v6 = vld [vmem:[%s11269_s0] sm:$0xff]  }
  0xad   : > { %8949 = vmatprep.subr.bf16.mxu1 %v11299_v7  ;;  %v11583_v7 = vld [vmem:[%s11269_s0 + $0x48] sm:$0xff]  }
  0xb0   : > { %8950 = vmatpush3.bf16.msra.mxu1 %v11304_v8  ;;  %v10670_v8 = vld [vmem:[%s13361_s23 + $0x150] ss:$8 sps:$4 sm:$0xff]  }
  0xb1   : > { %8951 = vmatprep.subr.bf16.mxu1 %v11309_v9  ;;  %v10671_v9 = vld [vmem:[%s13361_s23 + $0x164] ss:$8 sps:$4 sm:$0xff]  }
  0xb3   : > { %1780 = vmatmul.mubr.bf16.gmra.mrb[56].mxu1 %v10661_v62  ;;  %v10720_v62 = vld [vmem:[%s13361_s23 + $0x214] ss:$8 sps:$4 sm:$0xff]  }
  0xb4   : > { %8952 = vmatpush3.bf16.msra.mxu1 %v11314_v10  ;;  %1787 = vmatprep.mubr.bf16.mxu1 %v10662_v63  ;;  %v11593_v10 = vld [vmem:[%s11269_s0 + $0x8] sm:$0xff]  }
  0xb5   : > { %8953 = vmatprep.subr.bf16.mxu1 %v11319_v11  ;;  %v11597_v11 = vld [vmem:[%s11269_s0 + $0x50] sm:$0xff]  }
  0xb8   : > { %8954 = vmatpush3.bf16.msra.mxu1 %v11327_v13  ;;  %v11605_v13 = vld [vmem:[%s11269_s0 + $0x58] sm:$0xff]  }
  0xb9   : > { %8955 = vmatprep.subr.bf16.mxu1 %v11332_v14  ;;  %v10673_v14 = vld [vmem:[%s13361_s23 + $0x160] ss:$8 sps:$4 sm:$0xff]  }
  0xbb   : > { %1788 = vmatmul.mubr.bf16.gmra.mrb[60].mxu1 %v10664_v0 }
  0xbc   : > { %8956 = vmatpush3.bf16.msra.mxu1 %v11337_v15  ;;  %2019 = vmatprep.mubr.bf16.mxu1 %v10667_v1  ;;  %v10674_v15 = vld [vmem:[%s13361_s23 + $0x174] ss:$8 sps:$4 sm:$0xff]  }
  0xbd   : > { %8957 = vmatprep.subr.bf16.mxu1 %v11342_v16  ;;  %v11615_v16 = vld [vmem:[%s11269_s0 + $0x18] sm:$0xff]  }
  0xc0   : > { %8958 = vmatpush3.bf16.msra.mxu1 %v11571_v4 }
  0xc1   : > { %8995 = vmatprep.subr.bf16.mxu1 %v11575_v5 }
  0xc3   : > { %2020 = vmatmul.mubr.bf16.vlgmr.msra.gmra.mrb[64].mxu1 %v10665_v2 }
  0xc4   : > { %8996 = vmatpush3.bf16.msra.mxu1 %v11579_v6  ;;  %2027 = vmatprep.mubr.bf16.mxu1 %v10668_v3 }
  0xc5   : > { %8997 = vmatprep.subr.bf16.mxu1 %v11583_v7 }
  0xc8   : > { %8998 = vmatpush3.bf16.msra.mxu1 %v11593_v10 }
  0xc9   : > { %8999 = vmatprep.subr.bf16.mxu1 %v11597_v11 }
  0xcb   : > { %2028 = vmatmul.mubr.bf16.gmra.mrb[68].mxu1 %v10670_v8 }
  0xcc   : > { %9000 = vmatpush3.bf16.msra.mxu1 %v11601_v12  ;;  %2035 = vmatprep.mubr.bf16.mxu1 %v10671_v9  ;;  %v10704_v9 = vld [vmem:[%s13332_s5 + $0x8] sm:$0xff]  }
  0xcd   : > { %9001 = vmatprep.subr.bf16.mxu1 %v11605_v13 }
  0xd0   : > { %9002 = vmatpush3.bf16.msra.mxu1 %v11615_v16 }
  0xd1   : > { %9003 = vmatprep.subr.bf16.mxu1 %v11619_v17 }
  0xd3   : > { %2036 = vmatmul.mubr.bf16.gmra.mrb[72].mxu1 %v10673_v14 }
  0xd4   : > { %9004 = vmatpush3.bf16.msra.mxu1 %v11623_v18  ;;  %2043 = vmatprep.mubr.bf16.mxu1 %v10674_v15  ;;  %v10725_v15 = vld [vmem:[%s13361_s23 + $0x224] ss:$8 sps:$4 sm:$0xff]  }
  0xd5   : > { %9005 = vmatprep.subr.bf16.mxu1 %v11627_v19 }
  0xd8   : > { %9006 = vmatpush3.bf16.msra.mxu1 %v11637_v22 }
  0xd9   : > { %9007 = vmatprep.subr.bf16.mxu1 %v11641_v23 }
  0xdb   : > { %2044 = vmatmul.mubr.bf16.gmra.mrb[76].mxu1 %v10676_v20 }
  0xdc   : > { %9008 = vmatpush3.bf16.msra.mxu1 %v11645_v24  ;;  %2275 = vmatprep.mubr.bf16.mxu1 %v10679_v21 }
  0xdd   : > { %9009 = vmatprep.subr.bf16.mxu1 %v11649_v25 }
  0xe0   : > { %9010 = vmatpush3.bf16.msra.mxu1 %v11571_v4 }
  0xe1   : > { %9047 = vmatprep.subr.bf16.mxu1 %v11575_v5 }
  0xe3   : > { %2276 = vmatmul.mubr.bf16.vlgmr.msra.gmra.mrb[80].mxu1 %v10677_v26 }
  0xe4   : > { %9048 = vmatpush3.bf16.msra.mxu1 %v11579_v6  ;;  %2283 = vmatprep.mubr.bf16.mxu1 %v10680_v27  ;;  %v10727_v27 = vld [vmem:[%s13361_s23 + $0x220] ss:$8 sps:$4 sm:$0xff]  }
  0xe5   : > { %9049 = vmatprep.subr.bf16.mxu1 %v11583_v7 }
  0xe8   : > { %9050 = vmatpush3.bf16.msra.mxu1 %v11593_v10 }
  0xe9   : > { %9051 = vmatprep.subr.bf16.mxu1 %v11597_v11 }
  0xeb   : > { %2284 = vmatmul.mubr.bf16.gmra.mrb[84].mxu1 %v10682_v28 }
  0xec   : > { %9052 = vmatpush3.bf16.msra.mxu1 %v11601_v12  ;;  %2291 = vmatprep.mubr.bf16.mxu1 %v10685_v29  ;;  %v10713_v29 = vld [vmem:[%s13332_s5 + $0x20] sm:$0xff]  }
  0xed   : > { %9053 = vmatprep.subr.bf16.mxu1 %v11605_v13 }
  0xf0   : > { %9054 = vmatpush3.bf16.msra.mxu1 %v11615_v16 }
  0xf1   : > { %9055 = vmatprep.subr.bf16.mxu1 %v11619_v17 }
  0xf3   : > { %2292 = vmatmul.mubr.bf16.gmra.mrb[88].mxu1 %v10687_v30 }
  0xf4   : > { %9056 = vmatpush3.bf16.msra.mxu1 %v11623_v18  ;;  %2299 = vmatprep.mubr.bf16.mxu1 %v10690_v31 }
  0xf5   : > { %9057 = vmatprep.subr.bf16.mxu1 %v11627_v19 }
  0xf8   : > { %9058 = vmatpush3.bf16.msra.mxu1 %v11637_v22 }
  0xf9   : > { %9059 = vmatprep.subr.bf16.mxu1 %v11641_v23 }
  0xfb   : > { %2300 = vmatmul.mubr.bf16.gmra.mrb[92].mxu1 %v10692_v32  ;;  %v10730_v32 = vld [vmem:[%s13361_s23 + $0x234] ss:$8 sps:$4 sm:$0xff]  }
  0xfc   : > { %9060 = vmatpush3.bf16.msra.mxu1 %v11645_v24  ;;  %2531 = vmatprep.mubr.bf16.mxu1 %v10697_v33 }
  0xfd   : > { %9061 = vmatprep.subr.bf16.mxu1 %v11649_v25 }
 0x100   : > { %9062 = vmatpush3.bf16.msra.mxu1 %v11571_v4 }
 0x101   : > { %9099 = vmatprep.subr.bf16.mxu1 %v11575_v5 }
 0x103   : > { %2532 = vmatmul.mubr.bf16.vlgmr.msra.gmra.mrb[96].mxu1 %v10695_v34 }
 0x104   : > { %9100 = vmatpush3.bf16.msra.mxu1 %v11579_v6  ;;  %2539 = vmatprep.mubr.bf16.mxu1 %v10700_v35 }
 0x105   : > { %9101 = vmatprep.subr.bf16.mxu1 %v11583_v7 }
 0x108   : > { %9102 = vmatpush3.bf16.msra.mxu1 %v11593_v10 }
 0x109   : > { %9103 = vmatprep.subr.bf16.mxu1 %v11597_v11 }
 0x10b   : > { %2540 = vmatmul.mubr.bf16.gmra.mrb[100].mxu1 %v10702_v36 }
 0x10c   : > { %9104 = vmatpush3.bf16.msra.mxu1 %v11601_v12  ;;  %2547 = vmatprep.mubr.bf16.mxu1 %v10705_v37  ;;  %v10708_v12 = vld [vmem:[%s13332_s5 + $0x10] sm:$0xff]  }
 0x10d   : > { %9105 = vmatprep.subr.bf16.mxu1 %v11605_v13 }
 0x110   : > { %9106 = vmatpush3.bf16.msra.mxu1 %v11615_v16 }
 0x111   : > { %9107 = vmatprep.subr.bf16.mxu1 %v11619_v17 }
 0x113   : > { %2548 = vmatmul.mubr.bf16.gmra.mrb[104].mxu1 %v10707_v38 }
 0x114   : > { %9108 = vmatpush3.bf16.msra.mxu1 %v11623_v18  ;;  %2555 = vmatprep.mubr.bf16.mxu1 %v10710_v39 }
 0x115   : > { %9109 = vmatprep.subr.bf16.mxu1 %v11627_v19 }
 0x116   : > { %v8739_v41 = vpop.f32.mrb[0].mxu1  ;;  %v8699_v42 = vpop.f32.mrb[0].mxu0 }
 0x117   : > { %v8740_v43 = vpop.f32.mrb[1].mxu1  ;;  %v8700_v44 = vpop.f32.mrb[1].mxu0 }
 0x118   : > { %v8741_v46 = vadd.f32 %v8740_v43, %v8739_v41  ;;  %v8742_v47 = vpop.f32.mrb[2].mxu1  ;;  %9110 = vmatpush3.bf16.msra.mxu1 %v11637_v22  ;;  %v11729_v48 = vadd.f32 %v8700_v44, %v8699_v42  ;;  %v8702_v49 = vpop.f32.mrb[2].mxu0  ;;  %v10714_v42 = vld [vmem:[%s13332_s5 + $0x28] sm:$0xff]  }
 0x119   : > { %v8743_v50 = vpop.f32.mrb[3].mxu1  ;;  %9111 = vmatprep.subr.bf16.mxu1 %v11641_v23  ;;  %v8703_v51 = vpop.f32.mrb[3].mxu0 }
 0x11a   : > { %v8744_v52 = vadd.f32 %v8743_v50, %v8742_v47  ;;  %v11732_v53 = vadd.f32 %v8703_v51, %v8702_v49  ;;  %v10718_v49 = vld [vmem:[%s13332_s5 + $0x30] sm:$0xff]  }
 0x11b   : > { %2556 = vmatmul.mubr.bf16.gmra.mrb[108].mxu1 %v10712_v40 }
 0x11c   : > { %v923_v54 = vpack.c.bf16 %v8744_v52, %v8741_v46  ;;  %9112 = vmatpush3.bf16.msra.mxu1 %v11645_v24  ;;  %v789_v55 = vpack.c.bf16 %v11732_v53, %v11729_v48  ;;  %2787 = vmatprep.mubr.bf16.mxu1 %v10717_v45  ;;  %v10732_v45 = vld [vmem:[%s13361_s23 + $0x230] ss:$8 sps:$4 sm:$0xff]  }
 0x11d   : > { %9113 = vmatprep.subr.bf16.mxu1 %v11649_v25 }
 0x11e   : > { %v8745_v57 = vpop.f32.mrb[4].mxu1  ;;  %9500 = vmatprep.mubr.bf16.mxu0 %v923_v54  ;;  %v8705_v58 = vpop.f32.mrb[4].mxu0 }
 0x11f   : > { %v8746_v60 = vpop.f32.mrb[5].mxu1  ;;  %v8706_v61 = vpop.f32.mrb[5].mxu0 }
 0x120   : > { %v8747_v63 = vadd.f32 %v8746_v60, %v8745_v57  ;;  %v8748_v0 = vpop.f32.mrb[6].mxu1  ;;  %9114 = vmatpush3.bf16.msra.mxu1 %v11571_v4  ;;  %v11745_v1 = vadd.f32 %v8706_v61, %v8705_v58  ;;  %v8708_v2 = vpop.f32.mrb[6].mxu0  ;;  %v10722_v4 = vld [vmem:[%s13361_s23 + $0x210] ss:$8 sps:$4 sm:$0xff]  }
 0x121   : > { %v8749_v3 = vpop.f32.mrb[7].mxu1  ;;  %v8709_v5 = vpop.f32.mrb[7].mxu0 }
 0x122   : > { %v8750_v6 = vadd.f32 %v8749_v3, %v8748_v0  ;;  %v11747_v7 = vadd.f32 %v8709_v5, %v8708_v2  ;;  %v10728_v5 = vld [vmem:[%s13332_s5 + $0x90] sm:$0xff]  }
 0x123   : > { %2788 = vmatmul.mubr.bf16.vlgmr.msra.gmra.mrb[112].mxu1 %v10715_v56  ;;  %v10719_v56 = vld [vmem:[%s13332_s5 + $0x38] sm:$0xff]  }
 0x124   : > { %v924_v8 = vpack.c.bf16 %v8750_v6, %v8747_v63  ;;  %v790_v10 = vpack.c.bf16 %v11747_v7, %v11745_v1  ;;  %2795 = vmatprep.mubr.bf16.mxu1 %v10720_v62  ;;  %v10724_v63 = vld [vmem:[%s13332_s5 + $0x88] sm:$0xff]   ;;  %v10729_v1 = vld [vmem:[%s13332_s5 + $0x98] sm:$0xff]  }
 0x126   : > { %9501 = vmatmul.mubr.bf16.vlgmr.msra.gmra.mrb[16].mxu0 %v924_v8  ;;  %v8751_v11 = vpop.f32.mrb[8].mxu1  ;;  %v8711_v13 = vpop.f32.mrb[8].mxu0 }
 0x127   : > { %9509 = vmatpush3.bf16.msra.mxu0 %v11529_v59  ;;  %v8752_v14 = vpop.f32.mrb[9].mxu1  ;;  %v8712_v16 = vpop.f32.mrb[9].mxu0  ;;  %v10709_v59 = vld [vmem:[%s13332_s5 + $0x18] sm:$0xff]  }
 0x128   : > { %9510 = vmatprep.subr.bf16.mxu0 %v10704_v9  ;;  %v8753_v17 = vadd.f32 %v8752_v14, %v8751_v11  ;;  %v8754_v18 = vpop.f32.mrb[10].mxu1  ;;  %v11764_v19 = vadd.f32 %v8712_v16, %v8711_v13  ;;  %v8714_v20 = vpop.f32.mrb[10].mxu0 }
 0x129   : > { %v8755_v21 = vpop.f32.mrb[11].mxu1  ;;  %v8715_v22 = vpop.f32.mrb[11].mxu0 }
 0x12a   : > { %v8756_v23 = vadd.f32 %v8755_v21, %v8754_v18  ;;  %v11766_v24 = vadd.f32 %v8715_v22, %v8714_v20  ;;  %v10735_v21 = vld [vmem:[%s13332_s5 + $0xb0] sm:$0xff]  }
 0x12b   : > { %9511 = vmatpush3.bf16.msra.mxu0 %v10704_v9  ;;  %2796 = vmatmul.mubr.bf16.gmra.mrb[116].mxu1 %v10722_v4 }
 0x12c   : > { %9512 = vmatprep.subr.bf16.mxu0 %v10708_v12  ;;  %v925_v25 = vpack.c.bf16 %v8756_v23, %v8753_v17  ;;  %2803 = vmatprep.mubr.bf16.mxu1 %v10725_v15  ;;  %v791_v26 = vpack.c.bf16 %v11766_v24, %v11764_v19  ;;  %v10734_v17 = vld [vmem:[%s13332_s5 + $0xa8] sm:$0xff]  }
 0x12e   : > { %v8757_v28 = vpop.f32.mrb[12].mxu1  ;;  %9504 = vmatprep.mubr.bf16.mxu0 %v925_v25  ;;  %v8717_v30 = vpop.f32.mrb[12].mxu0  ;;  %v10736_v25 = vld [vmem:[%s13332_s5 + $0xb8] sm:$0xff]  }
 0x12f   : > { %9513 = vmatpush3.bf16.msra.mxu0 %v10708_v12  ;;  %v8758_v31 = vpop.f32.mrb[13].mxu1  ;;  %v8718_v33 = vpop.f32.mrb[13].mxu0  ;;  %v10733_v12 = vld [vmem:[%s13332_s5 + $0xa0] sm:$0xff]  }
 0x130   : > { %9514 = vmatprep.subr.bf16.mxu0 %v10709_v59  ;;  %v8759_v34 = vadd.f32 %v8758_v31, %v8757_v28  ;;  %v8760_v35 = vpop.f32.mrb[14].mxu1  ;;  %v8719_v36 = vadd.f32 %v8718_v33, %v8717_v30  ;;  %v8720_v37 = vpop.f32.mrb[14].mxu0 }
 0x131   : > { %v8761_v38 = vpop.f32.mrb[15].mxu1  ;;  %v8721_v39 = vpop.f32.mrb[15].mxu0 }
 0x132   : > { %v8762_v40 = vadd.f32 %v8761_v38, %v8760_v35  ;;  %v8722_v41 = vadd.f32 %v8721_v39, %v8720_v37  ;;  %v10739_v38 = vld [vmem:[%s13332_s5 + $0xd0] sm:$0xff]  }
 0x133   : > { %9515 = vmatpush3.bf16.msra.mxu0 %v10709_v59  ;;  %2804 = vmatmul.mubr.bf16.gmra.mrb[120].mxu1 %v10727_v27 }
 0x134   : > { %v926_v43 = vpack.c.bf16 %v8762_v40, %v8759_v34  ;;  %9516 = vmatprep.subr.bf16.mxu0 %v10713_v29  ;;  %2811 = vmatprep.mubr.bf16.mxu1 %v10730_v32  ;;  %v792_v44 = vpack.c.bf16 %v8722_v41, %v8719_v36  ;;  %v10738_v34 = vld [vmem:[%s13332_s5 + $0xc8] sm:$0xff]  }
 0x136   : > { %9505 = vmatmul.mubr.bf16.gmra.mrb[20].mxu0 %v926_v43  ;;  %v8803_v46 = vpop.f32.mrb[16].mxu1  ;;  %v10740_v43 = vld [vmem:[%s13332_s5 + $0xd8] sm:$0xff]  }
 0x137   : > { %9517 = vmatpush3.bf16.msra.mxu0 %v10713_v29  ;;  %9524 = vmatprep.mubr.bf16.mxu0 %v789_v55  ;;  %v8804_v47 = vpop.f32.mrb[17].mxu1  ;;  %v10723_v55 = vld [vmem:[%s13332_s5 + $0x80] sm:$0xff]  }
 0x138   : > { %9518 = vmatprep.subr.bf16.mxu0 %v10714_v42  ;;  %v8805_v50 = vadd.f32 %v8804_v47, %v8803_v46  ;;  %v8806_v51 = vpop.f32.mrb[18].mxu1  ;;  %v10737_v29 = vld [vmem:[%s13332_s5 + $0xc0] sm:$0xff]  }
 0x139   : > { %v8807_v52 = vpop.f32.mrb[19].mxu1  ;;  %v10741_v47 = vld [vmem:[%s13332_s5 + $0xe0] sm:$0xff]  }
 0x13a   : > { %v8808_v54 = vadd.f32 %v8807_v52, %v8806_v51 }
 0x13b   : > { %9519 = vmatpush3.bf16.msra.mxu0 %v10714_v42  ;;  %2812 = vmatmul.mubr.bf16.gmra.mrb[124].mxu1 %v10732_v45 }
 0x13c   : > { %9520 = vmatprep.subr.bf16.mxu0 %v10718_v49  ;;  %v1284_v57 = vpack.c.bf16 %v8808_v54, %v8805_v50  ;;  %v10742_v54 = vld [vmem:[%s13332_s5 + $0xe8] sm:$0xff]  }
 0x13e   : > { %v8809_v48 = vpop.f32.mrb[20].mxu1 }
 0x13f   : > { %9521 = vmatpush3.bf16.msra.mxu0 %v10718_v49  ;;  %v8810_v53 = vpop.f32.mrb[21].mxu1 }
 0x140   : > { %9522 = vmatprep.subr.bf16.mxu0 %v10719_v56  ;;  %v11800_v58 = vadd.f32 %v8810_v53, %v8809_v48  ;;  %v8812_v60 = vpop.f32.mrb[22].mxu1  ;;  %v10743_v53 = vld [vmem:[%s13332_s5 + $0xf0] sm:$0xff]  }
 0x141   : > { %v8813_v61 = vpop.f32.mrb[23].mxu1 }
 0x142   : > { %v8814_v62 = vadd.f32 %v8813_v61, %v8812_v60 }
 0x143   : > { %9523 = vmatpush3.bf16.msra.mxu0 %v10719_v56 }
 0x144   : > { %9532 = vmatprep.subr.bf16.mxu0 %v10723_v55  ;;  %v1285_v0 = vpack.c.bf16 %v8814_v62, %v11800_v58  ;;  %v10744_v62 = vld [vmem:[%s13332_s5 + $0xf8] sm:$0xff]  }
 0x146   : > { %9525 = vmatmul.mubr.bf16.vlgmr.msra.gmra.mrb[16].mxu0 %v790_v10  ;;  %v8815_v2 = vpop.f32.mrb[24].mxu1 }
 0x147   : > { %9533 = vmatpush3.bf16.msra.mxu0 %v10723_v55  ;;  %9528 = vmatprep.mubr.bf16.mxu0 %v791_v26  ;;  %v8816_v3 = vpop.f32.mrb[25].mxu1 }
 0x148   : > { %9534 = vmatprep.subr.bf16.mxu0 %v10724_v63  ;;  %v8817_v6 = vadd.f32 %v8816_v3, %v8815_v2  ;;  %v8818_v8 = vpop.f32.mrb[26].mxu1  ;;  %v10745_v3 = vld [vmem:[%s13332_s5 + $0x100] sm:$0xff]  }
 0x149   : > { %v8819_v9 = vpop.f32.mrb[27].mxu1 }
 0x14a   : > { %v8820_v4 = vadd.f32 %v8819_v9, %v8818_v8 }
 0x14b   : > { %9535 = vmatpush3.bf16.msra.mxu0 %v10724_v63 }
 0x14c   : > { %9536 = vmatprep.subr.bf16.mxu0 %v10728_v5  ;;  %v1286_v7 = vpack.c.bf16 %v8820_v4, %v8817_v6  ;;  %v10746_v4 = vld [vmem:[%s13332_s5 + $0x108] sm:$0xff]  }
 0x14e   : > { %9529 = vmatmul.mubr.bf16.gmra.mrb[20].mxu0 %v792_v44  ;;  %v8821_v10 = vpop.f32.mrb[28].mxu1 }
 0x14f   : > { %9537 = vmatpush3.bf16.msra.mxu0 %v10728_v5  ;;  %9548 = vmatprep.mubr.bf16.mxu0 %v1284_v57  ;;  %v8822_v11 = vpop.f32.mrb[29].mxu1 }
 0x150   : > { %9538 = vmatprep.subr.bf16.mxu0 %v10729_v1  ;;  %v8823_v13 = vadd.f32 %v8822_v11, %v8821_v10  ;;  %v8824_v14 = vpop.f32.mrb[30].mxu1  ;;  %v10747_v11 = vld [vmem:[%s13332_s5 + $0x110] sm:$0xff]  }
 0x151   : > { %v8825_v15 = vpop.f32.mrb[31].mxu1 }
 0x152   : > { %v8826_v16 = vadd.f32 %v8825_v15, %v8824_v14 }
 0x153   : > { %9539 = vmatpush3.bf16.msra.mxu0 %v10729_v1 }
 0x154   : > { %9540 = vmatprep.subr.bf16.mxu0 %v10733_v12  ;;  %v1287_v18 = vpack.c.bf16 %v8826_v16, %v8823_v13  ;;  %v10748_v16 = vld [vmem:[%s13332_s5 + $0x118] sm:$0xff]  }
 0x156   : > { %v8855_v19 = vpop.f32.mrb[32].mxu1 }
 0x157   : > { %9541 = vmatpush3.bf16.msra.mxu0 %v10733_v12  ;;  %v8856_v20 = vpop.f32.mrb[33].mxu1 }
 0x158   : > { %9542 = vmatprep.subr.bf16.mxu0 %v10734_v17  ;;  %v8857_v22 = vadd.f32 %v8856_v20, %v8855_v19  ;;  %v8858_v23 = vpop.f32.mrb[34].mxu1  ;;  %v10749_v20 = vld [vmem:[%s13332_s5 + $0x120] sm:$0xff]  }
 0x159   : > { %v8859_v24 = vpop.f32.mrb[35].mxu1 }
 0x15a   : > { %v8860_v59 = vadd.f32 %v8859_v24, %v8858_v23 }
 0x15b   : > { %9543 = vmatpush3.bf16.msra.mxu0 %v10734_v17 }
 0x15c   : > { %9544 = vmatprep.subr.bf16.mxu0 %v10735_v21  ;;  %v1540_v26 = vpack.c.bf16 %v8860_v59, %v8857_v22  ;;  %v10750_v59 = vld [vmem:[%s13332_s5 + $0x128] sm:$0xff]  }
 0x15e   : > { %v8861_v27 = vpop.f32.mrb[36].mxu1 }
 0x15f   : > { %9545 = vmatpush3.bf16.msra.mxu0 %v10735_v21  ;;  %v8862_v28 = vpop.f32.mrb[37].mxu1 }
 0x160   : > { %9546 = vmatprep.subr.bf16.mxu0 %v10736_v25  ;;  %v11830_v30 = vadd.f32 %v8862_v28, %v8861_v27  ;;  %v8864_v31 = vpop.f32.mrb[38].mxu1  ;;  %v10751_v28 = vld [vmem:[%s13332_s5 + $0x130] sm:$0xff]  }
 0x161   : > { %v8865_v32 = vpop.f32.mrb[39].mxu1 }
 0x162   : > { %v8866_v33 = vadd.f32 %v8865_v32, %v8864_v31 }
 0x163   : > { %9547 = vmatpush3.bf16.msra.mxu0 %v10736_v25 }
 0x164   : > { %9556 = vmatprep.subr.bf16.mxu0 %v10737_v29  ;;  %v1541_v35 = vpack.c.bf16 %v8866_v33, %v11830_v30  ;;  %v10752_v33 = vld [vmem:[%s13332_s5 + $0x138] sm:$0xff]  }
 0x166   : > { %9549 = vmatmul.mubr.bf16.vlgmr.msra.gmra.mrb[16].mxu0 %v1285_v0  ;;  %v8867_v36 = vpop.f32.mrb[40].mxu1 }
 0x167   : > { %9557 = vmatpush3.bf16.msra.mxu0 %v10737_v29  ;;  %9552 = vmatprep.mubr.bf16.mxu0 %v1286_v7  ;;  %v8868_v37 = vpop.f32.mrb[41].mxu1 }
 0x168   : > { %9558 = vmatprep.subr.bf16.mxu0 %v10738_v34  ;;  %v8869_v39 = vadd.f32 %v8868_v37, %v8867_v36  ;;  %v8870_v40 = vpop.f32.mrb[42].mxu1  ;;  %v10753_v37 = vld [vmem:[%s13332_s5 + $0x140] sm:$0xff]  }
 0x169   : > { %v8871_v41 = vpop.f32.mrb[43].mxu1 }
 0x16a   : > { %v8872_v42 = vadd.f32 %v8871_v41, %v8870_v40 }
 0x16b   : > { %9559 = vmatpush3.bf16.msra.mxu0 %v10738_v34 }
 0x16c   : > { %9560 = vmatprep.subr.bf16.mxu0 %v10739_v38  ;;  %v1542_v44 = vpack.c.bf16 %v8872_v42, %v8869_v39  ;;  %v10754_v42 = vld [vmem:[%s13332_s5 + $0x148] sm:$0xff]  }
 0x16e   : > { %9553 = vmatmul.mubr.bf16.gmra.mrb[20].mxu0 %v1287_v18  ;;  %v8873_v45 = vpop.f32.mrb[44].mxu1 }
 0x16f   : > { %9561 = vmatpush3.bf16.msra.mxu0 %v10739_v38  ;;  %9572 = vmatprep.mubr.bf16.mxu0 %v1540_v26  ;;  %v8874_v46 = vpop.f32.mrb[45].mxu1 }
 0x170   : > { %9562 = vmatprep.subr.bf16.mxu0 %v10740_v43  ;;  %v8875_v49 = vadd.f32 %v8874_v46, %v8873_v45  ;;  %v8876_v50 = vpop.f32.mrb[46].mxu1  ;;  %v10755_v46 = vld [vmem:[%s13332_s5 + $0x150] sm:$0xff]  }
 0x171   : > { %v8877_v51 = vpop.f32.mrb[47].mxu1 }
 0x172   : > { %v8878_v52 = vadd.f32 %v8877_v51, %v8876_v50 }
 0x173   : > { %9563 = vmatpush3.bf16.msra.mxu0 %v10740_v43 }
 0x174   : > { %9564 = vmatprep.subr.bf16.mxu0 %v10741_v47  ;;  %v1543_v56 = vpack.c.bf16 %v8878_v52, %v8875_v49  ;;  %v10756_v52 = vld [vmem:[%s13332_s5 + $0x158] sm:$0xff]  }
 0x176   : > { %v8907_v57 = vpop.f32.mrb[48].mxu1 }
 0x177   : > { %9565 = vmatpush3.bf16.msra.mxu0 %v10741_v47  ;;  %v8908_v48 = vpop.f32.mrb[49].mxu1 }
 0x178   : > { %9566 = vmatprep.subr.bf16.mxu0 %v10742_v54  ;;  %v8909_v55 = vadd.f32 %v8908_v48, %v8907_v57  ;;  %v8910_v58 = vpop.f32.mrb[50].mxu1  ;;  %v10757_v48 = vld [vmem:[%s13332_s5 + $0x160] sm:$0xff]  }
 0x179   : > { %v8911_v60 = vpop.f32.mrb[51].mxu1 }
 0x17a   : > { %v8912_v61 = vadd.f32 %v8911_v60, %v8910_v58 }
 0x17b   : > { %9567 = vmatpush3.bf16.msra.mxu0 %v10742_v54 }
 0x17c   : > { %9568 = vmatprep.subr.bf16.mxu0 %v10743_v53  ;;  %v1796_v63 = vpack.c.bf16 %v8912_v61, %v8909_v55  ;;  %v10758_v61 = vld [vmem:[%s13332_s5 + $0x168] sm:$0xff]  }
 0x17e   : > { %v8913_v0 = vpop.f32.mrb[52].mxu1 }
 0x17f   : > { %9569 = vmatpush3.bf16.msra.mxu0 %v10743_v53  ;;  %v8914_v2 = vpop.f32.mrb[53].mxu1 }
 0x180   : > { %9570 = vmatprep.subr.bf16.mxu0 %v10744_v62  ;;  %v11857_v5 = vadd.f32 %v8914_v2, %v8913_v0  ;;  %v8916_v6 = vpop.f32.mrb[54].mxu1  ;;  %v10759_v2 = vld [vmem:[%s13332_s5 + $0x170] sm:$0xff]  }
 0x181   : > { %v8917_v8 = vpop.f32.mrb[55].mxu1 }
 0x182   : > { %v8918_v9 = vadd.f32 %v8917_v8, %v8916_v6 }
 0x183   : > { %9571 = vmatpush3.bf16.msra.mxu0 %v10744_v62 }
 0x184   : > { %9580 = vmatprep.subr.bf16.mxu0 %v10745_v3  ;;  %v1797_v1 = vpack.c.bf16 %v8918_v9, %v11857_v5  ;;  %v10760_v9 = vld [vmem:[%s13332_s5 + $0x178] sm:$0xff]  }
 0x186   : > { %9573 = vmatmul.mubr.bf16.vlgmr.msra.gmra.mrb[16].mxu0 %v1541_v35  ;;  %v8919_v7 = vpop.f32.mrb[56].mxu1 }
 0x187   : > { %9581 = vmatpush3.bf16.msra.mxu0 %v10745_v3  ;;  %9576 = vmatprep.mubr.bf16.mxu0 %v1542_v44  ;;  %v8920_v10 = vpop.f32.mrb[57].mxu1 }
 0x188   : > { %9582 = vmatprep.subr.bf16.mxu0 %v10746_v4  ;;  %v8921_v12 = vadd.f32 %v8920_v10, %v8919_v7  ;;  %v8922_v13 = vpop.f32.mrb[58].mxu1  ;;  %v10761_v10 = vld [vmem:[%s13332_s5 + $0x180] sm:$0xff]  }
 0x189   : > { %v8923_v14 = vpop.f32.mrb[59].mxu1 }
 0x18a   : > { %v8924_v15 = vadd.f32 %v8923_v14, %v8922_v13 }
 0x18b   : > { %9583 = vmatpush3.bf16.msra.mxu0 %v10746_v4 }
 0x18c   : > { %9584 = vmatprep.subr.bf16.mxu0 %v10747_v11  ;;  %v1798_v17 = vpack.c.bf16 %v8924_v15, %v8921_v12  ;;  %v10762_v15 = vld [vmem:[%s13332_s5 + $0x188] sm:$0xff]  }
 0x18e   : > { %9577 = vmatmul.mubr.bf16.gmra.mrb[20].mxu0 %v1543_v56  ;;  %v8925_v18 = vpop.f32.mrb[60].mxu1 }
 0x18f   : > { %9585 = vmatpush3.bf16.msra.mxu0 %v10747_v11  ;;  %9596 = vmatprep.mubr.bf16.mxu0 %v1796_v63  ;;  %v8926_v19 = vpop.f32.mrb[61].mxu1 }
 0x190   : > { %9586 = vmatprep.subr.bf16.mxu0 %v10748_v16  ;;  %v8927_v21 = vadd.f32 %v8926_v19, %v8925_v18  ;;  %v8928_v22 = vpop.f32.mrb[62].mxu1  ;;  %v10763_v19 = vld [vmem:[%s13332_s5 + $0x190] sm:$0xff]  }
 0x191   : > { %v8929_v23 = vpop.f32.mrb[63].mxu1 }
 0x192   : > { %v8930_v24 = vadd.f32 %v8929_v23, %v8928_v22 }
 0x193   : > { %9587 = vmatpush3.bf16.msra.mxu0 %v10748_v16 }
 0x194   : > { %9588 = vmatprep.subr.bf16.mxu0 %v10749_v20  ;;  %v1799_v25 = vpack.c.bf16 %v8930_v24, %v8927_v21  ;;  %v10764_v24 = vld [vmem:[%s13332_s5 + $0x198] sm:$0xff]  }
 0x196   : > { %v8959_v26 = vpop.f32.mrb[64].mxu1 }
 0x197   : > { %9589 = vmatpush3.bf16.msra.mxu0 %v10749_v20  ;;  %v8960_v27 = vpop.f32.mrb[65].mxu1 }
 0x198   : > { %9590 = vmatprep.subr.bf16.mxu0 %v10750_v59  ;;  %v8961_v29 = vadd.f32 %v8960_v27, %v8959_v26  ;;  %v8962_v30 = vpop.f32.mrb[66].mxu1  ;;  %v10765_v27 = vld [vmem:[%s13332_s5 + $0x1a0] sm:$0xff]  }
 0x199   : > { %v8963_v31 = vpop.f32.mrb[67].mxu1 }
 0x19a   : > { %v8964_v32 = vadd.f32 %v8963_v31, %v8962_v30 }
 0x19b   : > { %9591 = vmatpush3.bf16.msra.mxu0 %v10750_v59 }
 0x19c   : > { %9592 = vmatprep.subr.bf16.mxu0 %v10751_v28  ;;  %v2052_v34 = vpack.c.bf16 %v8964_v32, %v8961_v29  ;;  %v10766_v32 = vld [vmem:[%s13332_s5 + $0x1a8] sm:$0xff]  }
 0x19e   : > { %v8965_v35 = vpop.f32.mrb[68].mxu1 }
 0x19f   : > { %9593 = vmatpush3.bf16.msra.mxu0 %v10751_v28  ;;  %v8966_v36 = vpop.f32.mrb[69].mxu1 }
 0x1a0   : > { %9594 = vmatprep.subr.bf16.mxu0 %v10752_v33  ;;  %v11884_v38 = vadd.f32 %v8966_v36, %v8965_v35  ;;  %v8968_v39 = vpop.f32.mrb[70].mxu1  ;;  %v10767_v36 = vld [vmem:[%s13332_s5 + $0x1b0] sm:$0xff]  }
 0x1a1   : > { %v8969_v40 = vpop.f32.mrb[71].mxu1 }
 0x1a2   : > { %v8970_v41 = vadd.f32 %v8969_v40, %v8968_v39 }
 0x1a3   : > { %9595 = vmatpush3.bf16.msra.mxu0 %v10752_v33 }
 0x1a4   : > { %9604 = vmatprep.subr.bf16.mxu0 %v10753_v37  ;;  %v2053_v43 = vpack.c.bf16 %v8970_v41, %v11884_v38  ;;  %v10768_v41 = vld [vmem:[%s13332_s5 + $0x1b8] sm:$0xff]  }
 0x1a6   : > { %9597 = vmatmul.mubr.bf16.vlgmr.msra.gmra.mrb[16].mxu0 %v1797_v1  ;;  %v8971_v44 = vpop.f32.mrb[72].mxu1 }
 0x1a7   : > { %9605 = vmatpush3.bf16.msra.mxu0 %v10753_v37  ;;  %9600 = vmatprep.mubr.bf16.mxu0 %v1798_v17  ;;  %v8972_v45 = vpop.f32.mrb[73].mxu1 }
 0x1a8   : > { %9606 = vmatprep.subr.bf16.mxu0 %v10754_v42  ;;  %v8973_v47 = vadd.f32 %v8972_v45, %v8971_v44  ;;  %v8974_v49 = vpop.f32.mrb[74].mxu1  ;;  %v10769_v45 = vld [vmem:[%s13332_s5 + $0x1c0] sm:$0xff]  }
 0x1a9   : > { %v8975_v50 = vpop.f32.mrb[75].mxu1 }
 0x1aa   : > { %v8976_v51 = vadd.f32 %v8975_v50, %v8974_v49 }
 0x1ab   : > { %9607 = vmatpush3.bf16.msra.mxu0 %v10754_v42 }
 0x1ac   : > { %9608 = vmatprep.subr.bf16.mxu0 %v10755_v46  ;;  %v2054_v54 = vpack.c.bf16 %v8976_v51, %v8973_v47  ;;  %v10770_v51 = vld [vmem:[%s13332_s5 + $0x1c8] sm:$0xff]  }
 0x1ae   : > { %9601 = vmatmul.mubr.bf16.gmra.mrb[20].mxu0 %v1799_v25  ;;  %v8977_v56 = vpop.f32.mrb[76].mxu1 }
 0x1af   : > { %9609 = vmatpush3.bf16.msra.mxu0 %v10755_v46  ;;  %9620 = vmatprep.mubr.bf16.mxu0 %v2052_v34  ;;  %v8978_v57 = vpop.f32.mrb[77].mxu1 }
 0x1b0   : > { %9610 = vmatprep.subr.bf16.mxu0 %v10756_v52  ;;  %v8979_v53 = vadd.f32 %v8978_v57, %v8977_v56  ;;  %v8980_v55 = vpop.f32.mrb[78].mxu1  ;;  %v10771_v57 = vld [vmem:[%s13332_s5 + $0x1d0] sm:$0xff]  }
 0x1b1   : > { %v8981_v58 = vpop.f32.mrb[79].mxu1 }
 0x1b2   : > { %v8982_v60 = vadd.f32 %v8981_v58, %v8980_v55 }
 0x1b3   : > { %9611 = vmatpush3.bf16.msra.mxu0 %v10756_v52 }
 0x1b4   : > { %9612 = vmatprep.subr.bf16.mxu0 %v10757_v48  ;;  %v2055_v62 = vpack.c.bf16 %v8982_v60, %v8979_v53  ;;  %v10772_v60 = vld [vmem:[%s13332_s5 + $0x1d8] sm:$0xff]  }
 0x1b6   : > { %v9011_v63 = vpop.f32.mrb[80].mxu1 }
 0x1b7   : > { %9613 = vmatpush3.bf16.msra.mxu0 %v10757_v48  ;;  %v9012_v0 = vpop.f32.mrb[81].mxu1 }
 0x1b8   : > { %9614 = vmatprep.subr.bf16.mxu0 %v10758_v61  ;;  %v9013_v3 = vadd.f32 %v9012_v0, %v9011_v63  ;;  %v9014_v5 = vpop.f32.mrb[82].mxu1  ;;  %v10773_v0 = vld [vmem:[%s13332_s5 + $0x1e0] sm:$0xff]  }
 0x1b9   : > { %v9015_v6 = vpop.f32.mrb[83].mxu1 }
 0x1ba   : > { %v9016_v8 = vadd.f32 %v9015_v6, %v9014_v5 }
 0x1bb   : > { %9615 = vmatpush3.bf16.msra.mxu0 %v10758_v61 }
 0x1bc   : > { %9616 = vmatprep.subr.bf16.mxu0 %v10759_v2  ;;  %v2308_v4 = vpack.c.bf16 %v9016_v8, %v9013_v3  ;;  %v10774_v8 = vld [vmem:[%s13332_s5 + $0x1e8] sm:$0xff]  }
 0x1be   : > { %v9017_v1 = vpop.f32.mrb[84].mxu1 }
 0x1bf   : > { %9617 = vmatpush3.bf16.msra.mxu0 %v10759_v2  ;;  %v9018_v7 = vpop.f32.mrb[85].mxu1 }
 0x1c0   : > { %9618 = vmatprep.subr.bf16.mxu0 %v10760_v9  ;;  %v11911_v11 = vadd.f32 %v9018_v7, %v9017_v1  ;;  %v9020_v12 = vpop.f32.mrb[86].mxu1  ;;  %v10775_v7 = vld [vmem:[%s13332_s5 + $0x1f0] sm:$0xff]  }
 0x1c1   : > { %v9021_v13 = vpop.f32.mrb[87].mxu1 }
 0x1c2   : > { %v9022_v14 = vadd.f32 %v9021_v13, %v9020_v12 }
 0x1c3   : > { %9619 = vmatpush3.bf16.msra.mxu0 %v10760_v9 }
 0x1c4   : > { %9628 = vmatprep.subr.bf16.mxu0 %v10761_v10  ;;  %v2309_v16 = vpack.c.bf16 %v9022_v14, %v11911_v11  ;;  %v10776_v14 = vld [vmem:[%s13332_s5 + $0x1f8] sm:$0xff]  }
 0x1c6   : > { %9621 = vmatmul.mubr.bf16.vlgmr.msra.gmra.mrb[16].mxu0 %v2053_v43  ;;  %v9023_v17 = vpop.f32.mrb[88].mxu1 }
 0x1c7   : > { %9629 = vmatpush3.bf16.msra.mxu0 %v10761_v10  ;;  %9624 = vmatprep.mubr.bf16.mxu0 %v2054_v54  ;;  %v9024_v18 = vpop.f32.mrb[89].mxu1 }
 0x1c8   : > { %9630 = vmatprep.subr.bf16.mxu0 %v10762_v15  ;;  %v9025_v20 = vadd.f32 %v9024_v18, %v9023_v17  ;;  %v9026_v21 = vpop.f32.mrb[90].mxu1  ;;  %v10777_v18 = vld [vmem:[%s13332_s5 + $0x200] sm:$0xff]  }
 0x1c9   : > { %v9027_v22 = vpop.f32.mrb[91].mxu1 }
 0x1ca   : > { %v9028_v23 = vadd.f32 %v9027_v22, %v9026_v21 }
 0x1cb   : > { %9631 = vmatpush3.bf16.msra.mxu0 %v10762_v15 }
 0x1cc   : > { %9632 = vmatprep.subr.bf16.mxu0 %v10763_v19  ;;  %v2310_v59 = vpack.c.bf16 %v9028_v23, %v9025_v20  ;;  %v10778_v23 = vld [vmem:[%s13332_s5 + $0x208] sm:$0xff]  }
 0x1ce   : > { %9625 = vmatmul.mubr.bf16.gmra.mrb[20].mxu0 %v2055_v62  ;;  %v9029_v25 = vpop.f32.mrb[92].mxu1 }
 0x1cf   : > { %9633 = vmatpush3.bf16.msra.mxu0 %v10763_v19  ;;  %9644 = vmatprep.mubr.bf16.mxu0 %v2308_v4  ;;  %v9030_v26 = vpop.f32.mrb[93].mxu1 }
 0x1d0   : > { %9634 = vmatprep.subr.bf16.mxu0 %v10764_v24  ;;  %v9031_v28 = vadd.f32 %v9030_v26, %v9029_v25  ;;  %v9032_v29 = vpop.f32.mrb[94].mxu1  ;;  %v10779_v26 = vld [vmem:[%s13332_s5 + $0x210] sm:$0xff]  }
 0x1d1   : > { %v9033_v30 = vpop.f32.mrb[95].mxu1 }
 0x1d2   : > { %v9034_v31 = vadd.f32 %v9033_v30, %v9032_v29 }
 0x1d3   : > { %9635 = vmatpush3.bf16.msra.mxu0 %v10764_v24 }
 0x1d4   : > { %9636 = vmatprep.subr.bf16.mxu0 %v10765_v27  ;;  %v2311_v33 = vpack.c.bf16 %v9034_v31, %v9031_v28  ;;  %v10780_v31 = vld [vmem:[%s13332_s5 + $0x218] sm:$0xff]  }
 0x1d6   : > { %v9063_v34 = vpop.f32.mrb[96].mxu1 }
 0x1d7   : > { %9637 = vmatpush3.bf16.msra.mxu0 %v10765_v27  ;;  %v9064_v35 = vpop.f32.mrb[97].mxu1 }
 0x1d8   : > { %9638 = vmatprep.subr.bf16.mxu0 %v10766_v32  ;;  %v9065_v37 = vadd.f32 %v9064_v35, %v9063_v34  ;;  %v9066_v38 = vpop.f32.mrb[98].mxu1  ;;  %v10781_v35 = vld [vmem:[%s13332_s5 + $0x220] sm:$0xff]  }
 0x1d9   : > { %v9067_v39 = vpop.f32.mrb[99].mxu1 }
 0x1da   : > { %v9068_v40 = vadd.f32 %v9067_v39, %v9066_v38 }
 0x1db   : > { %9639 = vmatpush3.bf16.msra.mxu0 %v10766_v32 }
 0x1dc   : > { %9640 = vmatprep.subr.bf16.mxu0 %v10767_v36  ;;  %v2564_v42 = vpack.c.bf16 %v9068_v40, %v9065_v37  ;;  %v10782_v40 = vld [vmem:[%s13332_s5 + $0x228] sm:$0xff]  }
 0x1de   : > { %v9069_v43 = vpop.f32.mrb[100].mxu1 }
 0x1df   : > { %9641 = vmatpush3.bf16.msra.mxu0 %v10767_v36  ;;  %v9070_v44 = vpop.f32.mrb[101].mxu1 }
 0x1e0   : > { %9642 = vmatprep.subr.bf16.mxu0 %v10768_v41  ;;  %v11938_v46 = vadd.f32 %v9070_v44, %v9069_v43  ;;  %v9072_v47 = vpop.f32.mrb[102].mxu1  ;;  %v10784_v43 = vld [vmem:[%s13332_s5 + $0x238] sm:$0xff]   ;;  %v11118_v44 = vmov 0.0  }
 0x1e1   : > { %v9073_v49 = vpop.f32.mrb[103].mxu1  ;;  %9700 = vmatprep.subr.bf16.mxu1 %v11118_v44  ;;  %9708 = vmatprep.mubr.msk.bf16.mxu1 %vm11119_vm0, %v11118_v44 }
 0x1e2   : > { %v9074_v50 = vadd.f32 %v9073_v49, %v9072_v47  ;;  %v10790_v47 = vld [vmem:[%s13334_s7 + $0x10] sm:$0xff]   ;;  %v10792_v49 = vld [vmem:[%s13334_s7 + $0x18] sm:$0xff]  }
 0x1e3   : > { %9643 = vmatpush3.bf16.msra.mxu0 %v10768_v41 }
 0x1e4   : > { %9652 = vmatprep.subr.bf16.mxu0 %v10769_v45  ;;  %v2565_v52 = vpack.c.bf16 %v9074_v50, %v11938_v46  ;;  %v10788_v46 = vld [vmem:[%s13334_s7 + $0x8] sm:$0xff]   ;;  %v10794_v50 = vld [vmem:[%s13334_s7 + $0x20] sm:$0xff]  }
 0x1e6   : > { %9645 = vmatmul.mubr.bf16.vlgmr.msra.gmra.mrb[16].mxu0 %v2309_v16  ;;  %v9075_v54 = vpop.f32.mrb[104].mxu1 }
 0x1e7   : > { %9653 = vmatpush3.bf16.msra.mxu0 %v10769_v45  ;;  %9648 = vmatprep.mubr.bf16.mxu0 %v2310_v59  ;;  %v9076_v56 = vpop.f32.mrb[105].mxu1  ;;  %v10787_v45 = vld [vmem:[%s13334_s7] sm:$0xff]  }
 0x1e8   : > { %9654 = vmatprep.subr.bf16.mxu0 %v10770_v51  ;;  %v9077_v48 = vadd.f32 %v9076_v56, %v9075_v54  ;;  %v9078_v53 = vpop.f32.mrb[106].mxu1  ;;  %v7959_v54 = vld [vmem:[%s13333_s6] ss:$0 sm:$0xff] }
 0x1e9   : > { %v9079_v55 = vpop.f32.mrb[107].mxu1 }
 0x1ea   : > { %v9080_v58 = vadd.f32 %v9079_v55, %v9078_v53 }
 0x1eb   : > { %9655 = vmatpush3.bf16.msra.mxu0 %v10770_v51  ;;  %v10796_v51 = vld [vmem:[%s13334_s7 + $0x28] sm:$0xff]  }
 0x1ec   : > { %9656 = vmatprep.subr.bf16.mxu0 %v10771_v57  ;;  %v2566_v61 = vpack.c.bf16 %v9080_v58, %v9077_v48 }
 0x1ee   : > { %9649 = vmatmul.mubr.bf16.gmra.mrb[20].mxu0 %v2311_v33  ;;  %v9081_v62 = vpop.f32.mrb[108].mxu1 }
 0x1ef   : > { %9657 = vmatpush3.bf16.msra.mxu0 %v10771_v57  ;;  %9668 = vmatprep.mubr.bf16.mxu0 %v2564_v42  ;;  %v9082_v63 = vpop.f32.mrb[109].mxu1  ;;  %v10783_v42 = vld [vmem:[%s13332_s5 + $0x230] sm:$0xff]  }
 0x1f0   : > { %9658 = vmatprep.subr.bf16.mxu0 %v10772_v60  ;;  %v9083_v2 = vadd.f32 %v9082_v63, %v9081_v62  ;;  %v9084_v3 = vpop.f32.mrb[110].mxu1 }
 0x1f1   : > { %v9085_v5 = vpop.f32.mrb[111].mxu1 }
 0x1f2   : > { %v9086_v6 = vadd.f32 %v9085_v5, %v9084_v3 }
 0x1f3   : > { %9659 = vmatpush3.bf16.msra.mxu0 %v10772_v60 }
 0x1f4   : > { %9660 = vmatprep.subr.bf16.mxu0 %v10773_v0  ;;  %v2567_v9 = vpack.c.bf16 %v9086_v6, %v9083_v2 }
 0x1f6   : > { %v9115_v4 = vpop.f32.mrb[112].mxu1 }
 0x1f7   : > { %9661 = vmatpush3.bf16.msra.mxu0 %v10773_v0  ;;  %v9116_v1 = vpop.f32.mrb[113].mxu1 }
 0x1f8   : > { %9662 = vmatprep.subr.bf16.mxu0 %v10774_v8  ;;  %v9117_v10 = vadd.f32 %v9116_v1, %v9115_v4  ;;  %v9118_v11 = vpop.f32.mrb[114].mxu1 }
 0x1f9   : > { %v9119_v12 = vpop.f32.mrb[115].mxu1 }
 0x1fa   : > { %v9120_v13 = vadd.f32 %v9119_v12, %v9118_v11 }
 0x1fb   : > { %9663 = vmatpush3.bf16.msra.mxu0 %v10774_v8 }
 0x1fc   : > { %9664 = vmatprep.subr.bf16.mxu0 %v10775_v7  ;;  %v2820_v15 = vpack.c.bf16 %v9120_v13, %v9117_v10 }
 0x1fe   : > { %v9121_v16 = vpop.f32.mrb[116].mxu1 }
 0x1ff   : > { %9665 = vmatpush3.bf16.msra.mxu0 %v10775_v7  ;;  %v9122_v17 = vpop.f32.mrb[117].mxu1 }
 0x200   : > { %9666 = vmatprep.subr.bf16.mxu0 %v10776_v14  ;;  %v9123_v19 = vadd.f32 %v9122_v17, %v9121_v16  ;;  %v9124_v20 = vpop.f32.mrb[118].mxu1 }
 0x201   : > { %v9125_v21 = vpop.f32.mrb[119].mxu1 }
 0x202   : > { %v9126_v22 = vadd.f32 %v9125_v21, %v9124_v20  ;;  %v10789_v20 = vld [vmem:[%s13334_s7 + $0x40] sm:$0xff]   ;;  %v10791_v21 = vld [vmem:[%s13334_s7 + $0x48] sm:$0xff]  }
 0x203   : > { %9667 = vmatpush3.bf16.msra.mxu0 %v10776_v14 }
 0x204   : > { %9676 = vmatprep.subr.bf16.mxu0 %v10777_v18  ;;  %v2821_v24 = vpack.c.bf16 %v9126_v22, %v9123_v19  ;;  %v10786_v19 = vld [vmem:[%s13363_s2 + $0x8] sm:$0xff]   ;;  %v10793_v22 = vld [vmem:[%s13334_s7 + $0x50] sm:$0xff]  }
 0x206   : > { %9669 = vmatmul.mubr.bf16.vlgmr.msra.gmra.mrb[16].mxu0 %v2565_v52  ;;  %v9127_v59 = vpop.f32.mrb[120].mxu1  ;;  %v10798_v52 = vld [vmem:[%s13334_s7 + $0x30] sm:$0xff]  }
 0x207   : > { %9677 = vmatpush3.bf16.msra.mxu0 %v10777_v18  ;;  %9672 = vmatprep.mubr.bf16.mxu0 %v2566_v61  ;;  %v9128_v25 = vpop.f32.mrb[121].mxu1  ;;  %v10785_v18 = vld [vmem:[%s13363_s2] sm:$0xff]  }
 0x208   : > { %9678 = vmatprep.subr.bf16.mxu0 %v10778_v23  ;;  %v9129_v27 = vadd.f32 %v9128_v25, %v9127_v59  ;;  %v9130_v28 = vpop.f32.mrb[122].mxu1  ;;  %v10800_v59 = vld [vmem:[%s13334_s7 + $0x38] sm:$0xff]   ;;  %v10799_v25 = vld [vmem:[%s13334_s7 + $0x68] sm:$0xff]  }
 0x209   : > { %v9131_v29 = vpop.f32.mrb[123].mxu1 }
 0x20a   : > { %v9132_v30 = vadd.f32 %v9131_v29, %v9130_v28 }
 0x20b   : > { %9679 = vmatpush3.bf16.msra.mxu0 %v10778_v23  ;;  %v10795_v23 = vld [vmem:[%s13334_s7 + $0x58] sm:$0xff]  }
 0x20c   : > { %9680 = vmatprep.subr.bf16.mxu0 %v10779_v26  ;;  %v2822_v32 = vpack.c.bf16 %v9132_v30, %v9129_v27  ;;  %v10802_v27 = vld [vmem:[%s13334_s7 + $0x78] sm:$0xff]  }
 0x20e   : > { %9673 = vmatmul.mubr.bf16.gmra.mrb[20].mxu0 %v2567_v9  ;;  %v9133_v33 = vpop.f32.mrb[124].mxu1 }
 0x20f   : > { %9681 = vmatpush3.bf16.msra.mxu0 %v10779_v26  ;;  %9692 = vmatprep.mubr.bf16.mxu0 %v2820_v15  ;;  %v9134_v34 = vpop.f32.mrb[125].mxu1  ;;  %v10801_v26 = vld [vmem:[%s13334_s7 + $0x70] sm:$0xff]  }
 0x210   : > { %9682 = vmatprep.subr.bf16.mxu0 %v10780_v31  ;;  %v9135_v36 = vadd.f32 %v9134_v34, %v9133_v33  ;;  %v9136_v37 = vpop.f32.mrb[126].mxu1 }
 0x211   : > { %v9137_v38 = vpop.f32.mrb[127].mxu1 }
 0x212   : > { %v9138_v39 = vadd.f32 %v9137_v38, %v9136_v37 }
 0x213   : > { %9683 = vmatpush3.bf16.msra.mxu0 %v10780_v31  ;;  %v10805_v31 = vld [vmem:[%s13334_s7 + $0x80] sm:$0xff]  }
 0x214   : > { %9684 = vmatprep.subr.bf16.mxu0 %v10781_v35  ;;  %v2823_v41 = vpack.c.bf16 %v9138_v39, %v9135_v36  ;;  %v10803_v39 = vld [vmem:[%s13363_s2 + $0x10] sm:$0xff]  }
 0x217   : > { %9685 = vmatpush3.bf16.msra.mxu0 %v10781_v35 }
 0x218   : > { %9686 = vmatprep.subr.bf16.mxu0 %v10782_v40 }
 0x21b   : > { %9687 = vmatpush3.bf16.msra.mxu0 %v10782_v40  ;;  %v10804_v40 = vld [vmem:[%s13363_s2 + $0x18] sm:$0xff]  }
 0x21c   : > { %9688 = vmatprep.subr.bf16.mxu0 %v10783_v42 }
 0x21f   : > { %9689 = vmatpush3.bf16.msra.mxu0 %v10783_v42  ;;  %v10807_v42 = vld [vmem:[%s13334_s7 + $0x90] sm:$0xff]  }
 0x220   : > { %9690 = vmatprep.subr.bf16.mxu0 %v10784_v43 }
 0x223   : > { %9691 = vmatpush3.bf16.msra.mxu0 %v10784_v43  ;;  %v10808_v43 = vld [vmem:[%s13334_s7 + $0x98] sm:$0xff]  }
 0x224   : > { %9744 = vmatprep.subr.bf16.mxu0 %v11118_v44 }
 0x226   : > { %9693 = vmatmul.mubr.bf16.vlgmr.msra.gmra.mrb[16].mxu0 %v2821_v24  ;;  %v10797_v24 = vld [vmem:[%s13334_s7 + $0x60] sm:$0xff]  }
 0x227   : > { %9696 = vmatprep.mubr.bf16.mxu0 %v2822_v32  ;;  %9745 = vmatpush3.bf16.msra.mxu0 %v10787_v45  ;;  %v10809_v45 = vld [vmem:[%s13334_s7 + $0xa0] sm:$0xff]  }
 0x228   : > { %9746 = vmatprep.subr.bf16.mxu0 %v11118_v44 }
 0x22b   : > { %9747 = vmatpush3.bf16.msra.mxu0 %v10788_v46  ;;  %v10810_v46 = vld [vmem:[%s13334_s7 + $0xc0] sm:$0xff]  }
 0x22c   : > { %9748 = vmatprep.subr.bf16.mxu0 %v11118_v44 }
 0x22e   : > { %9697 = vmatmul.mubr.bf16.gmra.mrb[20].mxu0 %v2823_v41  ;;  %v10806_v41 = vld [vmem:[%s13334_s7 + $0x88] sm:$0xff]  }
 0x22f   : > { %9760 = vmatprep.mubr.msk.bf16.mxu0 %vm11119_vm0, %v11118_v44  ;;  %9749 = vmatpush3.bf16.msra.mxu0 %v10790_v47  ;;  %v10811_v47 = vld [vmem:[%s13334_s7 + $0xa8] sm:$0xff]  }
 0x230   : > { %9750 = vmatprep.subr.bf16.mxu0 %v11118_v44 }
 0x233   : > { %9751 = vmatpush3.bf16.msra.mxu0 %v10792_v49  ;;  %v10812_v49 = vld [vmem:[%s13334_s7 + $0xc8] sm:$0xff]  }
 0x234   : > { %9752 = vmatprep.subr.bf16.mxu0 %v11118_v44 }
 0x237   : > { %9753 = vmatpush3.bf16.msra.mxu0 %v10794_v50  ;;  %v10813_v50 = vld [vmem:[%s13334_s7 + $0xb0] sm:$0xff]  }
 0x238   : > { %9754 = vmatprep.subr.bf16.mxu0 %v11118_v44 }
 0x23b   : > { %9755 = vmatpush3.bf16.msra.mxu0 %v10796_v51  ;;  %v10814_v51 = vld [vmem:[%s13334_s7 + $0xd0] sm:$0xff]  }
 0x23c   : > { %9756 = vmatprep.subr.bf16.mxu0 %v11118_v44 }
 0x23f   : > { %9757 = vmatpush3.bf16.msra.mxu0 %v10798_v52  ;;  %v10815_v52 = vld [vmem:[%s13334_s7 + $0xb8] sm:$0xff]  }
 0x240   : > { %9758 = vmatprep.subr.bf16.mxu0 %v11118_v44 }
 0x243   : > { %9759 = vmatpush3.bf16.msra.mxu0 %v10800_v59  ;;  %v10828_v59 = vld [vmem:[%s13334_s7 + $0x140] sm:$0xff]  }
 0x244   : > { %9776 = vmatprep.subr.bf16.mxu0 %v11118_v44 }
 0x2f9   : > { %v9694_v56 = vpop.f32.mrb[16].mxu0 }
 0x2fa   : > { %v2971_v57 = vadd.f32 %v9694_v56, %v7959_v54  ;;  %v2923_v48 = vpop.f32.mrb[17].mxu0  ;;  %v10817_v56 = vld [vmem:[%s13334_s7 + $0xe0] sm:$0xff]  }
 0x2fb   : > { %v2969_v53 = vadd.f32 %v7959_v54, %v2923_v48  ;;  %v9695_v55 = vpop.f32.mrb[18].mxu0  ;;  %v10819_v48 = vld [vmem:[%s13334_s7 + $0xf0] sm:$0xff]  }
 0x2fc   : > { %v2972_v58 = vadd.f32 %v9695_v55, %v7959_v54  ;;  %v2926_v60 = vpop.f32.mrb[19].mxu0  ;;  %v2979_v62 = vmax.f32 %v2971_v57, 0.0  ;;  %v10818_v57 = vld [vmem:[%s13334_s7 + $0xe8] sm:$0xff]  }
 0x2fd   : > { %v2970_v61 = vadd.f32 %v7959_v54, %v2926_v60  ;;  %v2977_v0 = vmax.f32 %v2969_v53, 0.0  ;;  %v10820_v53 = vld [vmem:[%s13334_s7 + $0xf8] sm:$0xff]  }
 0x2fe   : > { %v2980_v63 = vmax.f32 %v2972_v58, 0.0 }
 0x2ff   : > { %v2978_v2 = vmax.f32 %v2970_v61, 0.0 }
 0x300   : > { %v12023_v3 = vpack.c.bf16 %v2980_v63, %v2979_v62 }
 0x301   : > { %v12025_v5 = vpack.c.bf16 %v2978_v2, %v2977_v0  ;;  %v9698_v6 = vpop.f32.mrb[20].mxu0 }
 0x302   : > { %v2975_v8 = vadd.f32 %v9698_v6, %v7959_v54  ;;  %v2939_v9 = vpop.f32.mrb[21].mxu0 }
 0x303   : > { %v2973_v4 = vadd.f32 %v7959_v54, %v2939_v9  ;;  %v9699_v1 = vpop.f32.mrb[22].mxu0  ;;  %9701 = vmatpush3.bf16.msra.mxu1 %v12025_v5 }
 0x304   : > { %v2976_v7 = vadd.f32 %v9699_v1, %v7959_v54  ;;  %v2942_v10 = vpop.f32.mrb[23].mxu0  ;;  %9702 = vmatprep.subr.bf16.mxu1 %v11118_v44  ;;  %v2983_v12 = vmax.f32 %v2975_v8, 0.0 }
 0x305   : > { %v2974_v11 = vadd.f32 %v7959_v54, %v2942_v10  ;;  %v2981_v14 = vmax.f32 %v2973_v4, 0.0  ;;  %v10816_v54 = vld [vmem:[%s13334_s7 + $0xd8] sm:$0xff]  }
 0x306   : > { %v2984_v13 = vmax.f32 %v2976_v7, 0.0 }
 0x307   : > { %v2982_v15 = vmax.f32 %v2974_v11, 0.0  ;;  %9703 = vmatpush3.bf16.msra.mxu1 %v12023_v3 }
 0x308   : > { %v12030_v16 = vpack.c.bf16 %v2984_v13, %v2983_v12  ;;  %9704 = vmatprep.subr.bf16.mxu1 %v11118_v44  ;;  %v10821_v13 = vld [vmem:[%s13363_s2 + $0x20] sm:$0xff]  }
 0x309   : > { %v12033_v17 = vpack.c.bf16 %v2982_v15, %v2981_v14 }
 0x30b   : > { %9705 = vmatpush3.bf16.msra.mxu1 %v12033_v17 }
 0x30c   : > { %9706 = vmatprep.subr.bf16.mxu1 %v11118_v44 }
 0x30f   : > { %9707 = vmatpush3.bf16.msra.mxu1 %v12030_v16 }
 0x310   : > { %9712 = vmatprep.subr.bf16.mxu1 %v11118_v44 }
 0x312   : > { %9709 = vmatmul.mubr.msk.bf16.vlgmr.msra.gmra.mrb[128].mxu1 %vm2996_vm1, %v10785_v18  ;;  %v10823_v18 = vld [vmem:[%s13334_s7 + $0x100] sm:$0xff]  }
 0x313   : > { %9713 = vmatpush3.bf16.msra.mxu1 %v12025_v5  ;;  %9720 = vmatprep.mubr.msk.bf16.mxu1 %vm11119_vm0, %v11118_v44 }
 0x314   : > { %9714 = vmatprep.subr.bf16.mxu1 %v11118_v44 }
 0x317   : > { %9715 = vmatpush3.bf16.msra.mxu1 %v12023_v3 }
 0x318   : > { %9716 = vmatprep.subr.bf16.mxu1 %v11118_v44 }
 0x31b   : > { %9717 = vmatpush3.bf16.msra.mxu1 %v12033_v17 }
 0x31c   : > { %9718 = vmatprep.subr.bf16.mxu1 %v11118_v44 }
 0x31f   : > { %9719 = vmatpush3.bf16.msra.mxu1 %v12030_v16 }
 0x320   : > { %9724 = vmatprep.subr.bf16.mxu1 %v11118_v44 }
 0x322   : > { %9721 = vmatmul.mubr.msk.bf16.vlgmr.msra.gmra.mrb[132].mxu1 %vm2996_vm1, %v10786_v19 }
 0x323   : > { %9725 = vmatpush3.bf16.msra.mxu1 %v10789_v20  ;;  %9740 = vmatprep.mubr.msk.bf16.mxu1 %vm11119_vm0, %v11118_v44  ;;  %v10824_v20 = vld [vmem:[%s13334_s7 + $0x108] sm:$0xff]  }
 0x324   : > { %9726 = vmatprep.subr.bf16.mxu1 %v11118_v44 }
 0x327   : > { %9727 = vmatpush3.bf16.msra.mxu1 %v10791_v21  ;;  %v10825_v21 = vld [vmem:[%s13334_s7 + $0x110] sm:$0xff]  }
 0x328   : > { %9728 = vmatprep.subr.bf16.mxu1 %v11118_v44 }
 0x32b   : > { %9729 = vmatpush3.bf16.msra.mxu1 %v10793_v22  ;;  %v10822_v22 = vld [vmem:[%s13363_s2 + $0x28] sm:$0xff]  }
 0x32c   : > { %9730 = vmatprep.subr.bf16.mxu1 %v11118_v44 }
 0x32f   : > { %9731 = vmatpush3.bf16.msra.mxu1 %v10795_v23  ;;  %v10826_v23 = vld [vmem:[%s13334_s7 + $0x118] sm:$0xff]  }
 0x330   : > { %9732 = vmatprep.subr.bf16.mxu1 %v11118_v44 }
 0x333   : > { %9733 = vmatpush3.bf16.msra.mxu1 %v10797_v24  ;;  %v10827_v24 = vld [vmem:[%s13334_s7 + $0x120] sm:$0xff]  }
 0x334   : > { %9734 = vmatprep.subr.bf16.mxu1 %v11118_v44 }
 0x337   : > { %9735 = vmatpush3.bf16.msra.mxu1 %v10799_v25  ;;  %v10829_v25 = vld [vmem:[%s13334_s7 + $0x128] sm:$0xff]  }
 0x338   : > { %9736 = vmatprep.subr.bf16.mxu1 %v11118_v44 }
 0x33b   : > { %9737 = vmatpush3.bf16.msra.mxu1 %v10801_v26  ;;  %v10830_v26 = vld [vmem:[%s13334_s7 + $0x148] sm:$0xff]  }
 0x33c   : > { %9738 = vmatprep.subr.bf16.mxu1 %v11118_v44 }
 0x33f   : > { %9739 = vmatpush3.bf16.msra.mxu1 %v10802_v27  ;;  %v10831_v27 = vld [vmem:[%s13334_s7 + $0x130] sm:$0xff]  }
 0x340   : > { %9764 = vmatprep.subr.bf16.mxu1 %v11118_v44 }
 0x3e5   : > { %v3034_v28 = vpop.f32.mrb[128].mxu1 }
 0x3e6   : > { %v9710_v29 = vpop.f32.mrb[129].mxu1 }
 0x3e7   : > { %v3037_v30 = vpop.f32.mrb[130].mxu1  ;;  %v10833_v29 = vld [vmem:[%s13334_s7 + $0x138] sm:$0xff]  }
 0x3e8   : > { %v3041_v32 = vpack.c.bf16 %v3037_v30, %v3034_v28  ;;  %v9711_v33 = vpop.f32.mrb[131].mxu1  ;;  %v10832_v28 = vld [vmem:[%s13334_s7 + $0x150] sm:$0xff]   ;;  %v10834_v30 = vld [vmem:[%s13334_s7 + $0x158] sm:$0xff]  }
 0x3e9   : > { %v10837_v33 = vld [vmem:[%s13334_s7 + $0x170] sm:$0xff]  }
 0x3ea   : > { %9761 = vmatmul.mubr.bf16.vlgmr.msra.gmra.mrb[24].mxu0 %v3041_v32  ;;  %v10836_v32 = vld [vmem:[%s13334_s7 + $0x168] sm:$0xff]  }
 0x3eb   : > { %9777 = vmatpush3.bf16.msra.mxu0 %v10805_v31  ;;  %9792 = vmatprep.mubr.msk.bf16.mxu0 %vm11119_vm0, %v11118_v44  ;;  %v10835_v31 = vld [vmem:[%s13334_s7 + $0x160] sm:$0xff]  }
 0x3ec   : > { %9778 = vmatprep.subr.bf16.mxu0 %v11118_v44 }
 0x3ef   : > { %9779 = vmatpush3.bf16.msra.mxu0 %v10806_v41 }
 0x3f0   : > { %9780 = vmatprep.subr.bf16.mxu0 %v11118_v44 }
 0x3f3   : > { %9781 = vmatpush3.bf16.msra.mxu0 %v10807_v42 }
 0x3f4   : > { %9782 = vmatprep.subr.bf16.mxu0 %v11118_v44 }
 0x3f5   : > { %v3103_v34 = vpop.f32.mrb[132].mxu1 }
 0x3f6   : > { %v9722_v35 = vpop.f32.mrb[133].mxu1 }
 0x3f7   : > { %v3106_v36 = vpop.f32.mrb[134].mxu1  ;;  %9783 = vmatpush3.bf16.msra.mxu0 %v10808_v43 }
 0x3f8   : > { %v3110_v37 = vpack.c.bf16 %v3106_v36, %v3103_v34  ;;  %v9723_v38 = vpop.f32.mrb[135].mxu1  ;;  %9784 = vmatprep.subr.bf16.mxu0 %v11118_v44  ;;  %v10838_v34 = vld [vmem:[%s13334_s7 + $0x178] sm:$0xff]  }
 0x3fa   : > { %9741 = vmatmul.mubr.bf16.vlgmr.msra.gmra.mrb[136].mxu1 %v3110_v37 }
 0x3fb   : > { %9765 = vmatpush3.bf16.msra.mxu1 %v12025_v5  ;;  %9772 = vmatprep.mubr.msk.bf16.mxu1 %vm11119_vm0, %v11118_v44 }
 0x3fc   : > { %9766 = vmatprep.subr.bf16.mxu1 %v11118_v44  ;;  %9785 = vmatpush3.bf16.msra.mxu0 %v10809_v45 }
 0x3fd   : > { %9786 = vmatprep.subr.bf16.mxu0 %v11118_v44 }
 0x3ff   : > { %9767 = vmatpush3.bf16.msra.mxu1 %v12023_v3 }
 0x400   : > { %9768 = vmatprep.subr.bf16.mxu1 %v11118_v44  ;;  %9787 = vmatpush3.bf16.msra.mxu0 %v10811_v47 }
 0x401   : > { %9788 = vmatprep.subr.bf16.mxu0 %v11118_v44 }
 0x403   : > { %9769 = vmatpush3.bf16.msra.mxu1 %v12033_v17 }
 0x404   : > { %9770 = vmatprep.subr.bf16.mxu1 %v11118_v44  ;;  %9789 = vmatpush3.bf16.msra.mxu0 %v10813_v50 }
 0x405   : > { %9790 = vmatprep.subr.bf16.mxu0 %v11118_v44 }
 0x407   : > { %9771 = vmatpush3.bf16.msra.mxu1 %v12030_v16 }
 0x408   : > { %9796 = vmatprep.subr.bf16.mxu1 %v11118_v44  ;;  %9791 = vmatpush3.bf16.msra.mxu0 %v10815_v52 }
 0x409   : > { %9828 = vmatprep.subr.bf16.mxu0 %v11118_v44 }
 0x40a   : > { %9773 = vmatmul.mubr.msk.bf16.vlgmr.msra.gmra.mrb[140].mxu1 %vm2996_vm1, %v10803_v39 }
 0x40b   : > { %9797 = vmatpush3.bf16.msra.mxu1 %v12025_v5  ;;  %9804 = vmatprep.mubr.msk.bf16.mxu1 %vm11119_vm0, %v11118_v44 }
 0x40c   : > { %9798 = vmatprep.subr.bf16.mxu1 %v11118_v44 }
 0x40f   : > { %9799 = vmatpush3.bf16.msra.mxu1 %v12023_v3 }
 0x410   : > { %9800 = vmatprep.subr.bf16.mxu1 %v11118_v44 }
 0x413   : > { %9801 = vmatpush3.bf16.msra.mxu1 %v12033_v17 }
 0x414   : > { %9802 = vmatprep.subr.bf16.mxu1 %v11118_v44 }
 0x417   : > { %9803 = vmatpush3.bf16.msra.mxu1 %v12030_v16 }
 0x418   : > { %9808 = vmatprep.subr.bf16.mxu1 %v11118_v44 }
 0x41a   : > { %9805 = vmatmul.mubr.msk.bf16.vlgmr.msra.gmra.mrb[144].mxu1 %vm2996_vm1, %v10804_v40 }
 0x41b   : > { %9824 = vmatprep.mubr.msk.bf16.mxu1 %vm11119_vm0, %v11118_v44  ;;  %9809 = vmatpush3.bf16.msra.mxu1 %v10810_v46 }
 0x41c   : > { %9810 = vmatprep.subr.bf16.mxu1 %v11118_v44 }
 0x41f   : > { %9811 = vmatpush3.bf16.msra.mxu1 %v10812_v49 }
 0x420   : > { %9812 = vmatprep.subr.bf16.mxu1 %v11118_v44 }
 0x423   : > { %9813 = vmatpush3.bf16.msra.mxu1 %v10814_v51 }
 0x424   : > { %9814 = vmatprep.subr.bf16.mxu1 %v11118_v44 }
 0x427   : > { %9815 = vmatpush3.bf16.msra.mxu1 %v10816_v54 }
 0x428   : > { %9816 = vmatprep.subr.bf16.mxu1 %v11118_v44 }
 0x42b   : > { %9817 = vmatpush3.bf16.msra.mxu1 %v10817_v56 }
 0x42c   : > { %9818 = vmatprep.subr.bf16.mxu1 %v11118_v44 }
 0x42f   : > { %9819 = vmatpush3.bf16.msra.mxu1 %v10818_v57 }
 0x430   : > { %9820 = vmatprep.subr.bf16.mxu1 %v11118_v44 }
 0x433   : > { %9821 = vmatpush3.bf16.msra.mxu1 %v10819_v48  ;;  %v10839_v48 = vld [vmem:[%s13363_s2 + $0x30] sm:$0xff]  }
 0x434   : > { %9822 = vmatprep.subr.bf16.mxu1 %v11118_v44 }
 0x437   : > { %9823 = vmatpush3.bf16.msra.mxu1 %v10820_v53 }
 0x438   : > { %9860 = vmatprep.subr.bf16.mxu1 %v11118_v44 }
 0x4bd   : > { %v3299_v55 = vpop.f32.mrb[24].mxu0 }
 0x4be   : > { %v9762_v58 = vpop.f32.mrb[25].mxu0 }
 0x4bf   : > { %v3302_v60 = vpop.f32.mrb[26].mxu0  ;;  %v10841_v58 = vld [vmem:[%s13334_s7 + $0x180] sm:$0xff]  }
 0x4c0   : > { %v9763_v61 = vpop.f32.mrb[27].mxu0 }
 0x4c1   : > { %v10842_v61 = vld [vmem:[%s13334_s7 + $0x188] sm:$0xff]  }
 0x4cd   : > { %v3210_v62 = vpop.f32.mrb[136].mxu1 }
 0x4ce   : > { %v12191_v63 = vadd.f32 %v3299_v55, %v3210_v62  ;;  %v9742_v0 = vpop.f32.mrb[137].mxu1  ;;  %v10843_v62 = vld [vmem:[%s13334_s7 + $0x190] sm:$0xff]  }
 0x4cf   : > { %v3213_v2 = vpop.f32.mrb[138].mxu1  ;;  %v10844_v0 = vld [vmem:[%s13334_s7 + $0x198] sm:$0xff]  }
 0x4d0   : > { %v12193_v6 = vadd.f32 %v3302_v60, %v3213_v2  ;;  %v9743_v8 = vpop.f32.mrb[139].mxu1  ;;  %v10845_v2 = vld [vmem:[%s13334_s7 + $0x1a0] sm:$0xff]  }
 0x4d1   : > { %v10847_v8 = vld [vmem:[%s13334_s7 + $0x1a8] sm:$0xff]  }
 0x4dd   : > { %v3351_v9 = vpop.f32.mrb[140].mxu1 }
 0x4de   : > { %v9774_v4 = vpop.f32.mrb[141].mxu1 }
 0x4df   : > { %v3354_v1 = vpop.f32.mrb[142].mxu1  ;;  %v10849_v4 = vld [vmem:[%s13334_s7 + $0x1b0] sm:$0xff]  }
 0x4e0   : > { %v3358_v7 = vpack.c.bf16 %v3354_v1, %v3351_v9  ;;  %v9775_v10 = vpop.f32.mrb[143].mxu1  ;;  %v10848_v9 = vld [vmem:[%s13334_s7 + $0x1c8] sm:$0xff]   ;;  %v10850_v1 = vld [vmem:[%s13334_s7 + $0x1d0] sm:$0xff]  }
 0x4e1   : > { %v10852_v10 = vld [vmem:[%s13334_s7 + $0x1d8] sm:$0xff]  }
 0x4e2   : > { %9793 = vmatmul.mubr.bf16.vlgmr.msra.gmra.mrb[28].mxu0 %v3358_v7  ;;  %v10851_v7 = vld [vmem:[%s13334_s7 + $0x1b8] sm:$0xff]  }
 0x4e3   : > { %9829 = vmatpush3.bf16.msra.mxu0 %v12025_v5  ;;  %9836 = vmatprep.mubr.msk.bf16.mxu0 %vm11119_vm0, %v11118_v44 }
 0x4e4   : > { %9830 = vmatprep.subr.bf16.mxu0 %v11118_v44 }
 0x4e7   : > { %9831 = vmatpush3.bf16.msra.mxu0 %v12023_v3 }
 0x4e8   : > { %9832 = vmatprep.subr.bf16.mxu0 %v11118_v44 }
 0x4eb   : > { %9833 = vmatpush3.bf16.msra.mxu0 %v12033_v17 }
 0x4ec   : > { %9834 = vmatprep.subr.bf16.mxu0 %v11118_v44 }
 0x4ed   : > { %v3512_v11 = vpop.f32.mrb[144].mxu1 }
 0x4ee   : > { %v9806_v12 = vpop.f32.mrb[145].mxu1 }
 0x4ef   : > { %9835 = vmatpush3.bf16.msra.mxu0 %v12030_v16  ;;  %v3515_v14 = vpop.f32.mrb[146].mxu1  ;;  %v10854_v12 = vld [vmem:[%s13334_s7 + $0x1e8] sm:$0xff]  }
 0x4f0   : > { %v3519_v15 = vpack.c.bf16 %v3515_v14, %v3512_v11  ;;  %9840 = vmatprep.subr.bf16.mxu0 %v11118_v44  ;;  %v9807_v19 = vpop.f32.mrb[147].mxu1  ;;  %v10853_v11 = vld [vmem:[%s13334_s7 + $0x1e0] sm:$0xff]   ;;  %v10856_v14 = vld [vmem:[%s13334_s7 + $0x1f8] sm:$0xff]  }
 0x4f2   : > { %9837 = vmatmul.mubr.msk.bf16.vlgmr.msra.gmra.mrb[32].mxu0 %vm2996_vm1, %v10821_v13  ;;  %9825 = vmatmul.mubr.bf16.vlgmr.msra.gmra.mrb[148].mxu1 %v3519_v15  ;;  %v10855_v13 = vld [vmem:[%s13334_s7 + $0x1f0] sm:$0xff]  }
 0x4f3   : > { %9861 = vmatpush3.bf16.msra.mxu1 %v12025_v5  ;;  %9868 = vmatprep.mubr.msk.bf16.mxu1 %vm11119_vm0, %v11118_v44 }
 0x4f4   : > { %9862 = vmatprep.subr.bf16.mxu1 %v11118_v44  ;;  %9841 = vmatpush3.bf16.msra.mxu0 %v10823_v18 }
 0x4f5   : > { %9842 = vmatprep.subr.bf16.mxu0 %v11118_v44  ;;  %9856 = vmatprep.mubr.msk.bf16.mxu0 %vm11119_vm0, %v11118_v44 }
 0x4f7   : > { %9863 = vmatpush3.bf16.msra.mxu1 %v12023_v3 }
 0x4f8   : > { %9864 = vmatprep.subr.bf16.mxu1 %v11118_v44  ;;  %9843 = vmatpush3.bf16.msra.mxu0 %v10824_v20 }
 0x4f9   : > { %9844 = vmatprep.subr.bf16.mxu0 %v11118_v44 }
 0x4fb   : > { %9865 = vmatpush3.bf16.msra.mxu1 %v12033_v17 }
 0x4fc   : > { %9866 = vmatprep.subr.bf16.mxu1 %v11118_v44  ;;  %9845 = vmatpush3.bf16.msra.mxu0 %v10825_v21 }
 0x4fd   : > { %9846 = vmatprep.subr.bf16.mxu0 %v11118_v44 }
 0x4ff   : > { %9867 = vmatpush3.bf16.msra.mxu1 %v12030_v16 }
 0x500   : > { %9872 = vmatprep.subr.bf16.mxu1 %v11118_v44  ;;  %9847 = vmatpush3.bf16.msra.mxu0 %v10826_v23 }
 0x501   : > { %9848 = vmatprep.subr.bf16.mxu0 %v11118_v44 }
 0x502   : > { %9869 = vmatmul.mubr.msk.bf16.vlgmr.msra.gmra.mrb[152].mxu1 %vm2996_vm1, %v10822_v22 }
 0x503   : > { %9888 = vmatprep.mubr.msk.bf16.mxu1 %vm11119_vm0, %v11118_v44  ;;  %9873 = vmatpush3.bf16.msra.mxu1 %v10828_v59 }
 0x504   : > { %9849 = vmatpush3.bf16.msra.mxu0 %v10827_v24  ;;  %9874 = vmatprep.subr.bf16.mxu1 %v11118_v44 }
 0x505   : > { %9850 = vmatprep.subr.bf16.mxu0 %v11118_v44 }
 0x507   : > { %9875 = vmatpush3.bf16.msra.mxu1 %v10830_v26 }
 0x508   : > { %9851 = vmatpush3.bf16.msra.mxu0 %v10829_v25  ;;  %9876 = vmatprep.subr.bf16.mxu1 %v11118_v44 }
 0x509   : > { %9852 = vmatprep.subr.bf16.mxu0 %v11118_v44 }
 0x50b   : > { %9877 = vmatpush3.bf16.msra.mxu1 %v10832_v28 }
 0x50c   : > { %9853 = vmatpush3.bf16.msra.mxu0 %v10831_v27  ;;  %9878 = vmatprep.subr.bf16.mxu1 %v11118_v44 }
 0x50d   : > { %9854 = vmatprep.subr.bf16.mxu0 %v11118_v44 }
 0x50f   : > { %9879 = vmatpush3.bf16.msra.mxu1 %v10834_v30 }
 0x510   : > { %9855 = vmatpush3.bf16.msra.mxu0 %v10833_v29  ;;  %9880 = vmatprep.subr.bf16.mxu1 %v11118_v44 }
 0x511   : > { %9892 = vmatprep.subr.bf16.mxu0 %v11118_v44 }
 0x513   : > { %9881 = vmatpush3.bf16.msra.mxu1 %v10835_v31 }
 0x514   : > { %9882 = vmatprep.subr.bf16.mxu1 %v11118_v44 }
 0x517   : > { %9883 = vmatpush3.bf16.msra.mxu1 %v10836_v32 }
 0x518   : > { %9884 = vmatprep.subr.bf16.mxu1 %v11118_v44 }
 0x51b   : > { %9885 = vmatpush3.bf16.msra.mxu1 %v10837_v33 }
 0x51c   : > { %9886 = vmatprep.subr.bf16.mxu1 %v11118_v44 }
 0x51f   : > { %9887 = vmatpush3.bf16.msra.mxu1 %v10838_v34 }
 0x520   : > { %9924 = vmatprep.subr.bf16.mxu1 %v11118_v44 }
 0x5b5   : > { %v3458_v35 = vpop.f32.mrb[28].mxu0 }
 0x5b6   : > { %v3465_v36 = vadd.f32 %v3458_v35, %v12191_v63  ;;  %v9794_v37 = vpop.f32.mrb[29].mxu0  ;;  %v10840_v63 = vld [vmem:[%s13363_s2 + $0x38] sm:$0xff]   ;;  %v10857_v35 = vld [vmem:[%s13363_s2 + $0x40] sm:$0xff]  }
 0x5b7   : > { %v3461_v38 = vpop.f32.mrb[30].mxu0 }
 0x5b8   : > { %v3466_v39 = vadd.f32 %v3461_v38, %v12193_v6  ;;  %v9795_v40 = vpop.f32.mrb[31].mxu0  ;;  %v10846_v6 = vld [vmem:[%s13334_s7 + $0x1c0] sm:$0xff]   ;;  %v10861_v38 = vld [vmem:[%s13334_s7 + $0x218] sm:$0xff]  }
 0x5b9   : > { %v10863_v40 = vld [vmem:[%s13334_s7 + $0x228] sm:$0xff]  }
 0x5c5   : > { %v3673_v41 = vpop.f32.mrb[32].mxu0  ;;  %v3619_v42 = vpop.f32.mrb[148].mxu1 }
 0x5c6   : > { %v12293_v43 = vadd.f32 %v3619_v42, %v3465_v36  ;;  %v9838_v45 = vpop.f32.mrb[33].mxu0  ;;  %v9826_v46 = vpop.f32.mrb[149].mxu1  ;;  %v10858_v36 = vld [vmem:[%s13334_s7 + $0x200] sm:$0xff]   ;;  %v10865_v42 = vld [vmem:[%s13334_s7 + $0x238] sm:$0xff]  }
 0x5c7   : > { %v3676_v47 = vpop.f32.mrb[34].mxu0  ;;  %v3622_v49 = vpop.f32.mrb[150].mxu1 }
 0x5c8   : > { %v3680_v50 = vpack.c.bf16 %v3676_v47, %v3673_v41  ;;  %v12295_v51 = vadd.f32 %v3622_v49, %v3466_v39  ;;  %v9839_v52 = vpop.f32.mrb[35].mxu0  ;;  %v9827_v54 = vpop.f32.mrb[151].mxu1  ;;  %v10862_v39 = vld [vmem:[%s13334_s7 + $0x220] sm:$0xff]   ;;  %v10864_v41 = vld [vmem:[%s13334_s7 + $0x230] sm:$0xff]  }
 0x5ca   : > { %9857 = vmatmul.mubr.bf16.vlgmr.msra.gmra.mrb[36].mxu0 %v3680_v50 }
 0x5cb   : > { %9893 = vmatpush3.bf16.msra.mxu0 %v12025_v5  ;;  %9900 = vmatprep.mubr.msk.bf16.mxu0 %vm11119_vm0, %v11118_v44 }
 0x5cc   : > { %9894 = vmatprep.subr.bf16.mxu0 %v11118_v44 }
 0x5cf   : > { %9895 = vmatpush3.bf16.msra.mxu0 %v12023_v3 }
 0x5d0   : > { %9896 = vmatprep.subr.bf16.mxu0 %v11118_v44 }
 0x5d3   : > { %9897 = vmatpush3.bf16.msra.mxu0 %v12033_v17 }
 0x5d4   : > { %9898 = vmatprep.subr.bf16.mxu0 %v11118_v44 }
 0x5d5   : > { %v3834_v56 = vpop.f32.mrb[152].mxu1 }
 0x5d6   : > { %v9870_v57 = vpop.f32.mrb[153].mxu1 }
 0x5d7   : > { %9899 = vmatpush3.bf16.msra.mxu0 %v12030_v16  ;;  %v3837_v53 = vpop.f32.mrb[154].mxu1 }
 0x5d8   : > { %v3841_v55 = vpack.c.bf16 %v3837_v53, %v3834_v56  ;;  %9904 = vmatprep.subr.bf16.mxu0 %v11118_v44  ;;  %v9871_v60 = vpop.f32.mrb[155].mxu1 }
 0x5da   : > { %9901 = vmatmul.mubr.msk.bf16.vlgmr.msra.gmra.mrb[40].mxu0 %vm2996_vm1, %v10839_v48  ;;  %9889 = vmatmul.mubr.bf16.vlgmr.msra.gmra.mrb[156].mxu1 %v3841_v55 }
 0x5db   : > { %9925 = vmatpush3.bf16.msra.mxu1 %v12025_v5  ;;  %9932 = vmatprep.mubr.msk.bf16.mxu1 %vm11119_vm0, %v11118_v44 }
 0x5dc   : > { %9926 = vmatprep.subr.bf16.mxu1 %v11118_v44  ;;  %9905 = vmatpush3.bf16.msra.mxu0 %v10841_v58 }
 0x5dd   : > { %9906 = vmatprep.subr.bf16.mxu0 %v11118_v44  ;;  %9920 = vmatprep.mubr.msk.bf16.mxu0 %vm11119_vm0, %v11118_v44 }
 0x5df   : > { %9927 = vmatpush3.bf16.msra.mxu1 %v12023_v3 }
 0x5e0   : > { %9928 = vmatprep.subr.bf16.mxu1 %v11118_v44  ;;  %9907 = vmatpush3.bf16.msra.mxu0 %v10842_v61 }
 0x5e1   : > { %9908 = vmatprep.subr.bf16.mxu0 %v11118_v44 }
 0x5e3   : > { %9929 = vmatpush3.bf16.msra.mxu1 %v12033_v17 }
 0x5e4   : > { %9930 = vmatprep.subr.bf16.mxu1 %v11118_v44  ;;  %9909 = vmatpush3.bf16.msra.mxu0 %v10843_v62  ;;  %v10868_v62 = vld [vmem:[%s13336_s9] sm:$0xff]  }
 0x5e5   : > { %9910 = vmatprep.subr.bf16.mxu0 %v11118_v44 }
 0x5e7   : > { %9931 = vmatpush3.bf16.msra.mxu1 %v12030_v16 }
 0x5e8   : > { %9936 = vmatprep.subr.bf16.mxu1 %v11118_v44  ;;  %9911 = vmatpush3.bf16.msra.mxu0 %v10844_v0  ;;  %v10871_v0 = vld [vmem:[%s13336_s9 + $0x10] sm:$0xff]  }
 0x5e9   : > { %9912 = vmatprep.subr.bf16.mxu0 %v11118_v44 }
 0x5ea   : > { %9933 = vmatmul.mubr.msk.bf16.vlgmr.msra.gmra.mrb[160].mxu1 %vm2996_vm1, %v10840_v63  ;;  %v10869_v63 = vld [vmem:[%s13336_s9 + $0x8] sm:$0xff]  }
 0x5eb   : > { %9952 = vmatprep.mubr.msk.bf16.mxu1 %vm11119_vm0, %v11118_v44  ;;  %9937 = vmatpush3.bf16.msra.mxu1 %v10846_v6  ;;  %v10875_v6 = vld [vmem:[%s13336_s9 + $0x20] sm:$0xff]  }
 0x5ec   : > { %9913 = vmatpush3.bf16.msra.mxu0 %v10845_v2  ;;  %9938 = vmatprep.subr.bf16.mxu1 %v11118_v44  ;;  %v10873_v2 = vld [vmem:[%s13336_s9 + $0x18] sm:$0xff]  }
 0x5ed   : > { %9914 = vmatprep.subr.bf16.mxu0 %v11118_v44 }
 0x5ef   : > { %9939 = vmatpush3.bf16.msra.mxu1 %v10848_v9  ;;  %v10879_v9 = vld [vmem:[%s13336_s9 + $0x30] sm:$0xff]  }
 0x5f0   : > { %9915 = vmatpush3.bf16.msra.mxu0 %v10847_v8  ;;  %9940 = vmatprep.subr.bf16.mxu1 %v11118_v44  ;;  %v10877_v8 = vld [vmem:[%s13336_s9 + $0x28] sm:$0xff]  }
 0x5f1   : > { %9916 = vmatprep.subr.bf16.mxu0 %v11118_v44 }
 0x5f3   : > { %9941 = vmatpush3.bf16.msra.mxu1 %v10850_v1  ;;  %v8194_v1 = vld [vmem:[%s13335_s8] ss:$0 sm:$0xff] }
 0x5f4   : > { %9917 = vmatpush3.bf16.msra.mxu0 %v10849_v4  ;;  %9942 = vmatprep.subr.bf16.mxu1 %v11118_v44 }
 0x5f5   : > { %9918 = vmatprep.subr.bf16.mxu0 %v11118_v44 }
 0x5f7   : > { %9943 = vmatpush3.bf16.msra.mxu1 %v10852_v10 }
 0x5f8   : > { %9919 = vmatpush3.bf16.msra.mxu0 %v10851_v7  ;;  %9944 = vmatprep.subr.bf16.mxu1 %v11118_v44 }
 0x5f9   : > { %9956 = vmatprep.subr.bf16.mxu0 %v11118_v44 }
 0x5fb   : > { %9945 = vmatpush3.bf16.msra.mxu1 %v10853_v11 }
 0x5fc   : > { %9946 = vmatprep.subr.bf16.mxu1 %v11118_v44 }
 0x5ff   : > { %9947 = vmatpush3.bf16.msra.mxu1 %v10854_v12 }
 0x600   : > { %9948 = vmatprep.subr.bf16.mxu1 %v11118_v44 }
 0x603   : > { %9949 = vmatpush3.bf16.msra.mxu1 %v10855_v13 }
 0x604   : > { %9950 = vmatprep.subr.bf16.mxu1 %v11118_v44 }
 0x607   : > { %9951 = vmatpush3.bf16.msra.mxu1 %v10856_v14 }
 0x608   : > { %9988 = vmatprep.subr.bf16.mxu1 %v11118_v44 }
 0x69d   : > { %v3780_v15 = vpop.f32.mrb[36].mxu0 }
 0x69e   : > { %v3787_v18 = vadd.f32 %v3780_v15, %v12293_v43  ;;  %v9858_v19 = vpop.f32.mrb[37].mxu0 }
 0x69f   : > { %v3783_v20 = vpop.f32.mrb[38].mxu0 }
 0x6a0   : > { %v3788_v21 = vadd.f32 %v3783_v20, %v12295_v51  ;;  %v9859_v22 = vpop.f32.mrb[39].mxu0 }
 0x6a1   : > { %v10867_v22 = vld [vmem:[%s13364_s3 + $0x8] sm:$0xff]  }
 0x6ad   : > { %v3995_v23 = vpop.f32.mrb[40].mxu0  ;;  %v3941_v24 = vpop.f32.mrb[156].mxu1 }
 0x6ae   : > { %v3948_v59 = vadd.f32 %v3941_v24, %v3787_v18  ;;  %v9902_v25 = vpop.f32.mrb[41].mxu0  ;;  %v9890_v26 = vpop.f32.mrb[157].mxu1  ;;  %v10872_v24 = vld [vmem:[%s13336_s9 + $0x48] sm:$0xff]  }
 0x6af   : > { %v3998_v27 = vpop.f32.mrb[42].mxu0  ;;  %v3944_v28 = vpop.f32.mrb[158].mxu1  ;;  %v10876_v25 = vld [vmem:[%s13336_s9 + $0x58] sm:$0xff]   ;;  %v10878_v26 = vld [vmem:[%s13336_s9 + $0x60] sm:$0xff]  }
 0x6b0   : > { %v4002_v29 = vpack.c.bf16 %v3998_v27, %v3995_v23  ;;  %v3949_v30 = vadd.f32 %v3944_v28, %v3788_v21  ;;  %v9903_v31 = vpop.f32.mrb[43].mxu0  ;;  %v9891_v32 = vpop.f32.mrb[159].mxu1  ;;  %v10866_v21 = vld [vmem:[%s13364_s3] sm:$0xff]   ;;  %v10880_v27 = vld [vmem:[%s13336_s9 + $0x68] sm:$0xff]   ;;  %v10881_v28 = vld [vmem:[%s13336_s9 + $0x38] sm:$0xff]  }
 0x6b1   : > { %v10870_v23 = vld [vmem:[%s13336_s9 + $0x40] sm:$0xff]  }
 0x6b2   : > { %9921 = vmatmul.mubr.bf16.vlgmr.msra.gmra.mrb[44].mxu0 %v4002_v29  ;;  %v10882_v29 = vld [vmem:[%s13336_s9 + $0x70] sm:$0xff]  }
 0x6b3   : > { %9957 = vmatpush3.bf16.msra.mxu0 %v12025_v5  ;;  %9964 = vmatprep.mubr.msk.bf16.mxu0 %vm11119_vm0, %v11118_v44 }
 0x6b4   : > { %9958 = vmatprep.subr.bf16.mxu0 %v11118_v44 }
 0x6b7   : > { %9959 = vmatpush3.bf16.msra.mxu0 %v12023_v3 }
 0x6b8   : > { %9960 = vmatprep.subr.bf16.mxu0 %v11118_v44 }
 0x6bb   : > { %9961 = vmatpush3.bf16.msra.mxu0 %v12033_v17  ;;  %v10859_v17 = vld [vmem:[%s13334_s7 + $0x208] sm:$0xff]  }
 0x6bc   : > { %9962 = vmatprep.subr.bf16.mxu0 %v11118_v44 }
 0x6bd   : > { %v4156_v33 = vpop.f32.mrb[160].mxu1 }
 0x6be   : > { %v9934_v34 = vpop.f32.mrb[161].mxu1 }
 0x6bf   : > { %9963 = vmatpush3.bf16.msra.mxu0 %v12030_v16  ;;  %v4159_v5 = vpop.f32.mrb[162].mxu1  ;;  %v10860_v16 = vld [vmem:[%s13334_s7 + $0x210] sm:$0xff]  }
 0x6c0   : > { %v4163_v3 = vpack.c.bf16 %v4159_v5, %v4156_v33  ;;  %9968 = vmatprep.subr.bf16.mxu0 %v11118_v44  ;;  %v9935_v37 = vpop.f32.mrb[163].mxu1 }
 0x6c2   : > { %9965 = vmatmul.mubr.msk.bf16.vlgmr.msra.gmra.mrb[48].mxu0 %vm2996_vm1, %v10857_v35  ;;  %9953 = vmatmul.mubr.bf16.vlgmr.msra.gmra.mrb[164].mxu1 %v4163_v3  ;;  %v10884_v3 = vld [vmem:[%s13364_s3 + $0x18] sm:$0xff]  }
 0x6c3   : > { %9969 = vmatpush3.bf16.msra.mxu0 %v10858_v36  ;;  %9984 = vmatprep.mubr.msk.bf16.mxu0 %vm11119_vm0, %v11118_v44 }
 0x6c4   : > { %9970 = vmatprep.subr.bf16.mxu0 %v11118_v44  ;;  %9990 = vmatprep.mubr.msk.bf16.mxu1 %vm11119_vm0, %v11118_v44 }
 0x6c7   : > { %9971 = vmatpush3.bf16.msra.mxu0 %v10859_v17 }
 0x6c8   : > { %9972 = vmatprep.subr.bf16.mxu0 %v11118_v44 }
 0x6cb   : > { %9973 = vmatpush3.bf16.msra.mxu0 %v10860_v16 }
 0x6cc   : > { %9974 = vmatprep.subr.bf16.mxu0 %v11118_v44 }
 0x6cf   : > { %9975 = vmatpush3.bf16.msra.mxu0 %v10861_v38  ;;  %v10886_v38 = vld [vmem:[%s13336_s9 + $0xc0] sm:$0xff]  }
 0x6d0   : > { %9976 = vmatprep.subr.bf16.mxu0 %v11118_v44 }
 0x6d3   : > { %9977 = vmatpush3.bf16.msra.mxu0 %v10862_v39  ;;  %v10887_v39 = vld [vmem:[%s13336_s9 + $0xc8] sm:$0xff]  }
 0x6d4   : > { %9978 = vmatprep.subr.bf16.mxu0 %v11118_v44 }
 0x6d7   : > { %9979 = vmatpush3.bf16.msra.mxu0 %v10863_v40  ;;  %v10885_v40 = vld [vmem:[%s13364_s3 + $0x10] sm:$0xff]  }
 0x6d8   : > { %9980 = vmatprep.subr.bf16.mxu0 %v11118_v44 }
 0x6db   : > { %9981 = vmatpush3.bf16.msra.mxu0 %v10864_v41  ;;  %v10888_v41 = vld [vmem:[%s13336_s9 + $0x80] sm:$0xff]  }
 0x6dc   : > { %9982 = vmatprep.subr.bf16.mxu0 %v11118_v44 }
 0x6df   : > { %9983 = vmatpush3.bf16.msra.mxu0 %v10865_v42  ;;  %v10889_v42 = vld [vmem:[%s13336_s9 + $0xd0] sm:$0xff]  }
 0x6e0   : > { %10020 = vmatprep.subr.bf16.mxu0 %v11118_v44 }
 0x785   : > { %v4102_v43 = vpop.f32.mrb[44].mxu0 }
 0x786   : > { %v4109_v45 = vadd.f32 %v4102_v43, %v3948_v59  ;;  %v9922_v46 = vpop.f32.mrb[45].mxu0  ;;  %v10874_v59 = vld [vmem:[%s13336_s9 + $0x50] sm:$0xff]   ;;  %v10890_v43 = vld [vmem:[%s13336_s9 + $0x88] sm:$0xff]  }
 0x787   : > { %v4105_v47 = vpop.f32.mrb[46].mxu0  ;;  %v10892_v46 = vld [vmem:[%s13336_s9 + $0x90] sm:$0xff]  }
 0x788   : > { %v4110_v49 = vadd.f32 %v4105_v47, %v3949_v30  ;;  %v9923_v50 = vpop.f32.mrb[47].mxu0  ;;  %v10883_v30 = vld [vmem:[%s13336_s9 + $0x78] sm:$0xff]   ;;  %v10893_v47 = vld [vmem:[%s13336_s9 + $0xe0] sm:$0xff]  }
 0x789   : > { %v10895_v50 = vld [vmem:[%s13336_s9 + $0xe8] sm:$0xff]  }
 0x795   : > { %v4317_v51 = vpop.f32.mrb[48].mxu0  ;;  %v4263_v52 = vpop.f32.mrb[164].mxu1 }
 0x796   : > { %v4270_v54 = vadd.f32 %v4263_v52, %v4109_v45  ;;  %v9966_v56 = vpop.f32.mrb[49].mxu0  ;;  %v9954_v57 = vpop.f32.mrb[165].mxu1  ;;  %v10891_v45 = vld [vmem:[%s13336_s9 + $0xd8] sm:$0xff]   ;;  %v10897_v52 = vld [vmem:[%s13336_s9 + $0xf0] sm:$0xff]  }
 0x797   : > { %v4320_v48 = vpop.f32.mrb[50].mxu0  ;;  %v4266_v53 = vpop.f32.mrb[166].mxu1  ;;  %v10899_v56 = vld [vmem:[%s13336_s9 + $0xf8] sm:$0xff]   ;;  %v10900_v57 = vld [vmem:[%s13336_s9 + $0xb0] sm:$0xff]  }
 0x798   : > { %v4324_v55 = vpack.c.bf16 %v4320_v48, %v4317_v51  ;;  %v4271_v58 = vadd.f32 %v4266_v53, %v4110_v49  ;;  %v9967_v60 = vpop.f32.mrb[51].mxu0  ;;  %v9955_v61 = vpop.f32.mrb[167].mxu1  ;;  %v10894_v49 = vld [vmem:[%s13336_s9 + $0x98] sm:$0xff]   ;;  %v10896_v51 = vld [vmem:[%s13336_s9 + $0xa0] sm:$0xff]  }
 0x799   : > { %v10901_v48 = vld [vmem:[%s13336_s9 + $0xb8] sm:$0xff]  }
 0x79a   : > { %9985 = vmatmul.mubr.bf16.vlgmr.msra.gmra.mrb[52].mxu0 %v4324_v55 }
 0x79b   : > { %10036 = vmatprep.mubr.msk.bf16.mxu0 %vm11119_vm0, %v11118_v44  ;;  %10021 = vmatpush3.bf16.msra.mxu0 %v10868_v62 }
 0x79c   : > { %10022 = vmatprep.subr.bf16.mxu0 %v11118_v44 }
 0x79f   : > { %10023 = vmatpush3.bf16.msra.mxu0 %v10869_v63 }
 0x7a0   : > { %10024 = vmatprep.subr.bf16.mxu0 %v11118_v44 }
 0x7a3   : > { %10025 = vmatpush3.bf16.msra.mxu0 %v10871_v0 }
 0x7a4   : > { %10026 = vmatprep.subr.bf16.mxu0 %v11118_v44 }
 0x7a7   : > { %10027 = vmatpush3.bf16.msra.mxu0 %v10873_v2 }
 0x7a8   : > { %10028 = vmatprep.subr.bf16.mxu0 %v11118_v44 }
 0x7ab   : > { %10029 = vmatpush3.bf16.msra.mxu0 %v10875_v6 }
 0x7ac   : > { %10030 = vmatprep.subr.bf16.mxu0 %v11118_v44 }
 0x7af   : > { %10031 = vmatpush3.bf16.msra.mxu0 %v10877_v8 }
 0x7b0   : > { %10032 = vmatprep.subr.bf16.mxu0 %v11118_v44 }
 0x7b3   : > { %10033 = vmatpush3.bf16.msra.mxu0 %v10879_v9 }
 0x7b4   : > { %10034 = vmatprep.subr.bf16.mxu0 %v11118_v44 }
 0x7b7   : > { %10035 = vmatpush3.bf16.msra.mxu0 %v10881_v28  ;;  %v10913_v28 = vld [vmem:[%s13336_s9 + $0x168] sm:$0xff]  }
 0x7b8   : > { %10066 = vmatprep.subr.bf16.mxu0 %v11118_v44 }
 0x86d   : > { %v4424_v4 = vpop.f32.mrb[52].mxu0 }
 0x86e   : > { %v4431_v7 = vadd.f32 %v4424_v4, %v4270_v54  ;;  %v9986_v10 = vpop.f32.mrb[53].mxu0  ;;  %v10898_v54 = vld [vmem:[%s13336_s9 + $0xa8] sm:$0xff]  }
 0x86f   : > { %v4427_v11 = vpop.f32.mrb[54].mxu0 }
 0x870   : > { %v4440_v12 = vadd.f32 %v8194_v1, %v4431_v7  ;;  %v4432_v13 = vadd.f32 %v4427_v11, %v4271_v58  ;;  %v9987_v14 = vpop.f32.mrb[55].mxu0 }
 0x872   : > { %v4441_v15 = vadd.f32 %v8194_v1, %v4432_v13  ;;  %v4442_v18 = vmax.f32 %v4440_v12, 0.0  ;;  %v10902_v12 = vld [vmem:[%s13364_s3 + $0x28] sm:$0xff]  }
 0x874   : > { %v4443_v19 = vmax.f32 %v4441_v15, 0.0 }
 0x876   : > { %v12478_v20 = vpack.c.bf16 %v4443_v19, %v4442_v18  ;;  %v10904_v18 = vld [vmem:[%s13336_s9 + $0x140] sm:$0xff]   ;;  %v10905_v19 = vld [vmem:[%s13336_s9 + $0x148] sm:$0xff]  }
 0x878   : > { %9989 = vmatpush3.bf16.msra.mxu1 %v12478_v20 }
 0x879   : > { %9994 = vmatprep.subr.bf16.mxu1 %v11118_v44 }
 0x87b   : > { %9991 = vmatmul.mubr.msk.bf16.vlgmr.msra.gmra.mrb[168].mxu1 %vm4452_vm2, %v10866_v21  ;;  %v10903_v21 = vld [vmem:[%s13364_s3 + $0x20] sm:$0xff]  }
 0x87c   : > { %9995 = vmatpush3.bf16.msra.mxu1 %v12478_v20  ;;  %9996 = vmatprep.mubr.msk.bf16.mxu1 %vm11119_vm0, %v11118_v44 }
 0x87d   : > { %10000 = vmatprep.subr.bf16.mxu1 %v11118_v44 }
 0x883   : > { %9997 = vmatmul.mubr.msk.bf16.vlgmr.msra.gmra.mrb[172].mxu1 %vm4452_vm2, %v10867_v22  ;;  %v10906_v22 = vld [vmem:[%s13336_s9 + $0x100] sm:$0xff]  }
 0x884   : > { %10001 = vmatpush3.bf16.msra.mxu1 %v10870_v23  ;;  %10016 = vmatprep.mubr.msk.bf16.mxu1 %vm11119_vm0, %v11118_v44  ;;  %v10907_v23 = vld [vmem:[%s13336_s9 + $0x150] sm:$0xff]  }
 0x885   : > { %10002 = vmatprep.subr.bf16.mxu1 %v11118_v44 }
 0x888   : > { %10003 = vmatpush3.bf16.msra.mxu1 %v10872_v24  ;;  %v10908_v24 = vld [vmem:[%s13336_s9 + $0x108] sm:$0xff]  }
 0x889   : > { %10004 = vmatprep.subr.bf16.mxu1 %v11118_v44 }
 0x88c   : > { %10005 = vmatpush3.bf16.msra.mxu1 %v10874_v59  ;;  %v10909_v59 = vld [vmem:[%s13336_s9 + $0x158] sm:$0xff]  }
 0x88d   : > { %10006 = vmatprep.subr.bf16.mxu1 %v11118_v44 }
 0x890   : > { %10007 = vmatpush3.bf16.msra.mxu1 %v10876_v25  ;;  %v10910_v25 = vld [vmem:[%s13336_s9 + $0x110] sm:$0xff]  }
 0x891   : > { %10008 = vmatprep.subr.bf16.mxu1 %v11118_v44 }
 0x894   : > { %10009 = vmatpush3.bf16.msra.mxu1 %v10878_v26  ;;  %v10911_v26 = vld [vmem:[%s13336_s9 + $0x160] sm:$0xff]  }
 0x895   : > { %10010 = vmatprep.subr.bf16.mxu1 %v11118_v44 }
 0x898   : > { %10011 = vmatpush3.bf16.msra.mxu1 %v10880_v27  ;;  %v10912_v27 = vld [vmem:[%s13336_s9 + $0x118] sm:$0xff]  }
 0x899   : > { %10012 = vmatprep.subr.bf16.mxu1 %v11118_v44 }
 0x89c   : > { %10013 = vmatpush3.bf16.msra.mxu1 %v10882_v29  ;;  %v10914_v29 = vld [vmem:[%s13336_s9 + $0x120] sm:$0xff]  }
 0x89d   : > { %10014 = vmatprep.subr.bf16.mxu1 %v11118_v44 }
 0x8a0   : > { %10015 = vmatpush3.bf16.msra.mxu1 %v10883_v30  ;;  %v10915_v30 = vld [vmem:[%s13336_s9 + $0x170] sm:$0xff]  }
 0x8a1   : > { %10040 = vmatprep.subr.bf16.mxu1 %v11118_v44 }
 0x94e   : > { %v4490_v31 = vpop.f32.mrb[168].mxu1 }
 0x94f   : > { %v9992_v32 = vpop.f32.mrb[169].mxu1 }
 0x950   : > { %v4493_v33 = vpop.f32.mrb[170].mxu1  ;;  %v10917_v32 = vld [vmem:[%s13336_s9 + $0x178] sm:$0xff]  }
 0x951   : > { %v4497_v34 = vpack.c.bf16 %v4493_v33, %v4490_v31  ;;  %v9993_v35 = vpop.f32.mrb[171].mxu1  ;;  %v10916_v31 = vld [vmem:[%s13336_s9 + $0x128] sm:$0xff]   ;;  %v10918_v33 = vld [vmem:[%s13336_s9 + $0x130] sm:$0xff]  }
 0x953   : > { %10037 = vmatmul.mubr.bf16.vlgmr.msra.gmra.mrb[56].mxu0 %v4497_v34  ;;  %v10919_v34 = vld [vmem:[%s13336_s9 + $0x138] sm:$0xff]  }
 0x954   : > { %10067 = vmatpush3.bf16.msra.mxu0 %v12478_v20  ;;  %10068 = vmatprep.mubr.msk.bf16.mxu0 %vm11119_vm0, %v11118_v44 }
 0x955   : > { %10072 = vmatprep.subr.bf16.mxu0 %v11118_v44 }
 0x956   : > { %v4559_v5 = vpop.f32.mrb[172].mxu1 }
 0x957   : > { %v9998_v36 = vpop.f32.mrb[173].mxu1 }
 0x958   : > { %v4562_v37 = vpop.f32.mrb[174].mxu1 }
 0x959   : > { %v4566_v17 = vpack.c.bf16 %v4562_v37, %v4559_v5  ;;  %v9999_v16 = vpop.f32.mrb[175].mxu1 }
 0x95b   : > { %10017 = vmatmul.mubr.bf16.vlgmr.msra.gmra.mrb[176].mxu1 %v4566_v17  ;;  %10069 = vmatmul.mubr.msk.bf16.vlgmr.msra.gmra.mrb[60].mxu0 %vm4452_vm2, %v10884_v3 }
 0x95c   : > { %10041 = vmatpush3.bf16.msra.mxu1 %v12478_v20  ;;  %10042 = vmatprep.mubr.msk.bf16.mxu1 %vm11119_vm0, %v11118_v44 }
 0x95d   : > { %10073 = vmatpush3.bf16.msra.mxu0 %v10886_v38  ;;  %10046 = vmatprep.subr.bf16.mxu1 %v11118_v44 }
 0x95e   : > { %10074 = vmatprep.subr.bf16.mxu0 %v11118_v44  ;;  %10088 = vmatprep.mubr.msk.bf16.mxu0 %vm11119_vm0, %v11118_v44 }
 0x961   : > { %10075 = vmatpush3.bf16.msra.mxu0 %v10887_v39 }
 0x962   : > { %10076 = vmatprep.subr.bf16.mxu0 %v11118_v44 }
 0x963   : > { %10043 = vmatmul.mubr.msk.bf16.vlgmr.msra.gmra.mrb[180].mxu1 %vm4452_vm2, %v10885_v40 }
 0x964   : > { %10047 = vmatpush3.bf16.msra.mxu1 %v10888_v41  ;;  %10062 = vmatprep.mubr.msk.bf16.mxu1 %vm11119_vm0, %v11118_v44 }
 0x965   : > { %10077 = vmatpush3.bf16.msra.mxu0 %v10889_v42  ;;  %10048 = vmatprep.subr.bf16.mxu1 %v11118_v44 }
 0x966   : > { %10078 = vmatprep.subr.bf16.mxu0 %v11118_v44 }
 0x968   : > { %10049 = vmatpush3.bf16.msra.mxu1 %v10890_v43 }
 0x969   : > { %10079 = vmatpush3.bf16.msra.mxu0 %v10891_v45  ;;  %10050 = vmatprep.subr.bf16.mxu1 %v11118_v44 }
 0x96a   : > { %10080 = vmatprep.subr.bf16.mxu0 %v11118_v44 }
 0x96c   : > { %10051 = vmatpush3.bf16.msra.mxu1 %v10892_v46 }
 0x96d   : > { %10081 = vmatpush3.bf16.msra.mxu0 %v10893_v47  ;;  %10052 = vmatprep.subr.bf16.mxu1 %v11118_v44 }
 0x96e   : > { %10082 = vmatprep.subr.bf16.mxu0 %v11118_v44 }
 0x970   : > { %10053 = vmatpush3.bf16.msra.mxu1 %v10894_v49 }
 0x971   : > { %10083 = vmatpush3.bf16.msra.mxu0 %v10895_v50  ;;  %10054 = vmatprep.subr.bf16.mxu1 %v11118_v44 }
 0x972   : > { %10084 = vmatprep.subr.bf16.mxu0 %v11118_v44 }
 0x974   : > { %10055 = vmatpush3.bf16.msra.mxu1 %v10896_v51 }
 0x975   : > { %10085 = vmatpush3.bf16.msra.mxu0 %v10897_v52  ;;  %10056 = vmatprep.subr.bf16.mxu1 %v11118_v44  ;;  %v10921_v52 = vld [vmem:[%s13364_s3 + $0x38] sm:$0xff]  }
 0x976   : > { %10086 = vmatprep.subr.bf16.mxu0 %v11118_v44 }
 0x978   : > { %10057 = vmatpush3.bf16.msra.mxu1 %v10898_v54 }
 0x979   : > { %10087 = vmatpush3.bf16.msra.mxu0 %v10899_v56  ;;  %10058 = vmatprep.subr.bf16.mxu1 %v11118_v44 }
 0x97a   : > { %10118 = vmatprep.subr.bf16.mxu0 %v11118_v44 }
 0x97c   : > { %10059 = vmatpush3.bf16.msra.mxu1 %v10900_v57 }
 0x97d   : > { %10060 = vmatprep.subr.bf16.mxu1 %v11118_v44 }
 0x980   : > { %10061 = vmatpush3.bf16.msra.mxu1 %v10901_v48  ;;  %v10923_v48 = vld [vmem:[%s13336_s9 + $0x1c0] sm:$0xff]  }
 0x981   : > { %10092 = vmatprep.subr.bf16.mxu1 %v11118_v44 }
 0xa26   : > { %v4755_v53 = vpop.f32.mrb[56].mxu0 }
 0xa27   : > { %v10038_v55 = vpop.f32.mrb[57].mxu0 }
 0xa28   : > { %v4758_v58 = vpop.f32.mrb[58].mxu0  ;;  %v10920_v55 = vld [vmem:[%s13364_s3 + $0x30] sm:$0xff]  }
 0xa29   : > { %v10039_v60 = vpop.f32.mrb[59].mxu0 }
 0xa2a   : > { %v10927_v60 = vld [vmem:[%s13336_s9 + $0x1d0] sm:$0xff]  }
 0xa2e   : > { %v4666_v61 = vpop.f32.mrb[176].mxu1  ;;  %v4968_v62 = vpop.f32.mrb[60].mxu0 }
 0xa2f   : > { %v12616_v63 = vadd.f32 %v4755_v53, %v4666_v61  ;;  %v10018_v0 = vpop.f32.mrb[177].mxu1  ;;  %v10070_v2 = vpop.f32.mrb[61].mxu0  ;;  %v10925_v53 = vld [vmem:[%s13336_s9 + $0x1c8] sm:$0xff]  }
 0xa30   : > { %v4669_v6 = vpop.f32.mrb[178].mxu1  ;;  %v4971_v8 = vpop.f32.mrb[62].mxu0  ;;  %v10924_v61 = vld [vmem:[%s13336_s9 + $0x188] sm:$0xff]   ;;  %v10928_v0 = vld [vmem:[%s13336_s9 + $0x198] sm:$0xff]   ;;  %v10930_v2 = vld [vmem:[%s13336_s9 + $0x1a0] sm:$0xff]  }
 0xa31   : > { %v12618_v9 = vadd.f32 %v4758_v58, %v4669_v6  ;;  %v4975_v4 = vpack.c.bf16 %v4971_v8, %v4968_v62  ;;  %v10019_v1 = vpop.f32.mrb[179].mxu1  ;;  %v10071_v7 = vpop.f32.mrb[63].mxu0  ;;  %v10922_v58 = vld [vmem:[%s13336_s9 + $0x180] sm:$0xff]   ;;  %v10929_v62 = vld [vmem:[%s13336_s9 + $0x1d8] sm:$0xff]   ;;  %v10932_v8 = vld [vmem:[%s13336_s9 + $0x1a8] sm:$0xff]  }
 0xa32   : > { %v10931_v6 = vld [vmem:[%s13336_s9 + $0x1e0] sm:$0xff]   ;;  %v10935_v1 = vld [vmem:[%s13336_s9 + $0x1f0] sm:$0xff]   ;;  %v10936_v7 = vld [vmem:[%s13336_s9 + $0x1b8] sm:$0xff]  }
 0xa33   : > { %10089 = vmatmul.mubr.bf16.vlgmr.msra.gmra.mrb[64].mxu0 %v4975_v4  ;;  %v10934_v4 = vld [vmem:[%s13336_s9 + $0x1b0] sm:$0xff]  }
 0xa34   : > { %10119 = vmatpush3.bf16.msra.mxu0 %v12478_v20  ;;  %10120 = vmatprep.mubr.msk.bf16.mxu0 %vm11119_vm0, %v11118_v44 }
 0xa35   : > { %10124 = vmatprep.subr.bf16.mxu0 %v11118_v44 }
 0xa36   : > { %v4807_v10 = vpop.f32.mrb[180].mxu1 }
 0xa37   : > { %v10044_v11 = vpop.f32.mrb[181].mxu1 }
 0xa38   : > { %v4810_v13 = vpop.f32.mrb[182].mxu1 }
 0xa39   : > { %v4814_v14 = vpack.c.bf16 %v4810_v13, %v4807_v10  ;;  %v10045_v15 = vpop.f32.mrb[183].mxu1  ;;  %v10937_v10 = vld [vmem:[%s13336_s9 + $0x1f8] sm:$0xff]  }
 0xa3b   : > { %10063 = vmatmul.mubr.bf16.vlgmr.msra.gmra.mrb[184].mxu1 %v4814_v14  ;;  %10121 = vmatmul.mubr.msk.bf16.vlgmr.msra.gmra.mrb[68].mxu0 %vm4452_vm2, %v10902_v12 }
 0xa3c   : > { %10093 = vmatpush3.bf16.msra.mxu1 %v12478_v20  ;;  %10094 = vmatprep.mubr.msk.bf16.mxu1 %vm11119_vm0, %v11118_v44 }
 0xa3d   : > { %10125 = vmatpush3.bf16.msra.mxu0 %v10904_v18  ;;  %10098 = vmatprep.subr.bf16.mxu1 %v11118_v44 }
 0xa3e   : > { %10126 = vmatprep.subr.bf16.mxu0 %v11118_v44  ;;  %10140 = vmatprep.mubr.msk.bf16.mxu0 %vm11119_vm0, %v11118_v44 }
 0xa41   : > { %10127 = vmatpush3.bf16.msra.mxu0 %v10905_v19 }
 0xa42   : > { %10128 = vmatprep.subr.bf16.mxu0 %v11118_v44 }
 0xa43   : > { %10095 = vmatmul.mubr.msk.bf16.vlgmr.msra.gmra.mrb[188].mxu1 %vm4452_vm2, %v10903_v21 }
 0xa44   : > { %10099 = vmatpush3.bf16.msra.mxu1 %v10906_v22  ;;  %10114 = vmatprep.mubr.msk.bf16.mxu1 %vm11119_vm0, %v11118_v44 }
 0xa45   : > { %10129 = vmatpush3.bf16.msra.mxu0 %v10907_v23  ;;  %10100 = vmatprep.subr.bf16.mxu1 %v11118_v44 }
 0xa46   : > { %10130 = vmatprep.subr.bf16.mxu0 %v11118_v44 }
 0xa48   : > { %10101 = vmatpush3.bf16.msra.mxu1 %v10908_v24 }
 0xa49   : > { %10131 = vmatpush3.bf16.msra.mxu0 %v10909_v59  ;;  %10102 = vmatprep.subr.bf16.mxu1 %v11118_v44 }
 0xa4a   : > { %10132 = vmatprep.subr.bf16.mxu0 %v11118_v44 }
 0xa4c   : > { %10103 = vmatpush3.bf16.msra.mxu1 %v10910_v25 }
 0xa4d   : > { %10133 = vmatpush3.bf16.msra.mxu0 %v10911_v26  ;;  %10104 = vmatprep.subr.bf16.mxu1 %v11118_v44 }
 0xa4e   : > { %10134 = vmatprep.subr.bf16.mxu0 %v11118_v44 }
 0xa50   : > { %10105 = vmatpush3.bf16.msra.mxu1 %v10912_v27 }
 0xa51   : > { %10135 = vmatpush3.bf16.msra.mxu0 %v10913_v28  ;;  %10106 = vmatprep.subr.bf16.mxu1 %v11118_v44 }
 0xa52   : > { %10136 = vmatprep.subr.bf16.mxu0 %v11118_v44 }
 0xa54   : > { %10107 = vmatpush3.bf16.msra.mxu1 %v10914_v29 }
 0xa55   : > { %10137 = vmatpush3.bf16.msra.mxu0 %v10915_v30  ;;  %10108 = vmatprep.subr.bf16.mxu1 %v11118_v44 }
 0xa56   : > { %10138 = vmatprep.subr.bf16.mxu0 %v11118_v44 }
 0xa58   : > { %10109 = vmatpush3.bf16.msra.mxu1 %v10916_v31 }
 0xa59   : > { %10139 = vmatpush3.bf16.msra.mxu0 %v10917_v32  ;;  %10110 = vmatprep.subr.bf16.mxu1 %v11118_v44 }
 0xa5a   : > { %10170 = vmatprep.subr.bf16.mxu0 %v11118_v44 }
 0xa5c   : > { %10111 = vmatpush3.bf16.msra.mxu1 %v10918_v33 }
 0xa5d   : > { %10112 = vmatprep.subr.bf16.mxu1 %v11118_v44 }
 0xa60   : > { %10113 = vmatpush3.bf16.msra.mxu1 %v10919_v34 }
 0xa61   : > { %10144 = vmatprep.subr.bf16.mxu1 %v11118_v44 }
 0xb06   : > { %v5075_v35 = vpop.f32.mrb[64].mxu0 }
 0xb07   : > { %v10090_v5 = vpop.f32.mrb[65].mxu0 }
 0xb08   : > { %v5078_v36 = vpop.f32.mrb[66].mxu0  ;;  %v10939_v5 = vld [vmem:[%s13336_s9 + $0x200] sm:$0xff]  }
 0xb09   : > { %v10091_v3 = vpop.f32.mrb[67].mxu0 }
 0xb0a   : > { %v10942_v3 = vld [vmem:[%s13336_s9 + $0x218] sm:$0xff]  }
 0xb0e   : > { %v4914_v37 = vpop.f32.mrb[184].mxu1  ;;  %v5290_v17 = vpop.f32.mrb[68].mxu0 }
 0xb0f   : > { %v4921_v16 = vadd.f32 %v4914_v37, %v12616_v63  ;;  %v10064_v38 = vpop.f32.mrb[185].mxu1  ;;  %v10122_v39 = vpop.f32.mrb[69].mxu0  ;;  %v10926_v63 = vld [vmem:[%s13336_s9 + $0x190] sm:$0xff]   ;;  %v10943_v37 = vld [vmem:[%s13336_s9 + $0x220] sm:$0xff]  }
 0xb10   : > { %v4917_v40 = vpop.f32.mrb[186].mxu1  ;;  %v5293_v41 = vpop.f32.mrb[70].mxu0  ;;  %v10946_v38 = vld [vmem:[%s13336_s9 + $0x238] sm:$0xff]  }
 0xb11   : > { %v4922_v42 = vadd.f32 %v4917_v40, %v12618_v9  ;;  %v5297_v43 = vpack.c.bf16 %v5293_v41, %v5290_v17  ;;  %v10065_v45 = vpop.f32.mrb[187].mxu1  ;;  %v12706_v46 = vadd.f32 %v5075_v35, %v4921_v16  ;;  %v10123_v47 = vpop.f32.mrb[71].mxu0  ;;  %v10933_v9 = vld [vmem:[%s13336_s9 + $0x1e8] sm:$0xff]   ;;  %v10938_v35 = vld [vmem:[%s13364_s3 + $0x40] sm:$0xff]   ;;  %v10945_v16 = vld [vmem:[%s13336_s9 + $0x230] sm:$0xff]  }
 0xb12   : > { %v10944_v17 = vld [vmem:[%s13336_s9 + $0x228] sm:$0xff]  }
 0xb13   : > { %10141 = vmatmul.mubr.bf16.vlgmr.msra.gmra.mrb[72].mxu0 %v5297_v43  ;;  %v12708_v49 = vadd.f32 %v5078_v36, %v4922_v42  ;;  %v10941_v36 = vld [vmem:[%s13336_s9 + $0x210] sm:$0xff]  }
 0xb14   : > { %10171 = vmatpush3.bf16.msra.mxu0 %v12478_v20  ;;  %10172 = vmatprep.mubr.msk.bf16.mxu0 %vm11119_vm0, %v11118_v44 }
 0xb15   : > { %10176 = vmatprep.subr.bf16.mxu0 %v11118_v44 }
 0xb16   : > { %v5129_v50 = vpop.f32.mrb[188].mxu1 }
 0xb17   : > { %v10096_v51 = vpop.f32.mrb[189].mxu1 }
 0xb18   : > { %v5132_v54 = vpop.f32.mrb[190].mxu1 }
 0xb19   : > { %v5136_v56 = vpack.c.bf16 %v5132_v54, %v5129_v50  ;;  %v10097_v57 = vpop.f32.mrb[191].mxu1 }
 0xb1b   : > { %10115 = vmatmul.mubr.bf16.vlgmr.msra.gmra.mrb[192].mxu1 %v5136_v56  ;;  %10173 = vmatmul.mubr.msk.bf16.vlgmr.msra.gmra.mrb[76].mxu0 %vm4452_vm2, %v10921_v52 }
 0xb1c   : > { %10145 = vmatpush3.bf16.msra.mxu1 %v12478_v20  ;;  %10146 = vmatprep.mubr.msk.bf16.mxu1 %vm11119_vm0, %v11118_v44 }
 0xb1d   : > { %10150 = vmatprep.subr.bf16.mxu1 %v11118_v44  ;;  %10177 = vmatpush3.bf16.msra.mxu0 %v10923_v48 }
 0xb1e   : > { %10178 = vmatprep.subr.bf16.mxu0 %v11118_v44  ;;  %10192 = vmatprep.mubr.msk.bf16.mxu0 %vm11119_vm0, %v11118_v44 }
 0xb21   : > { %10179 = vmatpush3.bf16.msra.mxu0 %v10925_v53 }
 0xb22   : > { %10180 = vmatprep.subr.bf16.mxu0 %v11118_v44 }
 0xb23   : > { %10147 = vmatmul.mubr.msk.bf16.vlgmr.msra.gmra.mrb[196].mxu1 %vm4452_vm2, %v10920_v55  ;;  %v10949_v55 = vld [vmem:[%s13338_s11] sm:$0xff]  }
 0xb24   : > { %10151 = vmatpush3.bf16.msra.mxu1 %v10922_v58  ;;  %10166 = vmatprep.mubr.msk.bf16.mxu1 %vm11119_vm0, %v11118_v44  ;;  %v10950_v58 = vld [vmem:[%s13338_s11 + $0x8] sm:$0xff]  }
 0xb25   : > { %10152 = vmatprep.subr.bf16.mxu1 %v11118_v44  ;;  %10181 = vmatpush3.bf16.msra.mxu0 %v10927_v60  ;;  %v10952_v60 = vld [vmem:[%s13338_s11 + $0x10] sm:$0xff]  }
 0xb26   : > { %10182 = vmatprep.subr.bf16.mxu0 %v11118_v44 }
 0xb28   : > { %10153 = vmatpush3.bf16.msra.mxu1 %v10924_v61  ;;  %v10954_v61 = vld [vmem:[%s13338_s11 + $0x18] sm:$0xff]  }
 0xb29   : > { %10154 = vmatprep.subr.bf16.mxu1 %v11118_v44  ;;  %10183 = vmatpush3.bf16.msra.mxu0 %v10929_v62  ;;  %v10956_v62 = vld [vmem:[%s13338_s11 + $0x20] sm:$0xff]  }
 0xb2a   : > { %10184 = vmatprep.subr.bf16.mxu0 %v11118_v44 }
 0xb2c   : > { %10155 = vmatpush3.bf16.msra.mxu1 %v10926_v63  ;;  %v10958_v63 = vld [vmem:[%s13338_s11 + $0x28] sm:$0xff]  }
 0xb2d   : > { %10156 = vmatprep.subr.bf16.mxu1 %v11118_v44  ;;  %10185 = vmatpush3.bf16.msra.mxu0 %v10931_v6  ;;  %v8429_v6 = vld [vmem:[%s13337_s10] ss:$0 sm:$0xff] }
 0xb2e   : > { %10186 = vmatprep.subr.bf16.mxu0 %v11118_v44 }
 0xb30   : > { %10157 = vmatpush3.bf16.msra.mxu1 %v10928_v0  ;;  %v10960_v0 = vld [vmem:[%s13338_s11 + $0x30] sm:$0xff]  }
 0xb31   : > { %10158 = vmatprep.subr.bf16.mxu1 %v11118_v44  ;;  %10187 = vmatpush3.bf16.msra.mxu0 %v10933_v9 }
 0xb32   : > { %10188 = vmatprep.subr.bf16.mxu0 %v11118_v44 }
 0xb34   : > { %10159 = vmatpush3.bf16.msra.mxu1 %v10930_v2 }
 0xb35   : > { %10160 = vmatprep.subr.bf16.mxu1 %v11118_v44  ;;  %10189 = vmatpush3.bf16.msra.mxu0 %v10935_v1 }
 0xb36   : > { %10190 = vmatprep.subr.bf16.mxu0 %v11118_v44 }
 0xb38   : > { %10161 = vmatpush3.bf16.msra.mxu1 %v10932_v8 }
 0xb39   : > { %10162 = vmatprep.subr.bf16.mxu1 %v11118_v44  ;;  %10191 = vmatpush3.bf16.msra.mxu0 %v10937_v10 }
 0xb3a   : > { %10222 = vmatprep.subr.bf16.mxu0 %v11118_v44 }
 0xb3c   : > { %10163 = vmatpush3.bf16.msra.mxu1 %v10934_v4 }
 0xb3d   : > { %10164 = vmatprep.subr.bf16.mxu1 %v11118_v44 }
 0xb40   : > { %10165 = vmatpush3.bf16.msra.mxu1 %v10936_v7 }
 0xb41   : > { %10196 = vmatprep.subr.bf16.mxu1 %v11118_v44 }
 0xbe6   : > { %v5397_v11 = vpop.f32.mrb[72].mxu0 }
 0xbe7   : > { %v10142_v12 = vpop.f32.mrb[73].mxu0 }
 0xbe8   : > { %v5400_v13 = vpop.f32.mrb[74].mxu0 }
 0xbe9   : > { %v10143_v14 = vpop.f32.mrb[75].mxu0 }
 0xbee   : > { %v5236_v15 = vpop.f32.mrb[192].mxu1  ;;  %v5612_v18 = vpop.f32.mrb[76].mxu0 }
 0xbef   : > { %v5243_v19 = vadd.f32 %v5236_v15, %v12706_v46  ;;  %v10116_v21 = vpop.f32.mrb[193].mxu1  ;;  %v10174_v22 = vpop.f32.mrb[77].mxu0  ;;  %v10947_v15 = vld [vmem:[%s13365_s4] sm:$0xff]  }
 0xbf0   : > { %v5239_v23 = vpop.f32.mrb[194].mxu1  ;;  %v5615_v24 = vpop.f32.mrb[78].mxu0  ;;  %v10953_v21 = vld [vmem:[%s13338_s11 + $0x48] sm:$0xff]   ;;  %v10955_v22 = vld [vmem:[%s13338_s11 + $0x50] sm:$0xff]  }
 0xbf1   : > { %v5244_v59 = vadd.f32 %v5239_v23, %v12708_v49  ;;  %v5404_v25 = vadd.f32 %v5397_v11, %v5243_v19  ;;  %v10117_v26 = vpop.f32.mrb[195].mxu1  ;;  %v5619_v27 = vpack.c.bf16 %v5615_v24, %v5612_v18  ;;  %v10175_v28 = vpop.f32.mrb[79].mxu0  ;;  %v10948_v18 = vld [vmem:[%s13365_s4 + $0x8] sm:$0xff]   ;;  %v10951_v19 = vld [vmem:[%s13338_s11 + $0x40] sm:$0xff]   ;;  %v10957_v23 = vld [vmem:[%s13338_s11 + $0x58] sm:$0xff]  }
 0xbf2   : > { %v10959_v24 = vld [vmem:[%s13338_s11 + $0x60] sm:$0xff]   ;;  %v10963_v26 = vld [vmem:[%s13338_s11 + $0x70] sm:$0xff]  }
 0xbf3   : > { %v5405_v29 = vadd.f32 %v5400_v13, %v5244_v59  ;;  %10193 = vmatmul.mubr.bf16.vlgmr.msra.gmra.mrb[80].mxu0 %v5619_v27  ;;  %v10961_v59 = vld [vmem:[%s13338_s11 + $0x68] sm:$0xff]   ;;  %v10964_v27 = vld [vmem:[%s13338_s11 + $0x78] sm:$0xff]  }
 0xbf4   : > { %10224 = vmatprep.mubr.msk.bf16.mxu0 %vm11119_vm0, %v11118_v44 }
 0xbf6   : > { %v5451_v30 = vpop.f32.mrb[196].mxu1 }
 0xbf7   : > { %v10148_v31 = vpop.f32.mrb[197].mxu1 }
 0xbf8   : > { %v5454_v32 = vpop.f32.mrb[198].mxu1 }
 0xbf9   : > { %v5458_v33 = vpack.c.bf16 %v5454_v32, %v5451_v30  ;;  %v10149_v34 = vpop.f32.mrb[199].mxu1 }
 0xbfb   : > { %10167 = vmatmul.mubr.bf16.vlgmr.msra.gmra.mrb[200].mxu1 %v5458_v33 }
 0xbfc   : > { %10197 = vmatpush3.bf16.msra.mxu1 %v12478_v20  ;;  %10198 = vmatprep.mubr.msk.bf16.mxu1 %vm11119_vm0, %v11118_v44  ;;  %v10940_v20 = vld [vmem:[%s13336_s9 + $0x208] sm:$0xff]  }
 0xbfd   : > { %10202 = vmatprep.subr.bf16.mxu1 %v11118_v44 }
 0xc03   : > { %10199 = vmatmul.mubr.msk.bf16.vlgmr.msra.gmra.mrb[204].mxu1 %vm4452_vm2, %v10938_v35  ;;  %v10965_v35 = vld [vmem:[%s13365_s4 + $0x18] sm:$0xff]  }
 0xc04   : > { %10203 = vmatpush3.bf16.msra.mxu1 %v10939_v5  ;;  %10218 = vmatprep.mubr.msk.bf16.mxu1 %vm11119_vm0, %v11118_v44 }
 0xc05   : > { %10204 = vmatprep.subr.bf16.mxu1 %v11118_v44 }
 0xc08   : > { %10205 = vmatpush3.bf16.msra.mxu1 %v10940_v20 }
 0xc09   : > { %10206 = vmatprep.subr.bf16.mxu1 %v11118_v44 }
 0xc0c   : > { %10207 = vmatpush3.bf16.msra.mxu1 %v10941_v36 }
 0xc0d   : > { %10208 = vmatprep.subr.bf16.mxu1 %v11118_v44 }
 0xc10   : > { %10209 = vmatpush3.bf16.msra.mxu1 %v10942_v3  ;;  %v10967_v3 = vld [vmem:[%s13338_s11 + $0xc0] sm:$0xff]  }
 0xc11   : > { %10210 = vmatprep.subr.bf16.mxu1 %v11118_v44 }
 0xc14   : > { %10211 = vmatpush3.bf16.msra.mxu1 %v10943_v37  ;;  %v10968_v37 = vld [vmem:[%s13338_s11 + $0xc8] sm:$0xff]  }
 0xc15   : > { %10212 = vmatprep.subr.bf16.mxu1 %v11118_v44 }
 0xc18   : > { %10213 = vmatpush3.bf16.msra.mxu1 %v10944_v17  ;;  %v10966_v17 = vld [vmem:[%s13365_s4 + $0x10] sm:$0xff]  }
 0xc19   : > { %10214 = vmatprep.subr.bf16.mxu1 %v11118_v44 }
 0xc1c   : > { %10215 = vmatpush3.bf16.msra.mxu1 %v10945_v16  ;;  %v10969_v16 = vld [vmem:[%s13338_s11 + $0x80] sm:$0xff]  }
 0xc1d   : > { %10216 = vmatprep.subr.bf16.mxu1 %v11118_v44 }
 0xc20   : > { %10217 = vmatpush3.bf16.msra.mxu1 %v10946_v38  ;;  %v10970_v38 = vld [vmem:[%s13338_s11 + $0xd0] sm:$0xff]  }
 0xc21   : > { %10254 = vmatprep.subr.bf16.mxu1 %v11118_v44 }
 0xcc6   : > { %v5719_v39 = vpop.f32.mrb[80].mxu0 }
 0xcc7   : > { %v10194_v40 = vpop.f32.mrb[81].mxu0 }
 0xcc8   : > { %v5722_v41 = vpop.f32.mrb[82].mxu0  ;;  %v10972_v40 = vld [vmem:[%s13338_s11 + $0xd8] sm:$0xff]  }
 0xcc9   : > { %v10195_v42 = vpop.f32.mrb[83].mxu0 }
 0xcca   : > { %v10974_v42 = vld [vmem:[%s13338_s11 + $0xe0] sm:$0xff]  }
 0xcce   : > { %v5558_v43 = vpop.f32.mrb[200].mxu1 }
 0xccf   : > { %v5565_v45 = vadd.f32 %v5558_v43, %v5404_v25  ;;  %v10168_v46 = vpop.f32.mrb[201].mxu1  ;;  %v10962_v25 = vld [vmem:[%s13338_s11 + $0x38] sm:$0xff]  }
 0xcd0   : > { %v5561_v47 = vpop.f32.mrb[202].mxu1  ;;  %v10975_v43 = vld [vmem:[%s13338_s11 + $0x98] sm:$0xff]   ;;  %v10977_v46 = vld [vmem:[%s13338_s11 + $0xa0] sm:$0xff]  }
 0xcd1   : > { %v5566_v49 = vadd.f32 %v5561_v47, %v5405_v29  ;;  %v5726_v50 = vadd.f32 %v5719_v39, %v5565_v45  ;;  %v10169_v51 = vpop.f32.mrb[203].mxu1  ;;  %v10971_v39 = vld [vmem:[%s13338_s11 + $0x88] sm:$0xff]   ;;  %v10978_v47 = vld [vmem:[%s13338_s11 + $0xf0] sm:$0xff]  }
 0xcd2   : > { %v10976_v45 = vld [vmem:[%s13338_s11 + $0xe8] sm:$0xff]   ;;  %v10981_v51 = vld [vmem:[%s13338_s11 + $0xb0] sm:$0xff]  }
 0xcd3   : > { %v5727_v52 = vadd.f32 %v5722_v41, %v5566_v49  ;;  %v10973_v41 = vld [vmem:[%s13338_s11 + $0x90] sm:$0xff]   ;;  %v10979_v49 = vld [vmem:[%s13338_s11 + $0xa8] sm:$0xff]  }
 0xcd6   : > { %v5773_v54 = vpop.f32.mrb[204].mxu1 }
 0xcd7   : > { %v10200_v56 = vpop.f32.mrb[205].mxu1 }
 0xcd8   : > { %v5776_v57 = vpop.f32.mrb[206].mxu1 }
 0xcd9   : > { %v5780_v48 = vpack.c.bf16 %v5776_v57, %v5773_v54  ;;  %v10201_v53 = vpop.f32.mrb[207].mxu1 }
 0xcdb   : > { %10219 = vmatmul.mubr.bf16.vlgmr.msra.gmra.mrb[208].mxu1 %v5780_v48 }
 0xcdc   : > { %10270 = vmatprep.mubr.msk.bf16.mxu1 %vm11119_vm0, %v11118_v44  ;;  %10255 = vmatpush3.bf16.msra.mxu1 %v10949_v55 }
 0xcdd   : > { %10256 = vmatprep.subr.bf16.mxu1 %v11118_v44 }
 0xce0   : > { %10257 = vmatpush3.bf16.msra.mxu1 %v10950_v58 }
 0xce1   : > { %10258 = vmatprep.subr.bf16.mxu1 %v11118_v44 }
 0xce4   : > { %10259 = vmatpush3.bf16.msra.mxu1 %v10952_v60 }
 0xce5   : > { %10260 = vmatprep.subr.bf16.mxu1 %v11118_v44 }
 0xce8   : > { %10261 = vmatpush3.bf16.msra.mxu1 %v10954_v61 }
 0xce9   : > { %10262 = vmatprep.subr.bf16.mxu1 %v11118_v44 }
 0xcec   : > { %10263 = vmatpush3.bf16.msra.mxu1 %v10956_v62 }
 0xced   : > { %10264 = vmatprep.subr.bf16.mxu1 %v11118_v44 }
 0xcf0   : > { %10265 = vmatpush3.bf16.msra.mxu1 %v10958_v63 }
 0xcf1   : > { %10266 = vmatprep.subr.bf16.mxu1 %v11118_v44 }
 0xcf4   : > { %10267 = vmatpush3.bf16.msra.mxu1 %v10960_v0 }
 0xcf5   : > { %10268 = vmatprep.subr.bf16.mxu1 %v11118_v44 }
 0xcf8   : > { %10269 = vmatpush3.bf16.msra.mxu1 %v10962_v25  ;;  %v10994_v25 = vld [vmem:[%s13338_s11 + $0x168] sm:$0xff]  }
 0xcf9   : > { %10300 = vmatprep.subr.bf16.mxu1 %v11118_v44 }
 0xdae   : > { %v5880_v2 = vpop.f32.mrb[208].mxu1 }
 0xdaf   : > { %v5887_v8 = vadd.f32 %v5880_v2, %v5726_v50  ;;  %v10220_v9 = vpop.f32.mrb[209].mxu1  ;;  %v10980_v50 = vld [vmem:[%s13338_s11 + $0xf8] sm:$0xff]  }
 0xdb0   : > { %v5883_v4 = vpop.f32.mrb[210].mxu1 }
 0xdb1   : > { %v5896_v1 = vadd.f32 %v8429_v6, %v5887_v8  ;;  %v5888_v7 = vadd.f32 %v5883_v4, %v5727_v52  ;;  %v10221_v10 = vpop.f32.mrb[211].mxu1  ;;  %v10982_v52 = vld [vmem:[%s13338_s11 + $0xb8] sm:$0xff]  }
 0xdb3   : > { %v5897_v11 = vadd.f32 %v8429_v6, %v5888_v7  ;;  %v5898_v12 = vmax.f32 %v5896_v1, 0.0  ;;  %v10983_v1 = vld [vmem:[%s13365_s4 + $0x28] sm:$0xff]  }
 0xdb5   : > { %v5899_v13 = vmax.f32 %v5897_v11, 0.0 }
 0xdb7   : > { %v12873_v14 = vpack.c.bf16 %v5899_v13, %v5898_v12  ;;  %v10985_v12 = vld [vmem:[%s13338_s11 + $0x140] sm:$0xff]   ;;  %v10986_v13 = vld [vmem:[%s13338_s11 + $0x148] sm:$0xff]  }
 0xdb9   : > { %10223 = vmatpush3.bf16.msra.mxu0 %v12873_v14 }
 0xdba   : > { %10228 = vmatprep.subr.bf16.mxu0 %v11118_v44 }
 0xdbc   : > { %10225 = vmatmul.mubr.msk.bf16.vlgmr.msra.gmra.mrb[84].mxu0 %vm4452_vm2, %v10947_v15  ;;  %v10984_v15 = vld [vmem:[%s13365_s4 + $0x20] sm:$0xff]  }
 0xdbd   : > { %10229 = vmatpush3.bf16.msra.mxu0 %v12873_v14  ;;  %10230 = vmatprep.mubr.msk.bf16.mxu0 %vm11119_vm0, %v11118_v44 }
 0xdbe   : > { %10234 = vmatprep.subr.bf16.mxu0 %v11118_v44 }
 0xdc4   : > { %10231 = vmatmul.mubr.msk.bf16.vlgmr.msra.gmra.mrb[88].mxu0 %vm4452_vm2, %v10948_v18  ;;  %v10987_v18 = vld [vmem:[%s13338_s11 + $0x100] sm:$0xff]  }
 0xdc5   : > { %10235 = vmatpush3.bf16.msra.mxu0 %v10951_v19  ;;  %10250 = vmatprep.mubr.msk.bf16.mxu0 %vm11119_vm0, %v11118_v44  ;;  %v10988_v19 = vld [vmem:[%s13338_s11 + $0x150] sm:$0xff]  }
 0xdc6   : > { %10236 = vmatprep.subr.bf16.mxu0 %v11118_v44 }
 0xdc9   : > { %10237 = vmatpush3.bf16.msra.mxu0 %v10953_v21  ;;  %v10989_v21 = vld [vmem:[%s13338_s11 + $0x108] sm:$0xff]  }
 0xdca   : > { %10238 = vmatprep.subr.bf16.mxu0 %v11118_v44 }
 0xdcd   : > { %10239 = vmatpush3.bf16.msra.mxu0 %v10955_v22  ;;  %v10990_v22 = vld [vmem:[%s13338_s11 + $0x158] sm:$0xff]  }
 0xdce   : > { %10240 = vmatprep.subr.bf16.mxu0 %v11118_v44 }
 0xdd1   : > { %10241 = vmatpush3.bf16.msra.mxu0 %v10957_v23  ;;  %v10991_v23 = vld [vmem:[%s13338_s11 + $0x110] sm:$0xff]  }
 0xdd2   : > { %10242 = vmatprep.subr.bf16.mxu0 %v11118_v44 }
 0xdd5   : > { %10243 = vmatpush3.bf16.msra.mxu0 %v10959_v24  ;;  %v10992_v24 = vld [vmem:[%s13338_s11 + $0x160] sm:$0xff]  }
 0xdd6   : > { %10244 = vmatprep.subr.bf16.mxu0 %v11118_v44 }
 0xdd9   : > { %10245 = vmatpush3.bf16.msra.mxu0 %v10961_v59  ;;  %v10993_v59 = vld [vmem:[%s13338_s11 + $0x118] sm:$0xff]  }
 0xdda   : > { %10246 = vmatprep.subr.bf16.mxu0 %v11118_v44 }
 0xddd   : > { %10247 = vmatpush3.bf16.msra.mxu0 %v10963_v26  ;;  %v10995_v26 = vld [vmem:[%s13338_s11 + $0x120] sm:$0xff]  }
 0xdde   : > { %10248 = vmatprep.subr.bf16.mxu0 %v11118_v44 }
 0xde1   : > { %10249 = vmatpush3.bf16.msra.mxu0 %v10964_v27  ;;  %v10996_v27 = vld [vmem:[%s13338_s11 + $0x170] sm:$0xff]  }
 0xde2   : > { %10274 = vmatprep.subr.bf16.mxu0 %v11118_v44 }
 0xe8f   : > { %v5945_v28 = vpop.f32.mrb[84].mxu0 }
 0xe90   : > { %v10226_v29 = vpop.f32.mrb[85].mxu0 }
 0xe91   : > { %v5948_v30 = vpop.f32.mrb[86].mxu0  ;;  %v10998_v29 = vld [vmem:[%s13338_s11 + $0x178] sm:$0xff]  }
 0xe92   : > { %v5952_v31 = vpack.c.bf16 %v5948_v30, %v5945_v28  ;;  %v10227_v32 = vpop.f32.mrb[87].mxu0  ;;  %v10997_v28 = vld [vmem:[%s13338_s11 + $0x128] sm:$0xff]   ;;  %v10999_v30 = vld [vmem:[%s13338_s11 + $0x130] sm:$0xff]  }
 0xe94   : > { %10271 = vmatmul.mubr.bf16.vlgmr.msra.gmra.mrb[212].mxu1 %v5952_v31  ;;  %v11000_v31 = vld [vmem:[%s13338_s11 + $0x138] sm:$0xff]  }
 0xe95   : > { %10301 = vmatpush3.bf16.msra.mxu1 %v12873_v14  ;;  %10302 = vmatprep.mubr.msk.bf16.mxu1 %vm11119_vm0, %v11118_v44 }
 0xe96   : > { %10306 = vmatprep.subr.bf16.mxu1 %v11118_v44 }
 0xe97   : > { %v6014_v33 = vpop.f32.mrb[88].mxu0 }
 0xe98   : > { %v10232_v34 = vpop.f32.mrb[89].mxu0 }
 0xe99   : > { %v6017_v5 = vpop.f32.mrb[90].mxu0 }
 0xe9a   : > { %v6021_v20 = vpack.c.bf16 %v6017_v5, %v6014_v33  ;;  %v10233_v36 = vpop.f32.mrb[91].mxu0 }
 0xe9c   : > { %10251 = vmatmul.mubr.bf16.vlgmr.msra.gmra.mrb[92].mxu0 %v6021_v20  ;;  %10303 = vmatmul.mubr.msk.bf16.vlgmr.msra.gmra.mrb[216].mxu1 %vm4452_vm2, %v10965_v35 }
 0xe9d   : > { %10275 = vmatpush3.bf16.msra.mxu0 %v12873_v14  ;;  %10276 = vmatprep.mubr.msk.bf16.mxu0 %vm11119_vm0, %v11118_v44 }
 0xe9e   : > { %10307 = vmatpush3.bf16.msra.mxu1 %v10967_v3  ;;  %10280 = vmatprep.subr.bf16.mxu0 %v11118_v44 }
 0xe9f   : > { %10308 = vmatprep.subr.bf16.mxu1 %v11118_v44  ;;  %10322 = vmatprep.mubr.msk.bf16.mxu1 %vm11119_vm0, %v11118_v44 }
 0xea2   : > { %10309 = vmatpush3.bf16.msra.mxu1 %v10968_v37 }
 0xea3   : > { %10310 = vmatprep.subr.bf16.mxu1 %v11118_v44 }
 0xea4   : > { %10277 = vmatmul.mubr.msk.bf16.vlgmr.msra.gmra.mrb[96].mxu0 %vm4452_vm2, %v10966_v17 }
 0xea5   : > { %10281 = vmatpush3.bf16.msra.mxu0 %v10969_v16  ;;  %10296 = vmatprep.mubr.msk.bf16.mxu0 %vm11119_vm0, %v11118_v44 }
 0xea6   : > { %10311 = vmatpush3.bf16.msra.mxu1 %v10970_v38  ;;  %10282 = vmatprep.subr.bf16.mxu0 %v11118_v44 }
 0xea7   : > { %10312 = vmatprep.subr.bf16.mxu1 %v11118_v44 }
 0xea9   : > { %10283 = vmatpush3.bf16.msra.mxu0 %v10971_v39 }
 0xeaa   : > { %10313 = vmatpush3.bf16.msra.mxu1 %v10972_v40  ;;  %10284 = vmatprep.subr.bf16.mxu0 %v11118_v44 }
 0xeab   : > { %10314 = vmatprep.subr.bf16.mxu1 %v11118_v44 }
 0xead   : > { %10285 = vmatpush3.bf16.msra.mxu0 %v10973_v41 }
 0xeae   : > { %10315 = vmatpush3.bf16.msra.mxu1 %v10974_v42  ;;  %10286 = vmatprep.subr.bf16.mxu0 %v11118_v44 }
 0xeaf   : > { %10316 = vmatprep.subr.bf16.mxu1 %v11118_v44 }
 0xeb1   : > { %10287 = vmatpush3.bf16.msra.mxu0 %v10975_v43 }
 0xeb2   : > { %10317 = vmatpush3.bf16.msra.mxu1 %v10976_v45  ;;  %10288 = vmatprep.subr.bf16.mxu0 %v11118_v44 }
 0xeb3   : > { %10318 = vmatprep.subr.bf16.mxu1 %v11118_v44 }
 0xeb5   : > { %10289 = vmatpush3.bf16.msra.mxu0 %v10977_v46 }
 0xeb6   : > { %10319 = vmatpush3.bf16.msra.mxu1 %v10978_v47  ;;  %10290 = vmatprep.subr.bf16.mxu0 %v11118_v44  ;;  %v11002_v47 = vld [vmem:[%s13365_s4 + $0x38] sm:$0xff]  }
 0xeb7   : > { %10320 = vmatprep.subr.bf16.mxu1 %v11118_v44 }
 0xeb9   : > { %10291 = vmatpush3.bf16.msra.mxu0 %v10979_v49 }
 0xeba   : > { %10321 = vmatpush3.bf16.msra.mxu1 %v10980_v50  ;;  %10292 = vmatprep.subr.bf16.mxu0 %v11118_v44 }
 0xebb   : > { %10352 = vmatprep.subr.bf16.mxu1 %v11118_v44 }
 0xebd   : > { %10293 = vmatpush3.bf16.msra.mxu0 %v10981_v51 }
 0xebe   : > { %10294 = vmatprep.subr.bf16.mxu0 %v11118_v44 }
 0xec1   : > { %10295 = vmatpush3.bf16.msra.mxu0 %v10982_v52  ;;  %v11004_v52 = vld [vmem:[%s13338_s11 + $0x1c0] sm:$0xff]  }
 0xec2   : > { %10326 = vmatprep.subr.bf16.mxu0 %v11118_v44 }
 0xf67   : > { %v6210_v54 = vpop.f32.mrb[212].mxu1 }
 0xf68   : > { %v10272_v56 = vpop.f32.mrb[213].mxu1 }
 0xf69   : > { %v6213_v57 = vpop.f32.mrb[214].mxu1  ;;  %v11001_v56 = vld [vmem:[%s13365_s4 + $0x30] sm:$0xff]  }
 0xf6a   : > { %v10273_v48 = vpop.f32.mrb[215].mxu1 }
 0xf6b   : > { %v11008_v48 = vld [vmem:[%s13338_s11 + $0x1d0] sm:$0xff]  }
 0xf6f   : > { %v6423_v53 = vpop.f32.mrb[216].mxu1  ;;  %v6121_v55 = vpop.f32.mrb[92].mxu0 }
 0xf70   : > { %v10304_v58 = vpop.f32.mrb[217].mxu1  ;;  %v13011_v60 = vadd.f32 %v6210_v54, %v6121_v55  ;;  %v10252_v61 = vpop.f32.mrb[93].mxu0  ;;  %v11006_v54 = vld [vmem:[%s13338_s11 + $0x1c8] sm:$0xff]   ;;  %v11010_v55 = vld [vmem:[%s13338_s11 + $0x1d8] sm:$0xff]  }
 0xf71   : > { %v6426_v62 = vpop.f32.mrb[218].mxu1  ;;  %v6124_v63 = vpop.f32.mrb[94].mxu0  ;;  %v11007_v58 = vld [vmem:[%s13338_s11 + $0x190] sm:$0xff]   ;;  %v11011_v61 = vld [vmem:[%s13338_s11 + $0x1a0] sm:$0xff]  }
 0xf72   : > { %v6430_v0 = vpack.c.bf16 %v6426_v62, %v6423_v53  ;;  %v13013_v2 = vadd.f32 %v6213_v57, %v6124_v63  ;;  %v10253_v6 = vpop.f32.mrb[95].mxu0  ;;  %v10305_v8 = vpop.f32.mrb[219].mxu1  ;;  %v11003_v57 = vld [vmem:[%s13338_s11 + $0x180] sm:$0xff]   ;;  %v11005_v53 = vld [vmem:[%s13338_s11 + $0x188] sm:$0xff]  }
 0xf73   : > { %v11012_v62 = vld [vmem:[%s13338_s11 + $0x1e0] sm:$0xff]   ;;  %v11013_v63 = vld [vmem:[%s13338_s11 + $0x1a8] sm:$0xff]   ;;  %v11016_v6 = vld [vmem:[%s13338_s11 + $0x1f0] sm:$0xff]  }
 0xf74   : > { %10323 = vmatmul.mubr.bf16.vlgmr.msra.gmra.mrb[220].mxu1 %v6430_v0  ;;  %v11014_v0 = vld [vmem:[%s13338_s11 + $0x1e8] sm:$0xff]   ;;  %v11017_v8 = vld [vmem:[%s13338_s11 + $0x1b8] sm:$0xff]  }
 0xf75   : > { %10353 = vmatpush3.bf16.msra.mxu1 %v12873_v14  ;;  %10354 = vmatprep.mubr.msk.bf16.mxu1 %vm11119_vm0, %v11118_v44 }
 0xf76   : > { %10358 = vmatprep.subr.bf16.mxu1 %v11118_v44 }
 0xf77   : > { %v6262_v9 = vpop.f32.mrb[96].mxu0 }
 0xf78   : > { %v10278_v4 = vpop.f32.mrb[97].mxu0 }
 0xf79   : > { %v6265_v7 = vpop.f32.mrb[98].mxu0 }
 0xf7a   : > { %v6269_v10 = vpack.c.bf16 %v6265_v7, %v6262_v9  ;;  %v10279_v11 = vpop.f32.mrb[99].mxu0  ;;  %v11018_v9 = vld [vmem:[%s13338_s11 + $0x1f8] sm:$0xff]  }
 0xf7c   : > { %10297 = vmatmul.mubr.bf16.vlgmr.msra.gmra.mrb[100].mxu0 %v6269_v10  ;;  %10355 = vmatmul.mubr.msk.bf16.vlgmr.msra.gmra.mrb[224].mxu1 %vm4452_vm2, %v10983_v1 }
 0xf7d   : > { %10327 = vmatpush3.bf16.msra.mxu0 %v12873_v14  ;;  %10328 = vmatprep.mubr.msk.bf16.mxu0 %vm11119_vm0, %v11118_v44 }
 0xf7e   : > { %10359 = vmatpush3.bf16.msra.mxu1 %v10985_v12  ;;  %10332 = vmatprep.subr.bf16.mxu0 %v11118_v44 }
 0xf7f   : > { %10360 = vmatprep.subr.bf16.mxu1 %v11118_v44  ;;  %10374 = vmatprep.mubr.msk.bf16.mxu1 %vm11119_vm0, %v11118_v44 }
 0xf82   : > { %10361 = vmatpush3.bf16.msra.mxu1 %v10986_v13 }
 0xf83   : > { %10362 = vmatprep.subr.bf16.mxu1 %v11118_v44 }
 0xf84   : > { %10329 = vmatmul.mubr.msk.bf16.vlgmr.msra.gmra.mrb[104].mxu0 %vm4452_vm2, %v10984_v15 }
 0xf85   : > { %10333 = vmatpush3.bf16.msra.mxu0 %v10987_v18  ;;  %10348 = vmatprep.mubr.msk.bf16.mxu0 %vm11119_vm0, %v11118_v44 }
 0xf86   : > { %10363 = vmatpush3.bf16.msra.mxu1 %v10988_v19  ;;  %10334 = vmatprep.subr.bf16.mxu0 %v11118_v44 }
 0xf87   : > { %10364 = vmatprep.subr.bf16.mxu1 %v11118_v44 }
 0xf89   : > { %10335 = vmatpush3.bf16.msra.mxu0 %v10989_v21 }
 0xf8a   : > { %10365 = vmatpush3.bf16.msra.mxu1 %v10990_v22  ;;  %10336 = vmatprep.subr.bf16.mxu0 %v11118_v44 }
 0xf8b   : > { %10366 = vmatprep.subr.bf16.mxu1 %v11118_v44 }
 0xf8d   : > { %10337 = vmatpush3.bf16.msra.mxu0 %v10991_v23 }
 0xf8e   : > { %10367 = vmatpush3.bf16.msra.mxu1 %v10992_v24  ;;  %10338 = vmatprep.subr.bf16.mxu0 %v11118_v44 }
 0xf8f   : > { %10368 = vmatprep.subr.bf16.mxu1 %v11118_v44 }
 0xf91   : > { %10339 = vmatpush3.bf16.msra.mxu0 %v10993_v59 }
 0xf92   : > { %10369 = vmatpush3.bf16.msra.mxu1 %v10994_v25  ;;  %10340 = vmatprep.subr.bf16.mxu0 %v11118_v44 }
 0xf93   : > { %10370 = vmatprep.subr.bf16.mxu1 %v11118_v44 }
 0xf95   : > { %10341 = vmatpush3.bf16.msra.mxu0 %v10995_v26 }
 0xf96   : > { %10371 = vmatpush3.bf16.msra.mxu1 %v10996_v27  ;;  %10342 = vmatprep.subr.bf16.mxu0 %v11118_v44 }
 0xf97   : > { %10372 = vmatprep.subr.bf16.mxu1 %v11118_v44 }
 0xf99   : > { %10343 = vmatpush3.bf16.msra.mxu0 %v10997_v28 }
 0xf9a   : > { %10373 = vmatpush3.bf16.msra.mxu1 %v10998_v29  ;;  %10344 = vmatprep.subr.bf16.mxu0 %v11118_v44 }
 0xf9b   : > { %10404 = vmatprep.subr.bf16.mxu1 %v11118_v44 }
 0xf9d   : > { %10345 = vmatpush3.bf16.msra.mxu0 %v10999_v30 }
 0xf9e   : > { %10346 = vmatprep.subr.bf16.mxu0 %v11118_v44 }
 0xfa1   : > { %10347 = vmatpush3.bf16.msra.mxu0 %v11000_v31 }
 0xfa2   : > { %10378 = vmatprep.subr.bf16.mxu0 %v11118_v44 }
0x1047   : > { %v6530_v32 = vpop.f32.mrb[220].mxu1 }
0x1048   : > { %v10324_v33 = vpop.f32.mrb[221].mxu1 }
0x1049   : > { %v6533_v34 = vpop.f32.mrb[222].mxu1  ;;  %v11020_v33 = vld [vmem:[%s13338_s11 + $0x200] sm:$0xff]  }
0x104a   : > { %v10325_v35 = vpop.f32.mrb[223].mxu1 }
0x104b   : > { %v11023_v35 = vld [vmem:[%s13338_s11 + $0x218] sm:$0xff]  }
0x104f   : > { %v6369_v5 = vpop.f32.mrb[100].mxu0  ;;  %v6745_v20 = vpop.f32.mrb[224].mxu1 }
0x1050   : > { %v6376_v36 = vadd.f32 %v6369_v5, %v13011_v60  ;;  %v10298_v3 = vpop.f32.mrb[101].mxu0  ;;  %v10356_v37 = vpop.f32.mrb[225].mxu1  ;;  %v11009_v60 = vld [vmem:[%s13338_s11 + $0x198] sm:$0xff]   ;;  %v11024_v5 = vld [vmem:[%s13338_s11 + $0x220] sm:$0xff]  }
0x1051   : > { %v6372_v17 = vpop.f32.mrb[102].mxu0  ;;  %v6748_v16 = vpop.f32.mrb[226].mxu1  ;;  %v11027_v3 = vld [vmem:[%s13338_s11 + $0x238] sm:$0xff]   ;;  %v11028_v37 = vld [vmem:[%s13340_s13] sm:$0xff]  }
0x1052   : > { %v6377_v38 = vadd.f32 %v6372_v17, %v13013_v2  ;;  %v6752_v39 = vpack.c.bf16 %v6748_v16, %v6745_v20  ;;  %v10299_v40 = vpop.f32.mrb[103].mxu0  ;;  %v13101_v41 = vadd.f32 %v6530_v32, %v6376_v36  ;;  %v10357_v42 = vpop.f32.mrb[227].mxu1  ;;  %v11015_v2 = vld [vmem:[%s13338_s11 + $0x1b0] sm:$0xff]   ;;  %v11019_v32 = vld [vmem:[%s13365_s4 + $0x40] sm:$0xff]   ;;  %v11025_v20 = vld [vmem:[%s13338_s11 + $0x228] sm:$0xff]   ;;  %s13286_s4 = scalar_lea.sflag [#allocation3], %s539_s20 }
0x1053   : > { %v11026_v36 = vld [vmem:[%s13338_s11 + $0x230] sm:$0xff]   ;;  %v11029_v17 = vld [vmem:[%s13340_s13 + $0x8] sm:$0xff]  }
0x1054   : > { %10375 = vmatmul.mubr.bf16.vlgmr.msra.gmra.mrb[228].mxu1 %v6752_v39  ;;  %v13103_v43 = vadd.f32 %v6533_v34, %v6377_v38  ;;  %v11022_v34 = vld [vmem:[%s13338_s11 + $0x210] sm:$0xff]   ;;  %v11031_v38 = vld [vmem:[%s13340_s13 + $0x18] sm:$0xff]   ;;  %v11032_v39 = vld [vmem:[%s13340_s13 + $0x20] sm:$0xff]  }
0x1055   : > { %10405 = vmatpush3.bf16.msra.mxu1 %v12873_v14  ;;  %10406 = vmatprep.mubr.msk.bf16.mxu1 %vm11119_vm0, %v11118_v44  ;;  %v11030_v16 = vld [vmem:[%s13340_s13 + $0x10] sm:$0xff]  }
0x1056   : > { %10410 = vmatprep.subr.bf16.mxu1 %v11118_v44 }
0x1057   : > { %v6584_v45 = vpop.f32.mrb[104].mxu0 }
0x1058   : > { %v10330_v46 = vpop.f32.mrb[105].mxu0 }
0x1059   : > { %v6587_v49 = vpop.f32.mrb[106].mxu0 }
0x105a   : > { %v6591_v50 = vpack.c.bf16 %v6587_v49, %v6584_v45  ;;  %v10331_v51 = vpop.f32.mrb[107].mxu0 }
0x105c   : > { %10349 = vmatmul.mubr.bf16.vlgmr.msra.gmra.mrb[108].mxu0 %v6591_v50  ;;  %10407 = vmatmul.mubr.msk.bf16.vlgmr.msra.gmra.mrb[232].mxu1 %vm4452_vm2, %v11002_v47 }
0x105d   : > { %10379 = vmatpush3.bf16.msra.mxu0 %v12873_v14  ;;  %10380 = vmatprep.mubr.msk.bf16.mxu0 %vm11119_vm0, %v11118_v44 }
0x105e   : > { %10384 = vmatprep.subr.bf16.mxu0 %v11118_v44  ;;  %10411 = vmatpush3.bf16.msra.mxu1 %v11004_v52 }
0x105f   : > { %10412 = vmatprep.subr.bf16.mxu1 %v11118_v44  ;;  %10426 = vmatprep.mubr.msk.bf16.mxu1 %vm11119_vm0, %v11118_v44 }
0x1062   : > { %10413 = vmatpush3.bf16.msra.mxu1 %v11006_v54 }
0x1063   : > { %10414 = vmatprep.subr.bf16.mxu1 %v11118_v44 }
0x1064   : > { %10381 = vmatmul.mubr.msk.bf16.vlgmr.msra.gmra.mrb[112].mxu0 %vm4452_vm2, %v11001_v56 }
0x1065   : > { %10385 = vmatpush3.bf16.msra.mxu0 %v11003_v57  ;;  %10400 = vmatprep.mubr.msk.bf16.mxu0 %vm11119_vm0, %v11118_v44 }
0x1066   : > { %10386 = vmatprep.subr.bf16.mxu0 %v11118_v44  ;;  %10415 = vmatpush3.bf16.msra.mxu1 %v11008_v48 }
0x1067   : > { %10416 = vmatprep.subr.bf16.mxu1 %v11118_v44 }
0x1069   : > { %10387 = vmatpush3.bf16.msra.mxu0 %v11005_v53 }
0x106a   : > { %10388 = vmatprep.subr.bf16.mxu0 %v11118_v44  ;;  %10417 = vmatpush3.bf16.msra.mxu1 %v11010_v55 }
0x106b   : > { %10418 = vmatprep.subr.bf16.mxu1 %v11118_v44 }
0x106d   : > { %10389 = vmatpush3.bf16.msra.mxu0 %v11007_v58  ;;  %v11033_v58 = vld [vmem:[%s13340_s13 + $0x28] sm:$0xff]  }
0x106e   : > { %10390 = vmatprep.subr.bf16.mxu0 %v11118_v44  ;;  %10419 = vmatpush3.bf16.msra.mxu1 %v11012_v62 }
0x106f   : > { %10420 = vmatprep.subr.bf16.mxu1 %v11118_v44 }
0x1071   : > { %10391 = vmatpush3.bf16.msra.mxu0 %v11009_v60  ;;  %v11034_v60 = vld [vmem:[%s13340_s13 + $0x30] sm:$0xff]  }
0x1072   : > { %10392 = vmatprep.subr.bf16.mxu0 %v11118_v44  ;;  %10421 = vmatpush3.bf16.msra.mxu1 %v11014_v0 }
0x1073   : > { %10422 = vmatprep.subr.bf16.mxu1 %v11118_v44 }
0x1075   : > { %10393 = vmatpush3.bf16.msra.mxu0 %v11011_v61  ;;  %v11035_v61 = vld [vmem:[%s13340_s13 + $0x38] sm:$0xff]  }
0x1076   : > { %10394 = vmatprep.subr.bf16.mxu0 %v11118_v44  ;;  %10423 = vmatpush3.bf16.msra.mxu1 %v11016_v6 }
0x1077   : > { %10424 = vmatprep.subr.bf16.mxu1 %v11118_v44 }
0x1079   : > { %10395 = vmatpush3.bf16.msra.mxu0 %v11013_v63  ;;  %v8664_v63 = vld [vmem:[%s13339_s12] ss:$0 sm:$0xff] }
0x107a   : > { %10396 = vmatprep.subr.bf16.mxu0 %v11118_v44  ;;  %10425 = vmatpush3.bf16.msra.mxu1 %v11018_v9 }
0x107b   : > { %10456 = vmatprep.subr.bf16.mxu1 %v11118_v44 }
0x107d   : > { %10397 = vmatpush3.bf16.msra.mxu0 %v11015_v2 }
0x107e   : > { %10398 = vmatprep.subr.bf16.mxu0 %v11118_v44 }
0x1081   : > { %10399 = vmatpush3.bf16.msra.mxu0 %v11017_v8 }
0x1082   : > { %10430 = vmatprep.subr.bf16.mxu0 %v11118_v44 }
0x1127   : > { %v6852_v4 = vpop.f32.mrb[228].mxu1 }
0x1128   : > { %v10376_v1 = vpop.f32.mrb[229].mxu1 }
0x1129   : > { %v6855_v7 = vpop.f32.mrb[230].mxu1 }
0x112a   : > { %v10377_v10 = vpop.f32.mrb[231].mxu1 }
0x112f   : > { %v6691_v11 = vpop.f32.mrb[108].mxu0  ;;  %v7067_v12 = vpop.f32.mrb[232].mxu1 }
0x1130   : > { %v6698_v13 = vadd.f32 %v6691_v11, %v13101_v41  ;;  %v10350_v15 = vpop.f32.mrb[109].mxu0  ;;  %v10408_v18 = vpop.f32.mrb[233].mxu1  ;;  %v8665_v11 = vld [vmem:[%s13341_s14] ss:$0 sm:$0xff] }
0x1131   : > { %v6694_v19 = vpop.f32.mrb[110].mxu0  ;;  %v7070_v21 = vpop.f32.mrb[234].mxu1 }
0x1132   : > { %v6699_v22 = vadd.f32 %v6694_v19, %v13103_v43  ;;  %v6859_v23 = vadd.f32 %v6852_v4, %v6698_v13  ;;  %v10351_v24 = vpop.f32.mrb[111].mxu0  ;;  %v7074_v59 = vpack.c.bf16 %v7070_v21, %v7067_v12  ;;  %v10409_v25 = vpop.f32.mrb[235].mxu1 }
0x1134   : > { %v6860_v26 = vadd.f32 %v6855_v7, %v6699_v22  ;;  %10427 = vmatmul.mubr.bf16.vlgmr.msra.gmra.mrb[236].mxu1 %v7074_v59 }
0x1135   : > { %10472 = vmatprep.mubr.msk.bf16.mxu1 %vm11119_vm0, %v11118_v44  ;;  %10457 = vmatpush3.bf16.msra.mxu1 %v11028_v37 }
0x1136   : > { %10458 = vmatprep.subr.bf16.mxu1 %v11118_v44 }
0x1137   : > { %v6906_v27 = vpop.f32.mrb[112].mxu0 }
0x1138   : > { %v10382_v28 = vpop.f32.mrb[113].mxu0 }
0x1139   : > { %v6909_v29 = vpop.f32.mrb[114].mxu0  ;;  %10459 = vmatpush3.bf16.msra.mxu1 %v11029_v17 }
0x113a   : > { %v6913_v30 = vpack.c.bf16 %v6909_v29, %v6906_v27  ;;  %v10383_v31 = vpop.f32.mrb[115].mxu0  ;;  %10460 = vmatprep.subr.bf16.mxu1 %v11118_v44 }
0x113c   : > { %10401 = vmatmul.mubr.bf16.vlgmr.msra.gmra.mrb[116].mxu0 %v6913_v30 }
0x113d   : > { %10431 = vmatpush3.bf16.msra.mxu0 %v12873_v14  ;;  %10432 = vmatprep.mubr.msk.bf16.mxu0 %vm11119_vm0, %v11118_v44  ;;  %v11021_v14 = vld [vmem:[%s13338_s11 + $0x208] sm:$0xff]  }
0x113e   : > { %10436 = vmatprep.subr.bf16.mxu0 %v11118_v44  ;;  %10461 = vmatpush3.bf16.msra.mxu1 %v11030_v16 }
0x113f   : > { %10462 = vmatprep.subr.bf16.mxu1 %v11118_v44 }
0x1142   : > { %10463 = vmatpush3.bf16.msra.mxu1 %v11031_v38 }
0x1143   : > { %10464 = vmatprep.subr.bf16.mxu1 %v11118_v44 }
0x1144   : > { %10433 = vmatmul.mubr.msk.bf16.vlgmr.msra.gmra.mrb[120].mxu0 %vm4452_vm2, %v11019_v32 }
0x1145   : > { %10437 = vmatpush3.bf16.msra.mxu0 %v11020_v33  ;;  %10452 = vmatprep.mubr.msk.bf16.mxu0 %vm11119_vm0, %v11118_v44 }
0x1146   : > { %10438 = vmatprep.subr.bf16.mxu0 %v11118_v44  ;;  %10465 = vmatpush3.bf16.msra.mxu1 %v11032_v39  ;;  %v8674_v39 = vld [vmem:[%s13342_s15] ss:$0 sm:$0xff] }
0x1147   : > { %10466 = vmatprep.subr.bf16.mxu1 %v11118_v44 }
0x1149   : > { %10439 = vmatpush3.bf16.msra.mxu0 %v11021_v14 }
0x114a   : > { %10440 = vmatprep.subr.bf16.mxu0 %v11118_v44  ;;  %10467 = vmatpush3.bf16.msra.mxu1 %v11033_v58 }
0x114b   : > { %10468 = vmatprep.subr.bf16.mxu1 %v11118_v44 }
0x114d   : > { %10441 = vmatpush3.bf16.msra.mxu0 %v11022_v34 }
0x114e   : > { %10442 = vmatprep.subr.bf16.mxu0 %v11118_v44  ;;  %10469 = vmatpush3.bf16.msra.mxu1 %v11034_v60 }
0x114f   : > { %10470 = vmatprep.subr.bf16.mxu1 %v11118_v44 }
0x1151   : > { %10443 = vmatpush3.bf16.msra.mxu0 %v11023_v35 }
0x1152   : > { %10444 = vmatprep.subr.bf16.mxu0 %v11118_v44  ;;  %10471 = vmatpush3.bf16.msra.mxu1 %v11035_v61 }
0x1155   : > { %10445 = vmatpush3.bf16.msra.mxu0 %v11024_v5 }
0x1156   : > { %10446 = vmatprep.subr.bf16.mxu0 %v11118_v44 }
0x1159   : > { %10447 = vmatpush3.bf16.msra.mxu0 %v11025_v20 }
0x115a   : > { %10448 = vmatprep.subr.bf16.mxu0 %v11118_v44 }
0x115d   : > { %10449 = vmatpush3.bf16.msra.mxu0 %v11026_v36 }
0x115e   : > { %10450 = vmatprep.subr.bf16.mxu0 %v11118_v44 }
0x1161   : > { %10451 = vmatpush3.bf16.msra.mxu0 %v11027_v3 }
0x1207   : > { %v7174_v40 = vpop.f32.mrb[236].mxu1 }
0x1208   : > { %v10428_v41 = vpop.f32.mrb[237].mxu1 }
0x1209   : > { %v7177_v42 = vpop.f32.mrb[238].mxu1 }
0x120a   : > { %v10429_v43 = vpop.f32.mrb[239].mxu1 }
0x120f   : > { %v7013_v45 = vpop.f32.mrb[116].mxu0 }
0x1210   : > { %v7020_v46 = vadd.f32 %v7013_v45, %v6859_v23  ;;  %v10402_v47 = vpop.f32.mrb[117].mxu0 }
0x1211   : > { %v7016_v49 = vpop.f32.mrb[118].mxu0 }
0x1212   : > { %v7021_v50 = vadd.f32 %v7016_v49, %v6860_v26  ;;  %v7181_v51 = vadd.f32 %v7174_v40, %v7020_v46  ;;  %v10403_v52 = vpop.f32.mrb[119].mxu0 }
0x1214   : > { %v7182_v54 = vadd.f32 %v7177_v42, %v7021_v50  ;;  %v8675_v42 = vld [vmem:[%s13343_s16] ss:$0 sm:$0xff] }
0x1217   : > { %v7228_v56 = vpop.f32.mrb[120].mxu0 }
0x1218   : > { %v10434_v57 = vpop.f32.mrb[121].mxu0 }
0x1219   : > { %v7231_v48 = vpop.f32.mrb[122].mxu0 }
0x121a   : > { %v7235_v53 = vpack.c.bf16 %v7231_v48, %v7228_v56  ;;  %v10435_v55 = vpop.f32.mrb[123].mxu0 }
0x121c   : > { %10453 = vmatmul.mubr.bf16.vlgmr.msra.gmra.mrb[124].mxu0 %v7235_v53 }
0x12ef   : > { %v7335_v62 = vpop.f32.mrb[124].mxu0 }
0x12f0   : > { %v7342_v0 = vadd.f32 %v7335_v62, %v7181_v51  ;;  %v10454_v2 = vpop.f32.mrb[125].mxu0 }
0x12f1   : > { %v7338_v6 = vpop.f32.mrb[126].mxu0 }
0x12f2   : > { %v7351_v8 = vadd.f32 %v8664_v63, %v7342_v0  ;;  %v7343_v9 = vadd.f32 %v7338_v6, %v7182_v54  ;;  %v10455_v4 = vpop.f32.mrb[127].mxu0 }
0x12f4   : > { %v7352_v1 = vadd.f32 %v8664_v63, %v7343_v9  ;;  %v7353_v7 = vmax.f32 %v7351_v8, 0.0 }
0x12f6   : > { %v7354_v10 = vmax.f32 %v7352_v1, 0.0 }
0x12f8   : > { %v7355_v44 = vpack.c.bf16 %v7354_v10, %v7353_v7 }
0x12fa   : > { %10473 = vmatmul.mubr.bf16.vlgmr.msra.gmra.mrb[240].mxu1 %v7355_v44 }
0x13cd   : > { %v7461_v12 = vpop.f32.mrb[240].mxu1 }
0x13ce   : > { %v10474_v13 = vpop.f32.mrb[241].mxu1  ;;  %v7462_v18 = vadd.f32 %v8665_v11, %v7461_v12 }
0x13cf   : > { %v7464_v15 = vpop.f32.mrb[242].mxu1 }
0x13d0   : > { %v7465_v19 = vadd.f32 %v8665_v11, %v7464_v15  ;;  %v10475_v21 = vpop.f32.mrb[243].mxu1  ;;  %v7479_v24 = vmul.f32 %v7462_v18, %v7462_v18 }
0x13d2   : > { %v7468_v22 = vadd.f32 %v7465_v19, %v7462_v18  ;;  %v7480_v23 = vmul.f32 %v7465_v19, %v7465_v19 }
0x13d4   : > { %7469 = vadd.xlane.f32.xlu0 %v7468_v22  ;;  %v7481_v59 = vadd.f32 %v7480_v23, %v7479_v24 }
0x13d8   : > { %7482 = vadd.xlane.f32.xlu0 %v7481_v59 }
0x1461   : > { %v7470_v25 = vpop.xlane.xlu0 %7469 }
0x1462   : > { %v7471_v26 = vrot.slane %v7470_v25, 4 }
0x1464   : > { %v7472_v27 = vadd.f32 %v7471_v26, %v7470_v25 }
0x1465   : > { %v7483_v28 = vpop.xlane.xlu0 %7482 }
0x1466   : > { %v7473_v29 = vrot.slane %v7472_v27, 2  ;;  %v7484_v30 = vrot.slane %v7483_v28, 4 }
0x1468   : > { %v7485_v31 = vadd.f32 %v7484_v30, %v7483_v28  ;;  %v7474_v32 = vadd.f32 %v7473_v29, %v7472_v27 }
0x146a   : > { %v7486_v33 = vrot.slane %v7485_v31, 2  ;;  %v7475_v14 = vrot.slane %v7474_v32, 1 }
0x146c   : > { %v7487_v34 = vadd.f32 %v7486_v33, %v7485_v31  ;;  %v7476_v35 = vadd.f32 %v7475_v14, %v7474_v32 }
0x146e   : > { %10540 = vpush %v7476_v35  ;;  %v7488_v5 = vrot.slane %v7487_v34, 1 }
0x1470   : > { %v7489_v20 = vadd.f32 %v7488_v5, %v7487_v34 }
0x1472   : > { %10542 = vpush %v7489_v20 }
0x149f   : > { %s10541_s21 = spop %10540 }
0x14a0   : > { %s7478_s22 = smul.f32 0.0006510417, %s10541_s21  ;;  %s541_s21 = scalar_lea.vmem [#allocation2], %s7604_s19 }
0x14a2   : > { %s7492_s29 = smul.f32 %s7478_s22, %s7478_s22  ;;  %v7498_v37 = vstv %s7478_s22 }
0x14a3   : > { %s10543_s30 = spop %10542  ;;  %v7499_v17 = vsub.f32 %v7462_v18, %v7498_v37  ;;  %v7500_v16 = vsub.f32 %v7465_v19, %v7498_v37 }
0x14a4   : > { %s7491_s0 = smul.f32 0.0006510417, %s10543_s30  ;;  %s8682_s30 = sshll.u32 %s11234_s28, 8 }
0x14a5   : > { %s13284_s3 = scalar_lea.hbm %s13344_s17, %s8682_s30 }
0x14a6   : > { %s7493_s18 = ssub.f32 %s7491_s0, %s7492_s29  ;;  %s7538_s29 = sshll.u32 %s541_s21, 4  ;;  %s13279_s29 = int_to_ptr.vmem [resolvable:$true] %s7538_s29 }
0x14a7   : > { %s11054_s28 = scalar_lea.vmem %s13279_s29, 256 }
0x14a8   : > { %s7494_s26 = sadd.f32 1e-05, %s7493_s18  ;;  %p11055_p11 = scmp.ne.s32.totalorder %s13279_s29, %s11054_s28 }
0x14aa   : > { %v7495_v36 = vstv %s7494_s26  ;;  %p11056_p12 = pnand %p11055_p11, %p11251_p5  ;;  %s11120_s26 = smov [#allocation2]  }
0x14ab   : > { %11036 = vrsqrt.f32 %v7495_v36  ;;  %s11058_s19 = sshll.u32 %s11120_s26, 4  ;;  %s11059_s19 = int_to_ptr.vmem [resolvable:$false] %s11058_s19 }
0x14ac   : > { %p11057_p13 = pneg %p11056_p12  ;;  %s11060_s0 = scalar_lea.vmem %s11059_s19, 512 }
0x14ad   : > { %p11061_p0 = scmp.lt.s32.totalorder %s13279_s29, %s11059_s19  ;;  %p11062_p1 = scmp.lt.s32.totalorder %s11060_s0, %s11054_s28 }
0x14af   : > { %p11063_p2 = por %p11062_p1, %p11061_p0 }
0x14b1   : > { %p11064_p3 = pnand %p11063_p2, %p11057_p13 }
0x14b5   : > { %v11037_v3 = vpop.eup %11036 }
0x14b6   : > { %10544 = vpush %v11037_v3 }
0x14e7   : > { %s10545_s2 = spop %10544 }
0x14e8   : > { %v7501_v38 = vstv %s10545_s2 }
0x14e9   : > { %v7502_v40 = vmul.f32 %v7501_v38, %v7499_v17  ;;  %v7503_v41 = vmul.f32 %v7501_v38, %v7500_v16 }
0x14eb   : > { %v7511_v43 = vmul.f32 %v8674_v39, %v7502_v40  ;;  %v7512_v45 = vmul.f32 %v8674_v39, %v7503_v41 }
0x14ed   : > { %v7520_v46 = vadd.f32 %v8675_v42, %v7511_v43  ;;  %v7521_v47 = vadd.f32 %v8675_v42, %v7512_v45 }
0x14ef   : > { %7522 = vst [vmem:[%s541_s21] sm:$0xff] %v7520_v46  ;;  %7523 = vst [vmem:[%s541_s21 + $0x8] sm:$0xff] %v7521_v47 }
0x14f0   : > { %11067 = shalt.err (!%p11064_p3)
}
0x14f1   : > { %s11068_s20 = scalar_lea.hbm %s13284_s3, 256  ;;  %s11072_s18 = scalar_lea.hbm %s13344_s17, 512 }
0x14f2   : > { %p11069_p4 = scmp.ne.s32.totalorder %s13284_s3, %s11068_s20  ;;  %p11073_p9 = scmp.lt.u32.totalorder %s13284_s3, %s13344_s17 }
0x14f3   : > { %p11074_p10 = scmp.lt.u32.totalorder %s11072_s18, %s11068_s20  ;;  %p11076_p12 = scmp.lt.u32.totalorder %s11068_s20, %s13284_s3 }
0x14f4   : > { %p11070_p7 = pnand %p11069_p4, %p11251_p5 }
0x14f5   : > { %p11075_p11 = por %p11074_p10, %p11073_p9 }
0x14f6   : > { %p11071_p8 = pneg %p11070_p7 }
0x14f7   : > { %p11077_p13 = por %p11076_p12, %p11075_p11 }
0x14f9   : > { %p11078_p0 = pnand %p11077_p13, %p11071_p8 }
0x14fb   : > { %11081 = shalt.err (!%p11078_p0)
}
0x14fc   : > { %s11121_s28 = smov 128   ;;  %s11122_s26 = smov 8  }
0x14fd   : > { %10546 = dma.vmem_to_hbm [thread:$0]  (%p11251_p5), %s13279_s29, 256, %s13284_s3, %s13286_s4, %s11121_s28, %s11121_s28, %s11122_s26  }
0x14fe PF: > { %p10552_p1 = scmp.ge.s32.totalorder %s11116_s27, 2  ;;  %s7553_s0 = sand.u32 1, %s11104_s24  }
0x14ff   : > { %s7554_s20 = scalar_lea.sflag [#allocation3], %s7553_s0 }
0x1500   : > { %p10549_p2 = pnand %p10552_p1, %p11255_p6 }
0x1502   : > { %11099 = dma.done.wait (!%p10549_p2), %s7554_s20, 256  }
0x1503   : > { %11101 = vsyncadd (!%p10549_p2), %s7554_s20, 4294967040  ;;  %s13367_s27 = sld [smem:[#allocation6_spill]]  ;;  %s13368_s21 = sld [smem:[#allocation5_spill]] }
0x1504   : > { %s13369_s26 = sld [smem:[#allocation7_spill]]  ;;  %s13370_s24 = smov %s11108_s25 }
0x1509   : > { %p27_p3 = scmp.ge.s32.totalorder %s13367_s27, 4   ;;  %s13371_s25 = smov %s13368_s21 }
0x150b   :  { %29 = sbr.rel (!%p27_p3) target bundleno = 9 (0x9), region = 187 }
0x1512   :  { %7559 = vsyncpa [#allocation3], 1 }
0x1513   :  { %7561 = vsyncpa [#allocation3 + $0x1], 1 }

</bundles_post_ra>
